<compile_context>
chip_gen: v7x
topology: tpu7x:2x2x1
jax: 0.10.0
libtpu: 0.0.40
codegen_flags: <defaults>
</compile_context>

<pallas_src>
import math
import jax
import jax.numpy as jnp
from jax import lax
from jax.experimental import pallas as pl
from jax.experimental.pallas import tpu as pltpu

EPS = 1e-8           # module eps for sum_normalize
LN_EPS = 1e-5        # torch.nn.LayerNorm default eps
STOP_THRESHOLD = 0.1
WINDOW = 5           # scorer_window_size


def _erf(x):
    # Abramowitz & Stegun 7.1.26 (|err| < 1.5e-7) — matches exact erf to f32
    # precision with ops that have guaranteed Mosaic lowerings.
    a1, a2, a3, a4, a5 = 0.254829592, -0.284496736, 1.421413741, -1.453152027, 1.061405429
    p = 0.3275911
    s = jnp.where(x >= 0.0, 1.0, -1.0)
    ax = jnp.abs(x)
    t = 1.0 / (1.0 + p * ax)
    poly = ((((a5 * t + a4) * t + a3) * t + a2) * t + a1) * t
    return s * (1.0 - poly * jnp.exp(-ax * ax))


def _gelu(x):
    # exact (erf-based) GELU, like torch.nn.functional.gelu default
    return 0.5 * x * (1.0 + _erf(x * 0.7071067811865476))


def _layer_norm(x, g, b):
    mu = jnp.mean(x, axis=-1, keepdims=True)
    var = jnp.mean(jnp.square(x - mu), axis=-1, keepdims=True)
    return (x - mu) * lax.rsqrt(var + LN_EPS) * g + b


def _crvnn_kernel(
    # scalar prefetch (SMEM)
    mlen_ref,                                   # (N,) int32, augmented lengths
    # per-batch inputs (one batch element per grid step)
    seq_ref, im_col_ref, im_row_ref, selm_ref, last_ref,
    # shared 2-D weights
    w_init_ref, b_init_ref, ln1g_ref, ln1b_ref,
    w_conv_ref, b_conv_ref,
    w_sc_ref, b_sc_ref,
    w1_ref, b1_ref,
    w2_ref, b2_ref,
    ln2g_ref, ln2b_ref,
    # outputs
    o_seq_ref, o_gs_ref,
    # scratch
    ep_s, um_s,
):
    f32 = jnp.float32
    Sa, D = seq_ref.shape
    bidx = pl.program_id(0)
    mlen = mlen_ref[bidx]                       # int32 scalar (SMEM)

    im_col = im_col_ref[...]                    # (Sa, 1)
    im_row = im_row_ref[...]                    # (1, Sa)
    selm = selm_ref[...]                        # (Sa, 1) start_end_last_mask

    # loop-invariant (Sa, Sa) index matrices (hoisted out of the recursion)
    r_idx = lax.broadcasted_iota(jnp.int32, (Sa, Sa), 0)
    c_idx = lax.broadcasted_iota(jnp.int32, (Sa, Sa), 1)
    IDN = (r_idx == c_idx).astype(f32)
    UPPER = (c_idx > r_idx).astype(f32)
    LOWER = (c_idx < r_idx).astype(f32)
    CUM_F = (r_idx <= c_idx).astype(f32)         # (x @ CUM_F)[i,j] = sum_{k<=j} x[i,k]
    CUM_R = (r_idx >= c_idx).astype(f32)         # (x @ CUM_R)[i,j] = sum_{k>=j} x[i,k]
    SH_R = (c_idx == r_idx + 1).astype(f32)      # (x @ SH_R)[i,j] = x[i, j-1]
    SH_L = (r_idx == c_idx + 1).astype(f32)      # (x @ SH_L)[i,j] = x[i, j+1]
    col_iota = lax.broadcasted_iota(jnp.int32, (1, Sa), 1)
    first_col = (col_iota == 0).astype(f32)
    last_col = (col_iota == Sa - 1).astype(f32)

    def mm(a, bb):
        return jnp.dot(a, bb, preferred_element_type=f32)

    # ---- initial transform: LN1(Linear(seq * mask)) * mask ----
    seq0 = seq_ref[...] * im_col
    seq0 = _layer_norm(mm(seq0, w_init_ref[...]) + b_init_ref[...],
                       ln1g_ref[...], ln1b_ref[...])
    o_seq_ref[...] = seq0 * im_col              # sequence state lives in the output block

    ep_s[...] = im_col                          # exist_probs = ones * input_mask
    um_s[...] = jnp.ones((1, 1), f32)           # update_mask

    U = Sa - 2

    @pl.loop(0, U)
    def _step(t):
        # Steps with t >= mlen-1 are provably no-ops under the reference
        # update_mask rule -> skip them (purely scalar condition, SMEM driven).
        @pl.when(t < mlen - 1)
        def _active():
            seq = o_seq_ref[...]                # (Sa, D)
            ep = ep_s[...]                      # (Sa, 1)
            um = um_s[...]                      # (1, 1)

            # exist_probs column -> row (single masked cross-sublane reduce)
            ep_row = jnp.sum(IDN * ep, axis=0, keepdims=True)   # (1, Sa)
            w = ep_row * im_row                                  # (1, Sa)

            # right neighbor probabilities
            wU = w * UPPER
            cumR = mm(wU, CUM_F)
            remR = jnp.maximum(mm(1.0 - cumR, SH_R) + first_col, 0.0)
            right_np = jnp.where(cumR > 1.0, remR, wU) * im_row
            # left neighbor probabilities (mirrored construction; identical to
            # flip(right(flipped inputs)) of the reference, without any flips)
            wL = w * LOWER
            cumL = mm(wL, CUM_R)
            remL = jnp.maximum(mm(1.0 - cumL, SH_L) + last_col, 0.0)
            left_np = jnp.where(cumL > 1.0, remL, wL) * im_row

            # window children
            lc1 = mm(left_np, seq)
            lc2 = mm(left_np, lc1)
            rc1 = mm(right_np, seq)
            rc2 = mm(right_np, rc1)

            # score_fn: fused window matmul + gelu + scorer
            window = jnp.concatenate([lc2, lc1, seq, rc1, rc2], axis=-1)   # (Sa, 5D)
            h = _gelu(mm(window, w_conv_ref[...]) + b_conv_ref[...])
            trans = jnp.sum(h * w_sc_ref[...], axis=-1, keepdims=True) + b_sc_ref[...]
            max_score = jnp.maximum(jnp.max(trans), 0.0)     # per-batch max over [scores, 0]
            exp_compose = jnp.exp(trans - max_score) * selm
            exp_noop = jnp.exp(-max_score)

            exp_left = mm(left_np, exp_compose)
            exp_right = mm(right_np, exp_compose)
            denom = exp_compose + exp_noop + exp_left + exp_right + 4.0 * EPS
            compose_scores = (exp_compose / denom) * selm

            # compose(child1 = L@seq, child2 = seq); wcell1 input = lanes [D:3D) of window
            inter = _gelu(mm(window[:, D:3 * D], w1_ref[...]) + b1_ref[...])
            # TODO(synk): F.dropout on `inter` omitted (deterministic inference / p == 0).
            contents = mm(inter, w2_ref[...]) + b2_ref[...]                 # (Sa, 4D)
            f1 = jax.nn.sigmoid(contents[:, 0:D])
            f2 = jax.nn.sigmoid(contents[:, D:2 * D])
            ig = jax.nn.sigmoid(contents[:, 2 * D:3 * D])
            parent = contents[:, 3 * D:4 * D]
            compositions = _layer_norm(f1 * lc1 + f2 * seq + ig * parent,
                                       ln2g_ref[...], ln2b_ref[...])

            # update
            lcs = mm(left_np, compose_scores)                   # (Sa, 1)
            new_seq = (lcs * compositions + (1.0 - lcs) * seq) * im_col
            new_ep = ep * (1.0 - compose_scores) * im_col

            upd = um > 0.5
            new_seq = jnp.where(upd, new_seq, seq)
            new_ep = jnp.where(upd, new_ep, ep)

            # dynamic-halt bookkeeping.  The (mlen-2 < t) clause of the
            # reference update_mask is omitted: any um value it would zero is
            # only ever read at a step that the pl.when gate above already
            # skips, so dropping it is exactly equivalent.
            discrete = jnp.where(new_ep > STOP_THRESHOLD, 1.0, 0.0)
            halt = jnp.sum(discrete, axis=0, keepdims=True) - 2.0           # (1,1)
            new_um = jnp.where(halt <= 1.0, 0.0, 1.0)

            o_seq_ref[...] = new_seq
            ep_s[...] = new_ep
            um_s[...] = new_um

    seq_fin = o_seq_ref[...]
    o_gs_ref[...] = jnp.sum(seq_fin * last_ref[...], axis=0, keepdims=True)  # (1, D)


def init_params(key, D):
    def linear(k, fan_in, fan_out):
        kw, kb = jax.random.split(k)
        bound = 1.0 / math.sqrt(fan_in)
        w = jax.random.uniform(kw, (fan_out, fan_in), jnp.float32, -bound, bound)
        b = jax.random.uniform(kb, (fan_out,), jnp.float32, -bound, bound)
        return w, b

    ks = jax.random.split(key, 7)
    p = {}
    p['START'] = jax.random.normal(ks[0], (D,), jnp.float32)
    p['END'] = jax.random.normal(ks[1], (D,), jnp.float32)
    p['conv_w'], p['conv_b'] = linear(ks[2], WINDOW * D, D)      # Linear(5D, D)
    p['scorer_w'], p['scorer_b'] = linear(ks[3], D, 1)           # Linear(D, 1)
    p['init_w'], p['init_b'] = linear(ks[4], D, D)               # Linear(D, D)
    p['wcell1_w'], p['wcell1_b'] = linear(ks[5], 2 * D, 4 * D)   # Linear(2D, 4D)
    p['wcell2_w'], p['wcell2_b'] = linear(ks[6], 4 * D, 4 * D)   # Linear(4D, 4D)
    p['ln1_g'] = jnp.ones((D,), jnp.float32)
    p['ln1_b'] = jnp.zeros((D,), jnp.float32)
    p['ln2_g'] = jnp.ones((D,), jnp.float32)
    p['ln2_b'] = jnp.zeros((D,), jnp.float32)
    return p


def crvnn_forward(params, sequence, input_mask):
    sequence = sequence.astype(jnp.float32)
    input_mask = input_mask.astype(jnp.float32)
    N, S, D = sequence.shape
    Sa = S + 2

    im = input_mask[:, :, None]
    seq = sequence * im

    # ---- augment_sequence (glue) ----
    ones1 = jnp.ones((N, 1, 1), jnp.float32)
    zeros1 = jnp.zeros((N, 1, 1), jnp.float32)
    start_tok = jnp.broadcast_to(params['START'][None, None, :], (N, 1, D))
    seq = jnp.concatenate([start_tok, seq], axis=1)                      # (N,S+1,D)
    im1 = jnp.concatenate([ones1, im], axis=1)                           # (N,S+1,1)
    im_no_end = jnp.concatenate([im1, zeros1], axis=1)                   # (N,Sa,1)
    im_yes_end = jnp.concatenate([ones1, im1], axis=1)                   # (N,Sa,1)
    end_mask = im_yes_end - im_no_end
    end_tok = jnp.broadcast_to(params['END'][None, None, :], (N, Sa, D))
    seq = jnp.concatenate([seq, jnp.zeros((N, 1, D), jnp.float32)], axis=1)
    seq_aug = end_mask * end_tok + (1.0 - end_mask) * seq
    im_a = im_yes_end
    im_no_start = jnp.concatenate([zeros1, im_a[:, 1:, :]], axis=1)
    last_mask = jnp.concatenate([end_mask[:, 1:, :], zeros1], axis=1)
    selm = im_no_start * im_no_end * (1.0 - last_mask)
    mlen = jnp.sum(im_a, axis=(1, 2)).astype(jnp.int32)                  # (N,)
    im_row = jnp.swapaxes(im_a, 1, 2)                                    # (N,1,Sa)

    # ---- weights as plain 2-D tensors (no batch replication) ----
    row = lambda v: v.reshape(1, -1)
    w_init = params['init_w'].T                                          # (D, D)
    w_conv = params['conv_w'].T                                          # (5D, D)
    w1 = params['wcell1_w'].T                                            # (2D, 4D)
    w2 = params['wcell2_w'].T                                            # (4D, 4D)

    operands = [
        seq_aug, im_a, im_row, selm, last_mask,
        w_init, row(params['init_b']), row(params['ln1_g']), row(params['ln1_b']),
        w_conv, row(params['conv_b']),
        params['scorer_w'].reshape(1, D), params['scorer_b'].reshape(1, 1),
        w1, row(params['wcell1_b']),
        w2, row(params['wcell2_b']),
        row(params['ln2_g']), row(params['ln2_b']),
    ]

    batch3 = lambda shp: pl.BlockSpec((None,) + shp, lambda b, m: (b, 0, 0))
    full2 = lambda shp: pl.BlockSpec(shp, lambda b, m: (0, 0))

    in_specs = [
        batch3((Sa, D)),              # seq_aug
        batch3((Sa, 1)),              # input mask (column)
        batch3((1, Sa)),              # input mask (row)
        batch3((Sa, 1)),              # start_end_last_mask
        batch3((Sa, 1)),              # last_mask
        full2((D, D)), full2((1, D)), full2((1, D)), full2((1, D)),
        full2((WINDOW * D, D)), full2((1, D)),
        full2((1, D)), full2((1, 1)),
        full2((2 * D, 4 * D)), full2((1, 4 * D)),
        full2((4 * D, 4 * D)), full2((1, 4 * D)),
        full2((1, D)), full2((1, D)),
    ]
    out_specs = [
        pl.BlockSpec((None, Sa, D), lambda b, m: (b, 0, 0)),
        pl.BlockSpec((None, 1, D), lambda b, m: (b, 0, 0)),
    ]

    grid_spec = pltpu.PrefetchScalarGridSpec(
        num_scalar_prefetch=1,
        grid=(N,),
        in_specs=in_specs,
        out_specs=out_specs,
        scratch_shapes=[
            pltpu.VMEM((Sa, 1), jnp.float32),   # exist_probs state
            pltpu.VMEM((1, 1), jnp.float32),    # update_mask state
        ],
    )

    seq_full, gs = pl.pallas_call(
        _crvnn_kernel,
        grid_spec=grid_spec,
        out_shape=(jax.ShapeDtypeStruct((N, Sa, D), jnp.float32),
                   jax.ShapeDtypeStruct((N, 1, D), jnp.float32)),
        compiler_params=pltpu.CompilerParams(
            dimension_semantics=("parallel",)),
    )(mlen, *operands)

    global_state = gs[:, 0, :]

    # ---- strip START / END tokens (glue) ----
    seq_out = seq_full * (1.0 - end_mask)
    seq_out = seq_out[:, 1:-1, :]
    mask_out = im_a * (1.0 - end_mask)
    mask_out = mask_out[:, 1:-1, :]
    seq_out = seq_out * mask_out          # final `sequence * input_mask` in forward()
    return {'sequence': seq_out, 'global_state': global_state,
            'input_mask': mask_out, 'aux_loss': None}


if __name__ == "__main__":
    key = jax.random.PRNGKey(0)
    k_param, k_seq = jax.random.split(key)
    N, S, D = 2, 8, 128                   # config: hidden_size=128, dropout=0.0
    params = init_params(k_param, D)
    sequence = jax.random.normal(k_seq, (N, S, D), jnp.float32)
    input_mask = jnp.array([[1.0] * 8,
                            [1.0] * 5 + [0.0] * 3], dtype=jnp.float32)

    out = crvnn_forward(params, sequence, input_mask)
    jax.block_until_ready(out)

    assert out['sequence'].shape == (N, S, D)
    assert out['global_state'].shape == (N, D)
    assert out['input_mask'].shape == (N, S, 1)
    assert bool(jnp.all(jnp.isfinite(out['sequence'])))
    assert bool(jnp.all(jnp.isfinite(out['global_state'])))
    print("KERNEL_OK")
</pallas_src>

<mosaic_0001>
module attributes {stable_mosaic.version = 11 : i64} {
  func.func @_crvnn_kernel(%arg0: i32, %arg1: memref<2xi32, #tpu.memory_space<smem>>, %arg2: memref<1x10x128xf32, #tpu.memory_space<vmem>>, %arg3: memref<1x10x1xf32, #tpu.memory_space<vmem>>, %arg4: memref<1x1x10xf32, #tpu.memory_space<vmem>>, %arg5: memref<1x10x1xf32, #tpu.memory_space<vmem>>, %arg6: memref<1x10x1xf32, #tpu.memory_space<vmem>>, %arg7: memref<128x128xf32, #tpu.memory_space<vmem>>, %arg8: memref<1x128xf32, #tpu.memory_space<vmem>>, %arg9: memref<1x128xf32, #tpu.memory_space<vmem>>, %arg10: memref<1x128xf32, #tpu.memory_space<vmem>>, %arg11: memref<640x128xf32, #tpu.memory_space<vmem>>, %arg12: memref<1x128xf32, #tpu.memory_space<vmem>>, %arg13: memref<1x128xf32, #tpu.memory_space<vmem>>, %arg14: memref<1x1xf32, #tpu.memory_space<vmem>>, %arg15: memref<256x512xf32, #tpu.memory_space<vmem>>, %arg16: memref<1x512xf32, #tpu.memory_space<vmem>>, %arg17: memref<512x512xf32, #tpu.memory_space<vmem>>, %arg18: memref<1x512xf32, #tpu.memory_space<vmem>>, %arg19: memref<1x128xf32, #tpu.memory_space<vmem>>, %arg20: memref<1x128xf32, #tpu.memory_space<vmem>>, %arg21: memref<1x10x128xf32, #tpu.memory_space<vmem>>, %arg22: memref<1x1x128xf32, #tpu.memory_space<vmem>>, %arg23: memref<10x1xf32, #tpu.memory_space<vmem>>, %arg24: memref<1x1xf32, #tpu.memory_space<vmem>>) attributes {dimension_semantics = [#tpu.dimension_semantics<parallel>], iteration_bounds = array<i64: 2>, scalar_prefetch = 1 : i64, scratch_operands = 2 : i64, tpu.core_type = #tpu.core_type<tc>, window_params = [{transform_indices = @transform_0, window_bounds = array<i64: 1, 10, 128>}, {transform_indices = @transform_1, window_bounds = array<i64: 1, 10, 1>}, {transform_indices = @transform_2, window_bounds = array<i64: 1, 1, 10>}, {transform_indices = @transform_3, window_bounds = array<i64: 1, 10, 1>}, {transform_indices = @transform_4, window_bounds = array<i64: 1, 10, 1>}, {pipeline_mode = #tpu.pipeline_mode<synchronous>, transform_indices = @transform_5, window_bounds = array<i64: 128, 128>}, {pipeline_mode = #tpu.pipeline_mode<synchronous>, transform_indices = @transform_6, window_bounds = array<i64: 1, 128>}, {pipeline_mode = #tpu.pipeline_mode<synchronous>, transform_indices = @transform_7, window_bounds = array<i64: 1, 128>}, {pipeline_mode = #tpu.pipeline_mode<synchronous>, transform_indices = @transform_8, window_bounds = array<i64: 1, 128>}, {pipeline_mode = #tpu.pipeline_mode<synchronous>, transform_indices = @transform_9, window_bounds = array<i64: 640, 128>}, {pipeline_mode = #tpu.pipeline_mode<synchronous>, transform_indices = @transform_10, window_bounds = array<i64: 1, 128>}, {pipeline_mode = #tpu.pipeline_mode<synchronous>, transform_indices = @transform_11, window_bounds = array<i64: 1, 128>}, {pipeline_mode = #tpu.pipeline_mode<synchronous>, transform_indices = @transform_12, window_bounds = array<i64: 1, 1>}, {pipeline_mode = #tpu.pipeline_mode<synchronous>, transform_indices = @transform_13, window_bounds = array<i64: 256, 512>}, {pipeline_mode = #tpu.pipeline_mode<synchronous>, transform_indices = @transform_14, window_bounds = array<i64: 1, 512>}, {pipeline_mode = #tpu.pipeline_mode<synchronous>, transform_indices = @transform_15, window_bounds = array<i64: 512, 512>}, {pipeline_mode = #tpu.pipeline_mode<synchronous>, transform_indices = @transform_16, window_bounds = array<i64: 1, 512>}, {pipeline_mode = #tpu.pipeline_mode<synchronous>, transform_indices = @transform_17, window_bounds = array<i64: 1, 128>}, {pipeline_mode = #tpu.pipeline_mode<synchronous>, transform_indices = @transform_18, window_bounds = array<i64: 1, 128>}, {transform_indices = @transform_19, window_bounds = array<i64: 1, 10, 128>}, {transform_indices = @transform_20, window_bounds = array<i64: 1, 1, 128>}]} {
    %0 = arith.index_cast %arg0 : i32 to index
    %1 = memref.load %arg1[%0] : memref<2xi32, #tpu.memory_space<smem>>
    %c0 = arith.constant 0 : index
    %c0_0 = arith.constant 0 : index
    %c0_1 = arith.constant 0 : index
    %2 = vector.load %arg3[%c0, %c0_0, %c0_1] : memref<1x10x1xf32, #tpu.memory_space<vmem>>, vector<1x10x1xf32>
    %3 = vector.shape_cast %2 : vector<1x10x1xf32> to vector<10x1xf32>
    %c0_2 = arith.constant 0 : index
    %c0_3 = arith.constant 0 : index
    %c0_4 = arith.constant 0 : index
    %4 = vector.load %arg4[%c0_2, %c0_3, %c0_4] : memref<1x1x10xf32, #tpu.memory_space<vmem>>, vector<1x1x10xf32>
    %5 = vector.shape_cast %4 : vector<1x1x10xf32> to vector<1x10xf32>
    %c0_5 = arith.constant 0 : index
    %c0_6 = arith.constant 0 : index
    %c0_7 = arith.constant 0 : index
    %6 = vector.load %arg5[%c0_5, %c0_6, %c0_7] : memref<1x10x1xf32, #tpu.memory_space<vmem>>, vector<1x10x1xf32>
    %7 = vector.shape_cast %6 : vector<1x10x1xf32> to vector<10x1xf32>
    %8 = tpu.iota {dimensions = array<i32: 0>} : vector<10x10xi32>
    %9 = tpu.iota {dimensions = array<i32: 1>} : vector<10x10xi32>
    %10 = arith.cmpi eq, %8, %9 : vector<10x10xi32>
    %11 = arith.extui %10 : vector<10x10xi1> to vector<10x10xi32>
    %12 = arith.sitofp %11 : vector<10x10xi32> to vector<10x10xf32>
    %13 = arith.cmpi sgt, %9, %8 : vector<10x10xi32>
    %14 = arith.extui %13 : vector<10x10xi1> to vector<10x10xi32>
    %15 = arith.sitofp %14 : vector<10x10xi32> to vector<10x10xf32>
    %16 = arith.cmpi slt, %9, %8 : vector<10x10xi32>
    %17 = arith.extui %16 : vector<10x10xi1> to vector<10x10xi32>
    %18 = arith.sitofp %17 : vector<10x10xi32> to vector<10x10xf32>
    %19 = arith.cmpi sle, %8, %9 : vector<10x10xi32>
    %20 = arith.extui %19 : vector<10x10xi1> to vector<10x10xi32>
    %21 = arith.sitofp %20 : vector<10x10xi32> to vector<10x10xf32>
    %22 = arith.cmpi sge, %8, %9 : vector<10x10xi32>
    %23 = arith.extui %22 : vector<10x10xi1> to vector<10x10xi32>
    %24 = arith.sitofp %23 : vector<10x10xi32> to vector<10x10xf32>
    %c1_i32 = arith.constant 1 : i32
    %25 = vector.broadcast %c1_i32 : i32 to vector<10x10xi32>
    %26 = arith.addi %8, %25 : vector<10x10xi32>
    %27 = arith.cmpi eq, %9, %26 : vector<10x10xi32>
    %28 = arith.extui %27 : vector<10x10xi1> to vector<10x10xi32>
    %29 = arith.sitofp %28 : vector<10x10xi32> to vector<10x10xf32>
    %c1_i32_8 = arith.constant 1 : i32
    %30 = vector.broadcast %c1_i32_8 : i32 to vector<10x10xi32>
    %31 = arith.addi %9, %30 : vector<10x10xi32>
    %32 = arith.cmpi eq, %8, %31 : vector<10x10xi32>
    %33 = arith.extui %32 : vector<10x10xi1> to vector<10x10xi32>
    %34 = arith.sitofp %33 : vector<10x10xi32> to vector<10x10xf32>
    %35 = tpu.iota {dimensions = array<i32: 1>} : vector<1x10xi32>
    %c0_i32 = arith.constant 0 : i32
    %36 = vector.broadcast %c0_i32 : i32 to vector<1x10xi32>
    %37 = arith.cmpi eq, %35, %36 : vector<1x10xi32>
    %38 = arith.extui %37 : vector<1x10xi1> to vector<1x10xi32>
    %39 = arith.sitofp %38 : vector<1x10xi32> to vector<1x10xf32>
    %c9_i32 = arith.constant 9 : i32
    %40 = vector.broadcast %c9_i32 : i32 to vector<1x10xi32>
    %41 = arith.cmpi eq, %35, %40 : vector<1x10xi32>
    %42 = arith.extui %41 : vector<1x10xi1> to vector<1x10xi32>
    %43 = arith.sitofp %42 : vector<1x10xi32> to vector<1x10xf32>
    %c0_9 = arith.constant 0 : index
    %c0_10 = arith.constant 0 : index
    %c0_11 = arith.constant 0 : index
    %44 = vector.load %arg2[%c0_9, %c0_10, %c0_11] : memref<1x10x128xf32, #tpu.memory_space<vmem>>, vector<1x10x128xf32>
    %45 = vector.shape_cast %44 : vector<1x10x128xf32> to vector<10x128xf32>
    %46 = vector.broadcast %3 : vector<10x1xf32> to vector<10x128xf32>
    %47 = arith.mulf %45, %46 : vector<10x128xf32>
    %c0_12 = arith.constant 0 : index
    %c0_13 = arith.constant 0 : index
    %48 = vector.load %arg7[%c0_12, %c0_13] : memref<128x128xf32, #tpu.memory_space<vmem>>, vector<128x128xf32>
    %cst = arith.constant dense<0.000000e+00> : vector<10x128xf32>
    %49 = tpu.matmul %47, %48, %cst {dimension_numbers = #tpu.dot_dimension_numbers<[1], [0], [0], [1], [0, 0, 1, 1], [], []>} : vector<10x128xf32>, vector<128x128xf32>, vector<10x128xf32> -> vector<10x128xf32>
    %c0_14 = arith.constant 0 : index
    %c0_15 = arith.constant 0 : index
    %50 = vector.load %arg8[%c0_14, %c0_15] : memref<1x128xf32, #tpu.memory_space<vmem>>, vector<1x128xf32>
    %51 = vector.broadcast %50 : vector<1x128xf32> to vector<10x128xf32>
    %52 = arith.addf %49, %51 : vector<10x128xf32>
    %c0_16 = arith.constant 0 : index
    %c0_17 = arith.constant 0 : index
    %53 = vector.load %arg9[%c0_16, %c0_17] : memref<1x128xf32, #tpu.memory_space<vmem>>, vector<1x128xf32>
    %c0_18 = arith.constant 0 : index
    %c0_19 = arith.constant 0 : index
    %54 = vector.load %arg10[%c0_18, %c0_19] : memref<1x128xf32, #tpu.memory_space<vmem>>, vector<1x128xf32>
    %cst_20 = arith.constant dense<0.000000e+00> : vector<10xf32>
    %55 = vector.multi_reduction <add>, %52, %cst_20 [1] : vector<10x128xf32> to vector<10xf32>
    %56 = vector.shape_cast %55 : vector<10xf32> to vector<10x1xf32>
    %cst_21 = arith.constant 1.280000e+02 : f32
    %57 = vector.broadcast %cst_21 : f32 to vector<10x1xf32>
    %58 = arith.divf %56, %57 : vector<10x1xf32>
    %59 = vector.broadcast %58 : vector<10x1xf32> to vector<10x128xf32>
    %60 = arith.subf %52, %59 : vector<10x128xf32>
    %61 = arith.mulf %60, %60 : vector<10x128xf32>
    %cst_22 = arith.constant dense<0.000000e+00> : vector<10xf32>
    %62 = vector.multi_reduction <add>, %61, %cst_22 [1] : vector<10x128xf32> to vector<10xf32>
    %63 = vector.shape_cast %62 : vector<10xf32> to vector<10x1xf32>
    %cst_23 = arith.constant 1.280000e+02 : f32
    %64 = vector.broadcast %cst_23 : f32 to vector<10x1xf32>
    %65 = arith.divf %63, %64 : vector<10x1xf32>
    %66 = vector.broadcast %58 : vector<10x1xf32> to vector<10x128xf32>
    %67 = arith.subf %52, %66 : vector<10x128xf32>
    %cst_24 = arith.constant 9.99999974E-6 : f32
    %68 = vector.broadcast %cst_24 : f32 to vector<10x1xf32>
    %69 = arith.addf %65, %68 : vector<10x1xf32>
    %70 = math.rsqrt %69 : vector<10x1xf32>
    %71 = vector.broadcast %70 : vector<10x1xf32> to vector<10x128xf32>
    %72 = arith.mulf %67, %71 : vector<10x128xf32>
    %73 = vector.broadcast %53 : vector<1x128xf32> to vector<10x128xf32>
    %74 = arith.mulf %72, %73 : vector<10x128xf32>
    %75 = vector.broadcast %54 : vector<1x128xf32> to vector<10x128xf32>
    %76 = arith.addf %74, %75 : vector<10x128xf32>
    %77 = vector.broadcast %3 : vector<10x1xf32> to vector<10x128xf32>
    %78 = arith.mulf %76, %77 : vector<10x128xf32>
    %c0_25 = arith.constant 0 : index
    %c0_26 = arith.constant 0 : index
    %c0_27 = arith.constant 0 : index
    %79 = vector.load %arg21[%c0_25, %c0_26, %c0_27] : memref<1x10x128xf32, #tpu.memory_space<vmem>>, vector<1x10x128xf32>
    %80 = vector.shape_cast %79 : vector<1x10x128xf32> to vector<10x128xf32>
    %81 = vector.shape_cast %78 : vector<10x128xf32> to vector<1x10x128xf32>
    tpu.vector_store %arg21[%c0_25, %c0_26, %c0_27], %81 {strides = array<i32>} : memref<1x10x128xf32, #tpu.memory_space<vmem>>, vector<1x10x128xf32>,
    %c0_28 = arith.constant 0 : index
    %c0_29 = arith.constant 0 : index
    %82 = vector.load %arg23[%c0_28, %c0_29] : memref<10x1xf32, #tpu.memory_space<vmem>>, vector<10x1xf32>
    tpu.vector_store %arg23[%c0_28, %c0_29], %3 {strides = array<i32>} : memref<10x1xf32, #tpu.memory_space<vmem>>, vector<10x1xf32>,
    %cst_30 = arith.constant 1.000000e+00 : f32
    %83 = vector.broadcast %cst_30 : f32 to vector<1x1xf32>
    %c0_31 = arith.constant 0 : index
    %c0_32 = arith.constant 0 : index
    %84 = vector.load %arg24[%c0_31, %c0_32] : memref<1x1xf32, #tpu.memory_space<vmem>>, vector<1x1xf32>
    tpu.vector_store %arg24[%c0_31, %c0_32], %83 {strides = array<i32>} : memref<1x1xf32, #tpu.memory_space<vmem>>, vector<1x1xf32>,
    %c0_i32_33 = arith.constant 0 : i32
    %c8_i32 = arith.constant 8 : i32
    %85 = arith.addi %c0_i32_33, %c8_i32 : i32
    %c1_i32_34 = arith.constant 1 : i32
    scf.for %arg25 = %c0_i32_33 to %85 step %c1_i32_34  : i32 {
      %c1_i32_46 = arith.constant 1 : i32
      %97 = arith.muli %arg25, %c1_i32_46 : i32
      %c0_i32_47 = arith.constant 0 : i32
      %98 = arith.addi %c0_i32_47, %97 : i32
      %c1_i32_48 = arith.constant 1 : i32
      %99 = arith.subi %1, %c1_i32_48 : i32
      %100 = arith.cmpi slt, %98, %99 : i32
      %101 = arith.extui %100 : i1 to i32
      %c0_i32_49 = arith.constant 0 : i32
      %102 = arith.cmpi ne, %101, %c0_i32_49 : i32
      scf.if %102 {
        %c0_50 = arith.constant 0 : index
        %c0_51 = arith.constant 0 : index
        %c0_52 = arith.constant 0 : index
        %103 = vector.load %arg21[%c0_50, %c0_51, %c0_52] : memref<1x10x128xf32, #tpu.memory_space<vmem>>, vector<1x10x128xf32>
        %104 = vector.shape_cast %103 : vector<1x10x128xf32> to vector<10x128xf32>
        %c0_53 = arith.constant 0 : index
        %c0_54 = arith.constant 0 : index
        %105 = vector.load %arg23[%c0_53, %c0_54] : memref<10x1xf32, #tpu.memory_space<vmem>>, vector<10x1xf32>
        %c0_55 = arith.constant 0 : index
        %c0_56 = arith.constant 0 : index
        %106 = vector.load %arg24[%c0_55, %c0_56] : memref<1x1xf32, #tpu.memory_space<vmem>>, vector<1x1xf32>
        %107 = vector.broadcast %105 : vector<10x1xf32> to vector<10x10xf32>
        %108 = arith.mulf %12, %107 : vector<10x10xf32>
        %cst_57 = arith.constant dense<0.000000e+00> : vector<10xf32>
        %109 = vector.multi_reduction <add>, %108, %cst_57 [0] : vector<10x10xf32> to vector<10xf32>
        %110 = vector.shape_cast %109 : vector<10xf32> to vector<1x10xf32>
        %111 = arith.mulf %110, %5 : vector<1x10xf32>
        %112 = vector.broadcast %111 : vector<1x10xf32> to vector<10x10xf32>
        %113 = arith.mulf %112, %15 : vector<10x10xf32>
        %cst_58 = arith.constant dense<0.000000e+00> : vector<10x10xf32>
        %114 = tpu.matmul %113, %21, %cst_58 {dimension_numbers = #tpu.dot_dimension_numbers<[1], [0], [0], [1], [0, 0, 1, 1], [], []>} : vector<10x10xf32>, vector<10x10xf32>, vector<10x10xf32> -> vector<10x10xf32>
        %cst_59 = arith.constant 1.000000e+00 : f32
        %115 = vector.broadcast %cst_59 : f32 to vector<10x10xf32>
        %116 = arith.subf %115, %114 : vector<10x10xf32>
        %cst_60 = arith.constant dense<0.000000e+00> : vector<10x10xf32>
        %117 = tpu.matmul %116, %29, %cst_60 {dimension_numbers = #tpu.dot_dimension_numbers<[1], [0], [0], [1], [0, 0, 1, 1], [], []>} : vector<10x10xf32>, vector<10x10xf32>, vector<10x10xf32> -> vector<10x10xf32>
        %118 = vector.broadcast %39 : vector<1x10xf32> to vector<10x10xf32>
        %119 = arith.addf %117, %118 : vector<10x10xf32>
        %cst_61 = arith.constant 0.000000e+00 : f32
        %120 = vector.broadcast %cst_61 : f32 to vector<10x10xf32>
        %121 = arith.maximumf %119, %120 : vector<10x10xf32>
        %cst_62 = arith.constant 1.000000e+00 : f32
        %122 = vector.broadcast %cst_62 : f32 to vector<10x10xf32>
        %123 = arith.cmpf ogt, %114, %122 : vector<10x10xf32>
        %124 = arith.select %123, %121, %113 : vector<10x10xi1>, vector<10x10xf32>
        %125 = vector.broadcast %5 : vector<1x10xf32> to vector<10x10xf32>
        %126 = arith.mulf %124, %125 : vector<10x10xf32>
        %127 = vector.broadcast %111 : vector<1x10xf32> to vector<10x10xf32>
        %128 = arith.mulf %127, %18 : vector<10x10xf32>
        %cst_63 = arith.constant dense<0.000000e+00> : vector<10x10xf32>
        %129 = tpu.matmul %128, %24, %cst_63 {dimension_numbers = #tpu.dot_dimension_numbers<[1], [0], [0], [1], [0, 0, 1, 1], [], []>} : vector<10x10xf32>, vector<10x10xf32>, vector<10x10xf32> -> vector<10x10xf32>
        %cst_64 = arith.constant 1.000000e+00 : f32
        %130 = vector.broadcast %cst_64 : f32 to vector<10x10xf32>
        %131 = arith.subf %130, %129 : vector<10x10xf32>
        %cst_65 = arith.constant dense<0.000000e+00> : vector<10x10xf32>
        %132 = tpu.matmul %131, %34, %cst_65 {dimension_numbers = #tpu.dot_dimension_numbers<[1], [0], [0], [1], [0, 0, 1, 1], [], []>} : vector<10x10xf32>, vector<10x10xf32>, vector<10x10xf32> -> vector<10x10xf32>
        %133 = vector.broadcast %43 : vector<1x10xf32> to vector<10x10xf32>
        %134 = arith.addf %132, %133 : vector<10x10xf32>
        %cst_66 = arith.constant 0.000000e+00 : f32
        %135 = vector.broadcast %cst_66 : f32 to vector<10x10xf32>
        %136 = arith.maximumf %134, %135 : vector<10x10xf32>
        %cst_67 = arith.constant 1.000000e+00 : f32
        %137 = vector.broadcast %cst_67 : f32 to vector<10x10xf32>
        %138 = arith.cmpf ogt, %129, %137 : vector<10x10xf32>
        %139 = arith.select %138, %136, %128 : vector<10x10xi1>, vector<10x10xf32>
        %140 = vector.broadcast %5 : vector<1x10xf32> to vector<10x10xf32>
        %141 = arith.mulf %139, %140 : vector<10x10xf32>
        %cst_68 = arith.constant dense<0.000000e+00> : vector<10x128xf32>
        %142 = tpu.matmul %141, %104, %cst_68 {dimension_numbers = #tpu.dot_dimension_numbers<[1], [0], [0], [1], [0, 0, 1, 1], [], []>} : vector<10x10xf32>, vector<10x128xf32>, vector<10x128xf32> -> vector<10x128xf32>
        %cst_69 = arith.constant dense<0.000000e+00> : vector<10x128xf32>
        %143 = tpu.matmul %141, %142, %cst_69 {dimension_numbers = #tpu.dot_dimension_numbers<[1], [0], [0], [1], [0, 0, 1, 1], [], []>} : vector<10x10xf32>, vector<10x128xf32>, vector<10x128xf32> -> vector<10x128xf32>
        %cst_70 = arith.constant dense<0.000000e+00> : vector<10x128xf32>
        %144 = tpu.matmul %126, %104, %cst_70 {dimension_numbers = #tpu.dot_dimension_numbers<[1], [0], [0], [1], [0, 0, 1, 1], [], []>} : vector<10x10xf32>, vector<10x128xf32>, vector<10x128xf32> -> vector<10x128xf32>
        %cst_71 = arith.constant dense<0.000000e+00> : vector<10x128xf32>
        %145 = tpu.matmul %126, %144, %cst_71 {dimension_numbers = #tpu.dot_dimension_numbers<[1], [0], [0], [1], [0, 0, 1, 1], [], []>} : vector<10x10xf32>, vector<10x128xf32>, vector<10x128xf32> -> vector<10x128xf32>
        %146 = tpu.concatenate %143, %142, %104, %144, %145 in 1 : vector<10x128xf32>, vector<10x128xf32>, vector<10x128xf32>, vector<10x128xf32>, vector<10x128xf32> -> vector<10x640xf32>
        %c0_72 = arith.constant 0 : index
        %c0_73 = arith.constant 0 : index
        %147 = vector.load %arg11[%c0_72, %c0_73] : memref<640x128xf32, #tpu.memory_space<vmem>>, vector<640x128xf32>
        %cst_74 = arith.constant dense<0.000000e+00> : vector<10x128xf32>
        %148 = tpu.matmul %146, %147, %cst_74 {dimension_numbers = #tpu.dot_dimension_numbers<[1], [0], [0], [1], [0, 0, 1, 1], [], []>} : vector<10x640xf32>, vector<640x128xf32>, vector<10x128xf32> -> vector<10x128xf32>
        %c0_75 = arith.constant 0 : index
        %c0_76 = arith.constant 0 : index
        %149 = vector.load %arg12[%c0_75, %c0_76] : memref<1x128xf32, #tpu.memory_space<vmem>>, vector<1x128xf32>
        %150 = vector.broadcast %149 : vector<1x128xf32> to vector<10x128xf32>
        %151 = arith.addf %148, %150 : vector<10x128xf32>
        %cst_77 = arith.constant 5.000000e-01 : f32
        %152 = vector.broadcast %cst_77 : f32 to vector<10x128xf32>
        %153 = arith.mulf %152, %151 : vector<10x128xf32>
        %cst_78 = arith.constant 0.707106769 : f32
        %154 = vector.broadcast %cst_78 : f32 to vector<10x128xf32>
        %155 = arith.mulf %151, %154 : vector<10x128xf32>
        %cst_79 = arith.constant 0.000000e+00 : f32
        %156 = vector.broadcast %cst_79 : f32 to vector<10x128xf32>
        %157 = arith.cmpf oge, %155, %156 : vector<10x128xf32>
        %cst_80 = arith.constant 1.000000e+00 : f32
        %cst_81 = arith.constant -1.000000e+00 : f32
        %158 = vector.broadcast %cst_80 : f32 to vector<10x128xf32>
        %159 = vector.broadcast %cst_81 : f32 to vector<10x128xf32>
        %160 = arith.select %157, %158, %159 : vector<10x128xi1>, vector<10x128xf32>
        %161 = math.absf %155 : vector<10x128xf32>
        %cst_82 = arith.constant 0.327591091 : f32
        %162 = vector.broadcast %cst_82 : f32 to vector<10x128xf32>
        %163 = arith.mulf %162, %161 : vector<10x128xf32>
        %cst_83 = arith.constant 1.000000e+00 : f32
        %164 = vector.broadcast %cst_83 : f32 to vector<10x128xf32>
        %165 = arith.addf %164, %163 : vector<10x128xf32>
        %cst_84 = arith.constant 1.000000e+00 : f32
        %166 = vector.broadcast %cst_84 : f32 to vector<10x128xf32>
        %167 = arith.divf %166, %165 : vector<10x128xf32>
        %cst_85 = arith.constant 1.06140542 : f32
        %168 = vector.broadcast %cst_85 : f32 to vector<10x128xf32>
        %169 = arith.mulf %168, %167 : vector<10x128xf32>
        %cst_86 = arith.constant -1.45315206 : f32
        %170 = vector.broadcast %cst_86 : f32 to vector<10x128xf32>
        %171 = arith.addf %169, %170 : vector<10x128xf32>
        %172 = arith.mulf %171, %167 : vector<10x128xf32>
        %cst_87 = arith.constant 1.42141378 : f32
        %173 = vector.broadcast %cst_87 : f32 to vector<10x128xf32>
        %174 = arith.addf %172, %173 : vector<10x128xf32>
        %175 = arith.mulf %174, %167 : vector<10x128xf32>
        %cst_88 = arith.constant -0.284496725 : f32
        %176 = vector.broadcast %cst_88 : f32 to vector<10x128xf32>
        %177 = arith.addf %175, %176 : vector<10x128xf32>
        %178 = arith.mulf %177, %167 : vector<10x128xf32>
        %cst_89 = arith.constant 0.254829586 : f32
        %179 = vector.broadcast %cst_89 : f32 to vector<10x128xf32>
        %180 = arith.addf %178, %179 : vector<10x128xf32>
        %181 = arith.mulf %180, %167 : vector<10x128xf32>
        %cst_90 = arith.constant 0.000000e+00 : f32
        %182 = vector.broadcast %cst_90 : f32 to vector<10x128xf32>
        %183 = arith.subf %182, %161 : vector<10x128xf32>
        %184 = arith.mulf %183, %161 : vector<10x128xf32>
        %185 = math.exp %184 : vector<10x128xf32>
        %186 = arith.mulf %181, %185 : vector<10x128xf32>
        %cst_91 = arith.constant 1.000000e+00 : f32
        %187 = vector.broadcast %cst_91 : f32 to vector<10x128xf32>
        %188 = arith.subf %187, %186 : vector<10x128xf32>
        %189 = arith.mulf %160, %188 : vector<10x128xf32>
        %cst_92 = arith.constant 1.000000e+00 : f32
        %190 = vector.broadcast %cst_92 : f32 to vector<10x128xf32>
        %191 = arith.addf %190, %189 : vector<10x128xf32>
        %192 = arith.mulf %153, %191 : vector<10x128xf32>
        %c0_93 = arith.constant 0 : index
        %c0_94 = arith.constant 0 : index
        %193 = vector.load %arg13[%c0_93, %c0_94] : memref<1x128xf32, #tpu.memory_space<vmem>>, vector<1x128xf32>
        %194 = vector.broadcast %193 : vector<1x128xf32> to vector<10x128xf32>
        %195 = arith.mulf %192, %194 : vector<10x128xf32>
        %cst_95 = arith.constant dense<0.000000e+00> : vector<10xf32>
        %196 = vector.multi_reduction <add>, %195, %cst_95 [1] : vector<10x128xf32> to vector<10xf32>
        %197 = vector.shape_cast %196 : vector<10xf32> to vector<10x1xf32>
        %c0_96 = arith.constant 0 : index
        %c0_97 = arith.constant 0 : index
        %198 = vector.load %arg14[%c0_96, %c0_97] : memref<1x1xf32, #tpu.memory_space<vmem>>, vector<1x1xf32>
        %199 = vector.broadcast %198 : vector<1x1xf32> to vector<10x1xf32>
        %200 = arith.addf %197, %199 : vector<10x1xf32>
        %201 = vector.shape_cast %200 : vector<10x1xf32> to vector<1x10x1xf32>
        %cst_98 = arith.constant dense<0xFF800000> : vector<1xf32>
        %202 = vector.multi_reduction <maximumf>, %201, %cst_98 [1, 2] : vector<1x10x1xf32> to vector<1xf32>
        %203 = vector.shape_cast %202 : vector<1xf32> to vector<1x1x1xf32>
        %204 = vector.extract %203[0, 0, 0] : f32 from vector<1x1x1xf32>
        %cst_99 = arith.constant 0.000000e+00 : f32
        %205 = arith.maximumf %204, %cst_99 : f32
        %206 = vector.broadcast %205 : f32 to vector<10x1xf32>
        %207 = arith.subf %200, %206 : vector<10x1xf32>
        %208 = math.exp %207 : vector<10x1xf32>
        %209 = arith.mulf %208, %7 : vector<10x1xf32>
        %cst_100 = arith.constant 0.000000e+00 : f32
        %210 = arith.subf %cst_100, %205 : f32
        %211 = math.exp %210 : f32
        %cst_101 = arith.constant dense<0.000000e+00> : vector<10x1xf32>
        %212 = tpu.matmul %141, %209, %cst_101 {dimension_numbers = #tpu.dot_dimension_numbers<[1], [0], [0], [1], [0, 0, 1, 1], [], []>} : vector<10x10xf32>, vector<10x1xf32>, vector<10x1xf32> -> vector<10x1xf32>
        %cst_102 = arith.constant dense<0.000000e+00> : vector<10x1xf32>
        %213 = tpu.matmul %126, %209, %cst_102 {dimension_numbers = #tpu.dot_dimension_numbers<[1], [0], [0], [1], [0, 0, 1, 1], [], []>} : vector<10x10xf32>, vector<10x1xf32>, vector<10x1xf32> -> vector<10x1xf32>
        %214 = vector.broadcast %211 : f32 to vector<10x1xf32>
        %215 = arith.addf %209, %214 : vector<10x1xf32>
        %216 = arith.addf %215, %212 : vector<10x1xf32>
        %217 = arith.addf %216, %213 : vector<10x1xf32>
        %cst_103 = arith.constant 4.000000e-08 : f32
        %218 = vector.broadcast %cst_103 : f32 to vector<10x1xf32>
        %219 = arith.addf %217, %218 : vector<10x1xf32>
        %220 = arith.divf %209, %219 : vector<10x1xf32>
        %221 = arith.mulf %220, %7 : vector<10x1xf32>
        %222 = vector.extract_strided_slice %146 {offsets = [0, 128], sizes = [10, 256], strides = [1, 1]} : vector<10x640xf32> to vector<10x256xf32>
        %c0_104 = arith.constant 0 : index
        %c0_105 = arith.constant 0 : index
        %223 = vector.load %arg15[%c0_104, %c0_105] : memref<256x512xf32, #tpu.memory_space<vmem>>, vector<256x512xf32>
        %cst_106 = arith.constant dense<0.000000e+00> : vector<10x512xf32>
        %224 = tpu.matmul %222, %223, %cst_106 {dimension_numbers = #tpu.dot_dimension_numbers<[1], [0], [0], [1], [0, 0, 1, 1], [], []>} : vector<10x256xf32>, vector<256x512xf32>, vector<10x512xf32> -> vector<10x512xf32>
        %c0_107 = arith.constant 0 : index
        %c0_108 = arith.constant 0 : index
        %225 = vector.load %arg16[%c0_107, %c0_108] : memref<1x512xf32, #tpu.memory_space<vmem>>, vector<1x512xf32>
        %226 = vector.broadcast %225 : vector<1x512xf32> to vector<10x512xf32>
        %227 = arith.addf %224, %226 : vector<10x512xf32>
        %cst_109 = arith.constant 5.000000e-01 : f32
        %228 = vector.broadcast %cst_109 : f32 to vector<10x512xf32>
        %229 = arith.mulf %228, %227 : vector<10x512xf32>
        %cst_110 = arith.constant 0.707106769 : f32
        %230 = vector.broadcast %cst_110 : f32 to vector<10x512xf32>
        %231 = arith.mulf %227, %230 : vector<10x512xf32>
        %cst_111 = arith.constant 0.000000e+00 : f32
        %232 = vector.broadcast %cst_111 : f32 to vector<10x512xf32>
        %233 = arith.cmpf oge, %231, %232 : vector<10x512xf32>
        %cst_112 = arith.constant 1.000000e+00 : f32
        %cst_113 = arith.constant -1.000000e+00 : f32
        %234 = vector.broadcast %cst_112 : f32 to vector<10x512xf32>
        %235 = vector.broadcast %cst_113 : f32 to vector<10x512xf32>
        %236 = arith.select %233, %234, %235 : vector<10x512xi1>, vector<10x512xf32>
        %237 = math.absf %231 : vector<10x512xf32>
        %cst_114 = arith.constant 0.327591091 : f32
        %238 = vector.broadcast %cst_114 : f32 to vector<10x512xf32>
        %239 = arith.mulf %238, %237 : vector<10x512xf32>
        %cst_115 = arith.constant 1.000000e+00 : f32
        %240 = vector.broadcast %cst_115 : f32 to vector<10x512xf32>
        %241 = arith.addf %240, %239 : vector<10x512xf32>
        %cst_116 = arith.constant 1.000000e+00 : f32
        %242 = vector.broadcast %cst_116 : f32 to vector<10x512xf32>
        %243 = arith.divf %242, %241 : vector<10x512xf32>
        %cst_117 = arith.constant 1.06140542 : f32
        %244 = vector.broadcast %cst_117 : f32 to vector<10x512xf32>
        %245 = arith.mulf %244, %243 : vector<10x512xf32>
        %cst_118 = arith.constant -1.45315206 : f32
        %246 = vector.broadcast %cst_118 : f32 to vector<10x512xf32>
        %247 = arith.addf %245, %246 : vector<10x512xf32>
        %248 = arith.mulf %247, %243 : vector<10x512xf32>
        %cst_119 = arith.constant 1.42141378 : f32
        %249 = vector.broadcast %cst_119 : f32 to vector<10x512xf32>
        %250 = arith.addf %248, %249 : vector<10x512xf32>
        %251 = arith.mulf %250, %243 : vector<10x512xf32>
        %cst_120 = arith.constant -0.284496725 : f32
        %252 = vector.broadcast %cst_120 : f32 to vector<10x512xf32>
        %253 = arith.addf %251, %252 : vector<10x512xf32>
        %254 = arith.mulf %253, %243 : vector<10x512xf32>
        %cst_121 = arith.constant 0.254829586 : f32
        %255 = vector.broadcast %cst_121 : f32 to vector<10x512xf32>
        %256 = arith.addf %254, %255 : vector<10x512xf32>
        %257 = arith.mulf %256, %243 : vector<10x512xf32>
        %cst_122 = arith.constant 0.000000e+00 : f32
        %258 = vector.broadcast %cst_122 : f32 to vector<10x512xf32>
        %259 = arith.subf %258, %237 : vector<10x512xf32>
        %260 = arith.mulf %259, %237 : vector<10x512xf32>
        %261 = math.exp %260 : vector<10x512xf32>
        %262 = arith.mulf %257, %261 : vector<10x512xf32>
        %cst_123 = arith.constant 1.000000e+00 : f32
        %263 = vector.broadcast %cst_123 : f32 to vector<10x512xf32>
        %264 = arith.subf %263, %262 : vector<10x512xf32>
        %265 = arith.mulf %236, %264 : vector<10x512xf32>
        %cst_124 = arith.constant 1.000000e+00 : f32
        %266 = vector.broadcast %cst_124 : f32 to vector<10x512xf32>
        %267 = arith.addf %266, %265 : vector<10x512xf32>
        %268 = arith.mulf %229, %267 : vector<10x512xf32>
        %c0_125 = arith.constant 0 : index
        %c0_126 = arith.constant 0 : index
        %269 = vector.load %arg17[%c0_125, %c0_126] : memref<512x512xf32, #tpu.memory_space<vmem>>, vector<512x512xf32>
        %cst_127 = arith.constant dense<0.000000e+00> : vector<10x512xf32>
        %270 = tpu.matmul %268, %269, %cst_127 {dimension_numbers = #tpu.dot_dimension_numbers<[1], [0], [0], [1], [0, 0, 1, 1], [], []>} : vector<10x512xf32>, vector<512x512xf32>, vector<10x512xf32> -> vector<10x512xf32>
        %c0_128 = arith.constant 0 : index
        %c0_129 = arith.constant 0 : index
        %271 = vector.load %arg18[%c0_128, %c0_129] : memref<1x512xf32, #tpu.memory_space<vmem>>, vector<1x512xf32>
        %272 = vector.broadcast %271 : vector<1x512xf32> to vector<10x512xf32>
        %273 = arith.addf %270, %272 : vector<10x512xf32>
        %274 = vector.extract_strided_slice %273 {offsets = [0, 0], sizes = [10, 128], strides = [1, 1]} : vector<10x512xf32> to vector<10x128xf32>
        %275 = arith.negf %274 : vector<10x128xf32>
        %276 = math.exp %275 : vector<10x128xf32>
        %cst_130 = arith.constant 1.000000e+00 : f32
        %277 = vector.broadcast %cst_130 : f32 to vector<10x128xf32>
        %278 = arith.addf %277, %276 : vector<10x128xf32>
        %279 = arith.divf %277, %278 : vector<10x128xf32>
        %280 = vector.extract_strided_slice %273 {offsets = [0, 128], sizes = [10, 128], strides = [1, 1]} : vector<10x512xf32> to vector<10x128xf32>
        %281 = arith.negf %280 : vector<10x128xf32>
        %282 = math.exp %281 : vector<10x128xf32>
        %cst_131 = arith.constant 1.000000e+00 : f32
        %283 = vector.broadcast %cst_131 : f32 to vector<10x128xf32>
        %284 = arith.addf %283, %282 : vector<10x128xf32>
        %285 = arith.divf %283, %284 : vector<10x128xf32>
        %286 = vector.extract_strided_slice %273 {offsets = [0, 256], sizes = [10, 128], strides = [1, 1]} : vector<10x512xf32> to vector<10x128xf32>
        %287 = arith.negf %286 : vector<10x128xf32>
        %288 = math.exp %287 : vector<10x128xf32>
        %cst_132 = arith.constant 1.000000e+00 : f32
        %289 = vector.broadcast %cst_132 : f32 to vector<10x128xf32>
        %290 = arith.addf %289, %288 : vector<10x128xf32>
        %291 = arith.divf %289, %290 : vector<10x128xf32>
        %292 = vector.extract_strided_slice %273 {offsets = [0, 384], sizes = [10, 128], strides = [1, 1]} : vector<10x512xf32> to vector<10x128xf32>
        %293 = arith.mulf %279, %142 : vector<10x128xf32>
        %294 = arith.mulf %285, %104 : vector<10x128xf32>
        %295 = arith.addf %293, %294 : vector<10x128xf32>
        %296 = arith.mulf %291, %292 : vector<10x128xf32>
        %297 = arith.addf %295, %296 : vector<10x128xf32>
        %c0_133 = arith.constant 0 : index
        %c0_134 = arith.constant 0 : index
        %298 = vector.load %arg19[%c0_133, %c0_134] : memref<1x128xf32, #tpu.memory_space<vmem>>, vector<1x128xf32>
        %c0_135 = arith.constant 0 : index
        %c0_136 = arith.constant 0 : index
        %299 = vector.load %arg20[%c0_135, %c0_136] : memref<1x128xf32, #tpu.memory_space<vmem>>, vector<1x128xf32>
        %cst_137 = arith.constant dense<0.000000e+00> : vector<10xf32>
        %300 = vector.multi_reduction <add>, %297, %cst_137 [1] : vector<10x128xf32> to vector<10xf32>
        %301 = vector.shape_cast %300 : vector<10xf32> to vector<10x1xf32>
        %cst_138 = arith.constant 1.280000e+02 : f32
        %302 = vector.broadcast %cst_138 : f32 to vector<10x1xf32>
        %303 = arith.divf %301, %302 : vector<10x1xf32>
        %304 = vector.broadcast %303 : vector<10x1xf32> to vector<10x128xf32>
        %305 = arith.subf %297, %304 : vector<10x128xf32>
        %306 = arith.mulf %305, %305 : vector<10x128xf32>
        %cst_139 = arith.constant dense<0.000000e+00> : vector<10xf32>
        %307 = vector.multi_reduction <add>, %306, %cst_139 [1] : vector<10x128xf32> to vector<10xf32>
        %308 = vector.shape_cast %307 : vector<10xf32> to vector<10x1xf32>
        %cst_140 = arith.constant 1.280000e+02 : f32
        %309 = vector.broadcast %cst_140 : f32 to vector<10x1xf32>
        %310 = arith.divf %308, %309 : vector<10x1xf32>
        %311 = vector.broadcast %303 : vector<10x1xf32> to vector<10x128xf32>
        %312 = arith.subf %297, %311 : vector<10x128xf32>
        %cst_141 = arith.constant 9.99999974E-6 : f32
        %313 = vector.broadcast %cst_141 : f32 to vector<10x1xf32>
        %314 = arith.addf %310, %313 : vector<10x1xf32>
        %315 = math.rsqrt %314 : vector<10x1xf32>
        %316 = vector.broadcast %315 : vector<10x1xf32> to vector<10x128xf32>
        %317 = arith.mulf %312, %316 : vector<10x128xf32>
        %318 = vector.broadcast %298 : vector<1x128xf32> to vector<10x128xf32>
        %319 = arith.mulf %317, %318 : vector<10x128xf32>
        %320 = vector.broadcast %299 : vector<1x128xf32> to vector<10x128xf32>
        %321 = arith.addf %319, %320 : vector<10x128xf32>
        %cst_142 = arith.constant dense<0.000000e+00> : vector<10x1xf32>
        %322 = tpu.matmul %141, %221, %cst_142 {dimension_numbers = #tpu.dot_dimension_numbers<[1], [0], [0], [1], [0, 0, 1, 1], [], []>} : vector<10x10xf32>, vector<10x1xf32>, vector<10x1xf32> -> vector<10x1xf32>
        %323 = vector.broadcast %322 : vector<10x1xf32> to vector<10x128xf32>
        %324 = arith.mulf %323, %321 : vector<10x128xf32>
        %cst_143 = arith.constant 1.000000e+00 : f32
        %325 = vector.broadcast %cst_143 : f32 to vector<10x1xf32>
        %326 = arith.subf %325, %322 : vector<10x1xf32>
        %327 = vector.broadcast %326 : vector<10x1xf32> to vector<10x128xf32>
        %328 = arith.mulf %327, %104 : vector<10x128xf32>
        %329 = arith.addf %324, %328 : vector<10x128xf32>
        %330 = vector.broadcast %3 : vector<10x1xf32> to vector<10x128xf32>
        %331 = arith.mulf %329, %330 : vector<10x128xf32>
        %cst_144 = arith.constant 1.000000e+00 : f32
        %332 = vector.broadcast %cst_144 : f32 to vector<10x1xf32>
        %333 = arith.subf %332, %221 : vector<10x1xf32>
        %334 = arith.mulf %105, %333 : vector<10x1xf32>
        %335 = arith.mulf %334, %3 : vector<10x1xf32>
        %cst_145 = arith.constant 5.000000e-01 : f32
        %336 = vector.broadcast %cst_145 : f32 to vector<1x1xf32>
        %337 = arith.cmpf ogt, %106, %336 : vector<1x1xf32>
        %338 = vector.shape_cast %337 : vector<1x1xi1> to vector<1x1xi1>
        %339 = vector.broadcast %338 : vector<1x1xi1> to vector<10x128xi1>
        %340 = arith.select %339, %331, %104 : vector<10x128xi1>, vector<10x128xf32>
        %341 = vector.shape_cast %337 : vector<1x1xi1> to vector<1x1xi1>
        %342 = vector.broadcast %341 : vector<1x1xi1> to vector<10x1xi1>
        %343 = arith.select %342, %335, %105 : vector<10x1xi1>, vector<10x1xf32>
        %cst_146 = arith.constant 1.000000e-01 : f32
        %344 = vector.broadcast %cst_146 : f32 to vector<10x1xf32>
        %345 = arith.cmpf ogt, %343, %344 : vector<10x1xf32>
        %cst_147 = arith.constant 1.000000e+00 : f32
        %cst_148 = arith.constant 0.000000e+00 : f32
        %346 = vector.broadcast %cst_147 : f32 to vector<10x1xf32>
        %347 = vector.broadcast %cst_148 : f32 to vector<10x1xf32>
        %348 = arith.select %345, %346, %347 : vector<10x1xi1>, vector<10x1xf32>
        %cst_149 = arith.constant dense<0.000000e+00> : vector<1xf32>
        %349 = vector.multi_reduction <add>, %348, %cst_149 [0] : vector<10x1xf32> to vector<1xf32>
        %350 = vector.shape_cast %349 : vector<1xf32> to vector<1x1xf32>
        %cst_150 = arith.constant 2.000000e+00 : f32
        %351 = vector.broadcast %cst_150 : f32 to vector<1x1xf32>
        %352 = arith.subf %350, %351 : vector<1x1xf32>
        %cst_151 = arith.constant 1.000000e+00 : f32
        %353 = vector.broadcast %cst_151 : f32 to vector<1x1xf32>
        %354 = arith.cmpf ole, %352, %353 : vector<1x1xf32>
        %cst_152 = arith.constant 0.000000e+00 : f32
        %cst_153 = arith.constant 1.000000e+00 : f32
        %355 = vector.broadcast %cst_152 : f32 to vector<1x1xf32>
        %356 = vector.broadcast %cst_153 : f32 to vector<1x1xf32>
        %357 = arith.select %354, %355, %356 : vector<1x1xi1>, vector<1x1xf32>
        %c0_154 = arith.constant 0 : index
        %c0_155 = arith.constant 0 : index
        %c0_156 = arith.constant 0 : index
        %358 = vector.load %arg21[%c0_154, %c0_155, %c0_156] : memref<1x10x128xf32, #tpu.memory_space<vmem>>, vector<1x10x128xf32>
        %359 = vector.shape_cast %358 : vector<1x10x128xf32> to vector<10x128xf32>
        %360 = vector.shape_cast %340 : vector<10x128xf32> to vector<1x10x128xf32>
        tpu.vector_store %arg21[%c0_154, %c0_155, %c0_156], %360 {strides = array<i32>} : memref<1x10x128xf32, #tpu.memory_space<vmem>>, vector<1x10x128xf32>,
        %c0_157 = arith.constant 0 : index
        %c0_158 = arith.constant 0 : index
        %361 = vector.load %arg23[%c0_157, %c0_158] : memref<10x1xf32, #tpu.memory_space<vmem>>, vector<10x1xf32>
        tpu.vector_store %arg23[%c0_157, %c0_158], %343 {strides = array<i32>} : memref<10x1xf32, #tpu.memory_space<vmem>>, vector<10x1xf32>,
        %c0_159 = arith.constant 0 : index
        %c0_160 = arith.constant 0 : index
        %362 = vector.load %arg24[%c0_159, %c0_160] : memref<1x1xf32, #tpu.memory_space<vmem>>, vector<1x1xf32>
        tpu.vector_store %arg24[%c0_159, %c0_160], %357 {strides = array<i32>} : memref<1x1xf32, #tpu.memory_space<vmem>>, vector<1x1xf32>,
      } else {
      }
    }
    %c8_i32_35 = arith.constant 8 : i32
    %c0_36 = arith.constant 0 : index
    %c0_37 = arith.constant 0 : index
    %c0_38 = arith.constant 0 : index
    %86 = vector.load %arg21[%c0_36, %c0_37, %c0_38] : memref<1x10x128xf32, #tpu.memory_space<vmem>>, vector<1x10x128xf32>
    %87 = vector.shape_cast %86 : vector<1x10x128xf32> to vector<10x128xf32>
    %c0_39 = arith.constant 0 : index
    %c0_40 = arith.constant 0 : index
    %c0_41 = arith.constant 0 : index
    %88 = vector.load %arg6[%c0_39, %c0_40, %c0_41] : memref<1x10x1xf32, #tpu.memory_space<vmem>>, vector<1x10x1xf32>
    %89 = vector.shape_cast %88 : vector<1x10x1xf32> to vector<10x1xf32>
    %90 = vector.broadcast %89 : vector<10x1xf32> to vector<10x128xf32>
    %91 = arith.mulf %87, %90 : vector<10x128xf32>
    %cst_42 = arith.constant dense<0.000000e+00> : vector<128xf32>
    %92 = vector.multi_reduction <add>, %91, %cst_42 [0] : vector<10x128xf32> to vector<128xf32>
    %93 = vector.shape_cast %92 : vector<128xf32> to vector<1x128xf32>
    %c0_43 = arith.constant 0 : index
    %c0_44 = arith.constant 0 : index
    %c0_45 = arith.constant 0 : index
    %94 = vector.load %arg22[%c0_43, %c0_44, %c0_45] : memref<1x1x128xf32, #tpu.memory_space<vmem>>, vector<1x1x128xf32>
    %95 = vector.shape_cast %94 : vector<1x1x128xf32> to vector<1x128xf32>
    %96 = vector.shape_cast %93 : vector<1x128xf32> to vector<1x1x128xf32>
    tpu.vector_store %arg22[%c0_43, %c0_44, %c0_45], %96 {strides = array<i32>} : memref<1x1x128xf32, #tpu.memory_space<vmem>>, vector<1x1x128xf32>,
    return
  }
  func.func @transform_0(%arg0: i32, %arg1: memref<2xi32, #tpu.memory_space<smem>>) -> (i32, i32, i32) {
    %c0_i32 = arith.constant 0 : i32
    %c0_i32_0 = arith.constant 0 : i32
    %c0_i32_1 = arith.constant 0 : i32
    return %arg0, %c0_i32, %c0_i32_0 : i32, i32, i32
  }
  func.func @transform_1(%arg0: i32, %arg1: memref<2xi32, #tpu.memory_space<smem>>) -> (i32, i32, i32) {
    %c0_i32 = arith.constant 0 : i32
    %c0_i32_0 = arith.constant 0 : i32
    %c0_i32_1 = arith.constant 0 : i32
    return %arg0, %c0_i32, %c0_i32_0 : i32, i32, i32
  }
  func.func @transform_2(%arg0: i32, %arg1: memref<2xi32, #tpu.memory_space<smem>>) -> (i32, i32, i32) {
    %c0_i32 = arith.constant 0 : i32
    %c0_i32_0 = arith.constant 0 : i32
    %c0_i32_1 = arith.constant 0 : i32
    return %arg0, %c0_i32, %c0_i32_0 : i32, i32, i32
  }
  func.func @transform_3(%arg0: i32, %arg1: memref<2xi32, #tpu.memory_space<smem>>) -> (i32, i32, i32) {
    %c0_i32 = arith.constant 0 : i32
    %c0_i32_0 = arith.constant 0 : i32
    %c0_i32_1 = arith.constant 0 : i32
    return %arg0, %c0_i32, %c0_i32_0 : i32, i32, i32
  }
  func.func @transform_4(%arg0: i32, %arg1: memref<2xi32, #tpu.memory_space<smem>>) -> (i32, i32, i32) {
    %c0_i32 = arith.constant 0 : i32
    %c0_i32_0 = arith.constant 0 : i32
    %c0_i32_1 = arith.constant 0 : i32
    return %arg0, %c0_i32, %c0_i32_0 : i32, i32, i32
  }
  func.func @transform_5(%arg0: i32, %arg1: memref<2xi32, #tpu.memory_space<smem>>) -> (i32, i32) {
    %c0_i32 = arith.constant 0 : i32
    %c0_i32_0 = arith.constant 0 : i32
    %c0_i32_1 = arith.constant 0 : i32
    return %c0_i32, %c0_i32_0 : i32, i32
  }
  func.func @transform_6(%arg0: i32, %arg1: memref<2xi32, #tpu.memory_space<smem>>) -> (i32, i32) {
    %c0_i32 = arith.constant 0 : i32
    %c0_i32_0 = arith.constant 0 : i32
    %c0_i32_1 = arith.constant 0 : i32
    return %c0_i32, %c0_i32_0 : i32, i32
  }
  func.func @transform_7(%arg0: i32, %arg1: memref<2xi32, #tpu.memory_space<smem>>) -> (i32, i32) {
    %c0_i32 = arith.constant 0 : i32
    %c0_i32_0 = arith.constant 0 : i32
    %c0_i32_1 = arith.constant 0 : i32
    return %c0_i32, %c0_i32_0 : i32, i32
  }
  func.func @transform_8(%arg0: i32, %arg1: memref<2xi32, #tpu.memory_space<smem>>) -> (i32, i32) {
    %c0_i32 = arith.constant 0 : i32
    %c0_i32_0 = arith.constant 0 : i32
    %c0_i32_1 = arith.constant 0 : i32
    return %c0_i32, %c0_i32_0 : i32, i32
  }
  func.func @transform_9(%arg0: i32, %arg1: memref<2xi32, #tpu.memory_space<smem>>) -> (i32, i32) {
    %c0_i32 = arith.constant 0 : i32
    %c0_i32_0 = arith.constant 0 : i32
    %c0_i32_1 = arith.constant 0 : i32
    return %c0_i32, %c0_i32_0 : i32, i32
  }
  func.func @transform_10(%arg0: i32, %arg1: memref<2xi32, #tpu.memory_space<smem>>) -> (i32, i32) {
    %c0_i32 = arith.constant 0 : i32
    %c0_i32_0 = arith.constant 0 : i32
    %c0_i32_1 = arith.constant 0 : i32
    return %c0_i32, %c0_i32_0 : i32, i32
  }
  func.func @transform_11(%arg0: i32, %arg1: memref<2xi32, #tpu.memory_space<smem>>) -> (i32, i32) {
    %c0_i32 = arith.constant 0 : i32
    %c0_i32_0 = arith.constant 0 : i32
    %c0_i32_1 = arith.constant 0 : i32
    return %c0_i32, %c0_i32_0 : i32, i32
  }
  func.func @transform_12(%arg0: i32, %arg1: memref<2xi32, #tpu.memory_space<smem>>) -> (i32, i32) {
    %c0_i32 = arith.constant 0 : i32
    %c0_i32_0 = arith.constant 0 : i32
    %c0_i32_1 = arith.constant 0 : i32
    return %c0_i32, %c0_i32_0 : i32, i32
  }
  func.func @transform_13(%arg0: i32, %arg1: memref<2xi32, #tpu.memory_space<smem>>) -> (i32, i32) {
    %c0_i32 = arith.constant 0 : i32
    %c0_i32_0 = arith.constant 0 : i32
    %c0_i32_1 = arith.constant 0 : i32
    return %c0_i32, %c0_i32_0 : i32, i32
  }
  func.func @transform_14(%arg0: i32, %arg1: memref<2xi32, #tpu.memory_space<smem>>) -> (i32, i32) {
    %c0_i32 = arith.constant 0 : i32
    %c0_i32_0 = arith.constant 0 : i32
    %c0_i32_1 = arith.constant 0 : i32
    return %c0_i32, %c0_i32_0 : i32, i32
  }
  func.func @transform_15(%arg0: i32, %arg1: memref<2xi32, #tpu.memory_space<smem>>) -> (i32, i32) {
    %c0_i32 = arith.constant 0 : i32
    %c0_i32_0 = arith.constant 0 : i32
    %c0_i32_1 = arith.constant 0 : i32
    return %c0_i32, %c0_i32_0 : i32, i32
  }
  func.func @transform_16(%arg0: i32, %arg1: memref<2xi32, #tpu.memory_space<smem>>) -> (i32, i32) {
    %c0_i32 = arith.constant 0 : i32
    %c0_i32_0 = arith.constant 0 : i32
    %c0_i32_1 = arith.constant 0 : i32
    return %c0_i32, %c0_i32_0 : i32, i32
  }
  func.func @transform_17(%arg0: i32, %arg1: memref<2xi32, #tpu.memory_space<smem>>) -> (i32, i32) {
    %c0_i32 = arith.constant 0 : i32
    %c0_i32_0 = arith.constant 0 : i32
    %c0_i32_1 = arith.constant 0 : i32
    return %c0_i32, %c0_i32_0 : i32, i32
  }
  func.func @transform_18(%arg0: i32, %arg1: memref<2xi32, #tpu.memory_space<smem>>) -> (i32, i32) {
    %c0_i32 = arith.constant 0 : i32
    %c0_i32_0 = arith.constant 0 : i32
    %c0_i32_1 = arith.constant 0 : i32
    return %c0_i32, %c0_i32_0 : i32, i32
  }
  func.func @transform_19(%arg0: i32, %arg1: memref<2xi32, #tpu.memory_space<smem>>) -> (i32, i32, i32) {
    %c0_i32 = arith.constant 0 : i32
    %c0_i32_0 = arith.constant 0 : i32
    %c0_i32_1 = arith.constant 0 : i32
    return %arg0, %c0_i32, %c0_i32_0 : i32, i32, i32
  }
  func.func @transform_20(%arg0: i32, %arg1: memref<2xi32, #tpu.memory_space<smem>>) -> (i32, i32, i32) {
    %c0_i32 = arith.constant 0 : i32
    %c0_i32_0 = arith.constant 0 : i32
    %c0_i32_1 = arith.constant 0 : i32
    return %arg0, %c0_i32, %c0_i32_0 : i32, i32, i32
  }
}

</mosaic_0001>

<bundles_post_ra>
// kernel: tpu_custom_call.1
= control target key start
LH: loop header
LB: loop body
LE: loop exit
PB: predicated region body
PF: predicated region fallthrough
CT: control target
= control target key end

     0   :  { %s6152_s0 = inlined_call_operand.vmem [shape: s32[2], index: 0, kind: input, shape index: {}]   ;;  %s6153_s1 = inlined_call_operand.vmem [shape: f32[2,10,128], index: 1, kind: input, shape index: {}]   ;;  %s6154_s2 = inlined_call_operand.vmem [shape: f32[2,10,1], index: 2, kind: input, shape index: {}]   ;;  %s6155_s3 = inlined_call_operand.vmem [shape: f32[2,1,10], index: 3, kind: input, shape index: {}]   ;;  %s6156_s4 = inlined_call_operand.vmem [shape: f32[2,10,1], index: 4, kind: input, shape index: {}]   ;;  %s6157_s5 = inlined_call_operand.vmem [shape: f32[2,10,1], index: 5, kind: input, shape index: {}]   ;;  %s6158_s6 = inlined_call_operand.vmem [shape: f32[128,128], index: 6, kind: input, shape index: {}]   ;;  %s6159_s7 = inlined_call_operand.vmem [shape: f32[1,128], index: 7, kind: input, shape index: {}]   ;;  %s6160_s8 = inlined_call_operand.vmem [shape: f32[1,128], index: 8, kind: input, shape index: {}]   ;;  %s6161_s9 = inlined_call_operand.vmem [shape: f32[1,128], index: 9, kind: input, shape index: {}]   ;;  %s6162_s10 = inlined_call_operand.hbm [shape: f32[640,128], index: 10, kind: input, shape index: {}]   ;;  %s6163_s11 = inlined_call_operand.vmem [shape: f32[1,128], index: 11, kind: input, shape index: {}]   ;;  %s6164_s12 = inlined_call_operand.vmem [shape: f32[1,128], index: 12, kind: input, shape index: {}]   ;;  %s6165_s14 = inlined_call_operand.hbm [shape: f32[256,512], index: 14, kind: input, shape index: {}]   ;;  %s6166_s15 = inlined_call_operand.vmem [shape: f32[1,512], index: 15, kind: input, shape index: {}]   ;;  %s6167_s16 = inlined_call_operand.hbm [shape: f32[512,512], index: 16, kind: input, shape index: {}]   ;;  %s6168_s17 = inlined_call_operand.vmem [shape: f32[1,512], index: 17, kind: input, shape index: {}]   ;;  %s6169_s18 = inlined_call_operand.vmem [shape: f32[1,128], index: 18, kind: input, shape index: {}]   ;;  %s6170_s19 = inlined_call_operand.vmem [shape: f32[1,128], index: 19, kind: input, shape index: {}]   ;;  %s6171_s20 = inlined_call_operand.vmem [shape: f32[2,10,128], index: 20, kind: output, shape index: {0}]   ;;  %s6172_s21 = inlined_call_operand.hbm [shape: f32[2,1,128], index: 21, kind: output, shape index: {1}]   ;;  %s6173_s13 = inlined_call_operand.<no memory space> [shape: f32[1,1], index: 13, kind: input, shape index: {}]  }
   0x1   :  { %6202 = sst [smem:[#allocation40_spill]] %s6152_s0  ;;  %v31_v0 = vstv %s6173_s13 }
   0x2   :  { %6203 = sst [smem:[#allocation41_spill]] %s6153_s1  ;;  %s6211_s26 = sld [smem:[#allocation40_spill]]  ;;  %32 = vst [vmem:[#allocation6] sm:$0x1] %v31_v0 }
   0x3   :  { %6204 = sst [smem:[#allocation42_spill]] %s6154_s2 }
   0x4   :  { %6205 = sst [smem:[#allocation43_spill]] %s6155_s3 }
   0x5   :  { %6206 = sst [smem:[#allocation44_spill]] %s6156_s4 }
   0x6   :  { %6207 = sst [smem:[#allocation45_spill]] %s6157_s5 }
   0x7   :  { %6208 = sst [smem:[#allocation46_spill]] %s6165_s14 }
   0x8   :  { %6209 = sst [smem:[#allocation47_spill]] %s6166_s15  ;;  %s27_s15 = sshll.u32 %s6211_s26, 4  ;;  %s28_s15 = int_to_ptr.vmem [resolvable:$true] %s27_s15 }
   0x9   :  { %6210 = sst [smem:[#allocation48_spill]] %s6172_s21  ;;  %s5047_s28 = scalar_lea.vmem %s28_s15, 16 }
   0xa   :  { %p5048_p0 = scmp.ne.s32.totalorder %s28_s15, %s5047_s28  ;;  %p5052_p1 = scmp.lt.s32.totalorder %s28_s15, %s28_s15 }
   0xb   :  { %p5053_p2 = scmp.lt.s32.totalorder %s5047_s28, %s5047_s28 }
   0xd   :  { %p5054_p3 = por %p5053_p2, %p5052_p1 }
   0xf   :  { %p5055_p4 = pnand %p5054_p3, %p5048_p0 }
  0x11   :  { %5058 = shalt.err (!%p5055_p4)  }
  0x12   :  { %s5225_s29 = smov [#allocation5]  }
  0x13   :  { %30 = dma.vmem_to_smem %s28_s15, 16, %s5225_s29, [#allocation4] }
  0x14   :  { %5191 = dma.done.wait [#allocation4], 16 }
  0x15   :  { %5192 = vsyncadd [#allocation4], 4294967280 }
  0x16   :  { %34 = sfence }
  0x17   :  { %35 = vsyncpa [#allocation8], 0 }
  0x18   :  { %36 = vsyncpa [#allocation11], 0 }
  0x19   :  { %37 = vsyncpa [#allocation9], 0 }
  0x1a   :  { %39 = vsyncpa [#allocation9 + $0x1], 0  ;;  %s5359_s0 = smov 0   ;;  %s5361_s13 = smov 0  }
  0x1b   :  { %s5363_s4 = smov 0   ;;  %s5365_s30 = smov 0  }
  0x1c LB: > { %6212 = sst [smem:[#allocation18_spill]] %s5207_s0  ;;  %s5380_s15 = sadd.s32 4294967295, %s5219_s30   ;;  %s5219_s30 = sphi %s5365_s30, %s6282_s30   ;;  %s5215_s4 = sphi %s5363_s4, %s6284_s4   ;;  %s5211_s13 = sphi %s5361_s13, %s6286_s13   ;;  %s5207_s0 = sphi %s5359_s0, %s6285_s0  }
  0x1d   : > { %6213 = sst [smem:[#allocation19_spill]] %s5215_s4  ;;  %s3861_s5 = sadd.s32 4294967294, %s5219_s30  }
  0x1e   : > { %6214 = sst [smem:[#allocation20_spill]] %s5219_s30  ;;  %s5384_s22 = sadd.s32 1, %s5219_s30  }
  0x1f   : > { %6215 = sst [smem:[#allocation21_spill]] %s5384_s22  ;;  %s502_s23 = sadd.s32 1, %s5215_s4 }
  0x20   : > { %s499_s1 = ssub.s32 %s5219_s30, %s5384_s22  ;;  %p512_p5 = scmp.ne.s32.totalorder %s5215_s4, %s5211_s13 }
  0x21   : > { %p500_p6 = scmp.eq.s32.totalorder %s499_s1, 0  ;;  %p513_p7 = scmp.eq.s32.totalorder %s5380_s15, 1 }
  0x22   : > { %p518_p8 = scmp.ne.s32.totalorder %s5211_s13, %s5207_s0  ;;  %p519_p9 = scmp.eq.s32.totalorder %s3861_s5, 1 }
  0x23   : > { %s5395_s24 = scalar_select %p500_p6, %s5215_s4, %s502_s23  }
  0x24   : > { %p5397_p10 = por %p513_p7, %p512_p5  ;;  %p5401_p11 = por %p519_p9, %p518_p8 }
  0x25   : > { %6216 = sst [smem:[#allocation22_spill]] %s5395_s24  ;;  %p3862_p12 = scmp.ge.s32.totalorder %s5219_s30, 1 }
  0x26   : > { %s6217_s2 = scalar_select %p5397_p10, 1, 0 }
  0x27   : > { %s6219_s25 = scalar_select %p5401_p11, 1, 0 }
  0x28   : > { %6218 = sst [smem:[#allocation23_spill]] %s6217_s2  ;;  %p526_p13 = scmp.lt.s32.totalorder %s5219_s30, 3 }
  0x29   : > { %6220 = sst [smem:[#allocation24_spill]] %s6219_s25  ;;  %p6178_p0 = scmp.eq.s32.totalorder %s5380_s15, 0 }
  0x2a   : > { %p5408_p1 = pnand %p3862_p12, %p526_p13  ;;  %s5226_s27 = smov [#allocation10]  }
  0x2b   : > { %s572_s3 = sshll.u32 %s5226_s27, 4  ;;  %s5227_s29 = smov [#allocation7]   ;;  %s573_s3 = int_to_ptr.vmem [resolvable:$true] %s572_s3 }
  0x2c   : > { %s6221_s26 = scalar_select %p5408_p1, 1, 0 }
  0x2d   : > { %p4878_p2 = pneg %p5408_p1  ;;  %s550_s5 = sshll.u32 %s5227_s29, 4  ;;  %s5420_s5 = int_to_ptr.vmem [resolvable:$true] %s550_s5 }
  0x2e   : > { %s6223_s14 = sld [smem:[#allocation46_spill]] }
  0x2f   : > { %p5416_p3 = pnand %p6178_p0, %p4878_p2 }
  0x31   : > { %p5430_p5 = pneg %p5416_p3 }
  0x34   : > { %s5059_s24 = scalar_lea.hbm %s6223_s14, 16384 }
  0x35   : > { %p5060_p4 = scmp.ne.s32.totalorder %s6223_s14, %s5059_s24  ;;  %p5066_p8 = scmp.lt.u32.totalorder %s5059_s24, %s6223_s14 }
  0x37   : > { %p5062_p6 = pnand %p5430_p5, %p5060_p4 }
  0x39   : > { %p5063_p7 = pneg %p5062_p6 }
  0x3b   : > { %p5068_p9 = pnand %p5066_p8, %p5063_p7 }
  0x3d   : > { %5071 = shalt.err (!%p5068_p9)
}
  0x3e   : > { %s5072_s23 = scalar_lea.vmem %s573_s3, 16384  ;;  %p5080_p0 = scmp.lt.s32.totalorder %s573_s3, %s573_s3 }
  0x3f   : > { %p5073_p12 = scmp.ne.s32.totalorder %s573_s3, %s5072_s23  ;;  %p5081_p11 = scmp.lt.s32.totalorder %s5072_s23, %s5072_s23 }
  0x41   : > { %p5075_p13 = pnand %p5073_p12, %p5430_p5  ;;  %p5082_p10 = por %p5081_p11, %p5080_p0 }
  0x43   : > { %p5076_p2 = pneg %p5075_p13 }
  0x45   : > { %p5083_p1 = pnand %p5082_p10, %p5076_p2 }
  0x47   : > { %5086 = shalt.err (!%p5083_p1)
}
  0x48   : > { %s6186_s4 = smov 512   ;;  %s6187_s22 = smov 32  }
  0x49   : > { %4884 = dma.hbm_to_vmem [thread:$0]  (!%p5416_p3), %s6223_s14, 16384, %s573_s3, [#allocation11], %s6186_s4, %s6186_s4, %s6187_s22  }
  0x4a   : > { %s5087_s0 = scalar_lea.hbm %s6162_s10, 10240 }
  0x4b   : > { %p5088_p10 = scmp.ne.s32.totalorder %s6162_s10, %s5087_s0  ;;  %p5094_p1 = scmp.lt.u32.totalorder %s5087_s0, %s6162_s10 }
  0x4d   : > { %p5090_p11 = pnand %p5088_p10, %p5430_p5 }
  0x4f   : > { %p5091_p0 = pneg %p5090_p11 }
  0x51   : > { %p5096_p4 = pnand %p5094_p1, %p5091_p0 }
  0x53   : > { %5099 = shalt.err (!%p5096_p4)
}
  0x54   : > { %s5100_s3 = scalar_lea.vmem %s5420_s5, 10240  ;;  %p5108_p9 = scmp.lt.s32.totalorder %s5420_s5, %s5420_s5 }
  0x55   : > { %p5101_p6 = scmp.ne.s32.totalorder %s5420_s5, %s5100_s3  ;;  %p5109_p12 = scmp.lt.s32.totalorder %s5100_s3, %s5100_s3 }
  0x57   : > { %p5103_p7 = pnand %p5101_p6, %p5430_p5  ;;  %p5110_p13 = por %p5109_p12, %p5108_p9 }
  0x59   : > { %p5104_p8 = pneg %p5103_p7 }
  0x5b   : > { %p5111_p2 = pnand %p5110_p13, %p5104_p8 }
  0x5d   : > { %5114 = shalt.err (!%p5111_p2)
}
  0x5e   : > { %s5230_s30 = smov 128   ;;  %s5231_s21 = smov 8  }
  0x5f   : > { %4881 = dma.hbm_to_vmem [thread:$0]  (!%p5416_p3), %s6162_s10, 10240, %s5420_s5, [#allocation8], %s5230_s30, %s5230_s30, %s5231_s21  }
  0x60   : > { %s5232_s24 = smov [#allocation12]   ;;  %s5115_s23 = scalar_lea.hbm %s6167_s16, 32768 }
  0x61   : > { %s588_s25 = sshll.u32 %s5232_s24, 4  ;;  %p5116_p10 = scmp.ne.s32.totalorder %s6167_s16, %s5115_s23  ;;  %s589_s25 = int_to_ptr.vmem [resolvable:$true] %s588_s25 }
  0x62   : > { %p5122_p1 = scmp.lt.u32.totalorder %s5115_s23, %s6167_s16 }
  0x63   : > { %p5118_p11 = pnand %p5116_p10, %p5430_p5 }
  0x65   : > { %p5119_p0 = pneg %p5118_p11 }
  0x67   : > { %p5124_p4 = pnand %p5122_p1, %p5119_p0 }
  0x69   : > { %5127 = shalt.err (!%p5124_p4)
}
  0x6a   : > { %s5128_s5 = scalar_lea.vmem %s589_s25, 32768  ;;  %p5136_p9 = scmp.lt.s32.totalorder %s589_s25, %s589_s25 }
  0x6b   : > { %p5129_p6 = scmp.ne.s32.totalorder %s589_s25, %s5128_s5  ;;  %p5137_p12 = scmp.lt.s32.totalorder %s5128_s5, %s5128_s5 }
  0x6d   : > { %p5131_p7 = pnand %p5129_p6, %p5430_p5  ;;  %p5138_p13 = por %p5137_p12, %p5136_p9 }
  0x6f   : > { %p5132_p8 = pneg %p5131_p7 }
  0x71   : > { %p5139_p2 = pnand %p5138_p13, %p5132_p8 }
  0x73   : > { %5142 = shalt.err (!%p5139_p2)
}
  0x74   : > { %s6225_s4 = smov 32   ;;  %s6226_s30 = smov 512  }
  0x75   : > { %4887 = dma.hbm_to_vmem [thread:$0]  (!%p5416_p3), %s6167_s16, 32768, %s589_s25, [#allocation11], %s6226_s30, %s6226_s30, %s6225_s4  }
  0x76   : > { %p6227_p10 = scmp.ne.s32.totalorder %s6221_s26, 0 }
  0x78   : > { %651 = sbr.rel (%p6227_p10) target bundleno = 3882 (0xf2a), region = 96 }
  0x7f   : > { %p6228_p5 = scmp.eq.s32.totalorder %s5380_s15, 0 }
  0x81   : > { %5194 = dma.done.wait (%p6228_p5), [#allocation8], 10240   ;;  %p6229_p11 = pmov %p6228_p5 }
  0x82   : > { %p6230_p0 = pmov %p6228_p5 }
  0x83   : > { %5196 = vsyncadd (%p6229_p11), [#allocation8], 4294957056 }
  0x84   : > { %5198 = dma.done.wait (%p6230_p0), [#allocation11], 49152   ;;  %p6231_p1 = pmov %p6230_p0 }
  0x85   : > { %vm993_vm0 = vcmask 0   ;;  %p739_p3 = scmp.lt.s32.totalorder %s5380_s15, 1  ;;  %v773_v1 = vlaneseq  ;;  %s5505_s26 = sld [smem:[#allocation5 + %s5380_s15]]  ;;  %v5233_v2 = vmov 1.0   ;;  %v6188_v3 = vmov 0   ;;  %v843_v24 = vld [vmem:[%s6158_s6] sm:$0xff] }
  0x86   : > { %5200 = vsyncadd (%p6231_p1), [#allocation11], 4294918144  ;;  %994 = vst.msk [vmem:[#allocation3] sm:$0x1] %vm993_vm0, %v5233_v2  ;;  %4956 = vset.pattern.permute.xlu0 %v6188_v3  ;;  %s737_s28 = sand.u32 1, %s5211_s13   ;;  %vm989_vm1 = vcmask 7168  }
  0x87   : > { %s740_s27 = scalar_select %p739_p3, %s5380_s15, 1  ;;  %v5511_v4 = vshrl.u32 %v773_v1, 7  ;;  %v5513_v5 = vand.u32 127, %v773_v1  ;;  %vm991_vm2 = vcmask 1024   ;;  %v5235_v7 = vmov 0.0   ;;  %v844_v25 = vld [vmem:[%s6158_s6 + $0x8] sm:$0xff] }
  0x88   : > { %s6233_s24 = sld [smem:[#allocation43_spill]]  ;;  %s6234_s23 = sld [smem:[#allocation42_spill]]  ;;  %v4262_v26 = vpack.c.bf16 %v844_v25, %v843_v24  ;;  %v845_v27 = vld [vmem:[%s6158_s6 + $0x10] sm:$0xff]  ;;  %v846_v28 = vld [vmem:[%s6158_s6 + $0x18] sm:$0xff]  ;;  %v847_v29 = vld [vmem:[%s6158_s6 + $0x20] sm:$0xff] }
  0x89   : > { %6232 = vst [vmem:[#allocation25_spill] sm:$0xff] %v5513_v5  ;;  %s5515_s21 = sshll.u32 %s740_s27, 4  ;;  %v775_v6 = vadd.s32 8, %v5511_v4  ;;  %vm778_vm3 = vcmp.eq.s32.totalorder %v5511_v4, %v5513_v5  ;;  %vm784_vm4 = vcmp.gt.s32.totalorder %v5513_v5, %v5511_v4  ;;  %vm790_vm5 = vcmp.lt.s32.totalorder %v5513_v5, %v5511_v4  ;;  %s6235_s30 = sld [smem:[#allocation44_spill]]  ;;  %v848_v30 = vld [vmem:[%s6158_s6 + $0x28] sm:$0xff]  ;;  %v849_v37 = vld [vmem:[%s6158_s6 + $0x30] sm:$0xff] }
  0x8a   : > { %v5535_v8 = vsel %vm778_vm3, 1.0, %v5235_v7  ;;  %v5537_v9 = vsel %vm784_vm4, 1.0, %v5235_v7  ;;  %v5539_v10 = vsel %vm790_vm5, 1.0, %v5235_v7  ;;  %vm796_vm6 = vcmp.le.s32.totalorder %v5511_v4, %v5513_v5  ;;  %s6239_s0 = sld [smem:[#allocation45_spill]]  ;;  %4263 = vmatprep.subr.bf16.mxu0 %v4262_v26  ;;  %v850_v38 = vld [vmem:[%s6158_s6 + $0x38] sm:$0xff]  ;;  %v851_v40 = vld [vmem:[%s6158_s6 + $0x40] sm:$0xff] }
  0x8b   : > { %6236 = vst [vmem:[#allocation26_spill] sm:$0xff] %v5535_v8  ;;  %6237 = vst [vmem:[#allocation27_spill] sm:$0xff] %v5537_v9  ;;  %vm779_vm7 = vcmp.eq.s32.totalorder %v775_v6, %v5513_v5  ;;  %vm785_vm8 = vcmp.gt.s32.totalorder %v5513_v5, %v775_v6  ;;  %vm791_vm9 = vcmp.lt.s32.totalorder %v5513_v5, %v775_v6  ;;  %v5582_v21 = vadd.s32 1, %v5511_v4  ;;  %v852_v41 = vld [vmem:[%s6158_s6 + $0x48] sm:$0xff]  ;;  %v853_v43 = vld [vmem:[%s6158_s6 + $0x50] sm:$0xff]  ;;  %s5685_s5 = scalar_lea.vmem [#allocation13], %s737_s28 }
  0x8c   : > { %6238 = vst [vmem:[#allocation28_spill] sm:$0xff] %v5539_v10  ;;  %vm797_vm10 = vcmp.le.s32.totalorder %v775_v6, %v5513_v5  ;;  %v5559_v14 = vsel %vm779_vm7, 1.0, %v5235_v7  ;;  %v5561_v15 = vsel %vm785_vm8, 1.0, %v5235_v7  ;;  %vm802_vm11 = vcmp.ge.s32.totalorder %v5511_v4, %v5513_v5  ;;  %4265 = vmatpush3.bf16.msra.mxu0 %v4262_v26  ;;  %v854_v44 = vld [vmem:[%s6158_s6 + $0x58] sm:$0xff]  ;;  %v855_v46 = vld [vmem:[%s6158_s6 + $0x60] sm:$0xff]  ;;  %v856_v47 = vld [vmem:[%s6158_s6 + $0x68] sm:$0xff] }
  0x8d   : > { %6243 = vst [vmem:[#allocation32_spill] sm:$0xff] %v5559_v14  ;;  %6244 = vst [vmem:[#allocation33_spill] sm:$0xff] %v5561_v15  ;;  %vm803_vm12 = vcmp.ge.s32.totalorder %v775_v6, %v5513_v5  ;;  %v5573_v18 = vsel %vm791_vm9, 1.0, %v5235_v7  ;;  %v5575_v19 = vsel %vm797_vm10, 1.0, %v5235_v7  ;;  %v809_v22 = vadd.s32 1, %v775_v6  ;;  %v857_v49 = vld [vmem:[%s6158_s6 + $0x70] sm:$0xff] }
  0x8e   : > { %s751_s25 = scalar_lea.vmem %s6233_s24, %s740_s27  ;;  %s748_s3 = scalar_lea.vmem %s6234_s23, %s5515_s21  ;;  %6247 = vst [vmem:[#allocation36_spill] sm:$0xff] %v5573_v18  ;;  %6248 = vst [vmem:[#allocation37_spill] sm:$0xff] %v5575_v19  ;;  %v5579_v20 = vsel %vm803_vm12, 1.0, %v5235_v7  ;;  %v5585_v23 = vadd.s32 1, %v5513_v5  ;;  %vm823_vm13 = vcmp.eq.s32.totalorder %v5513_v5, 0  ;;  %vm826_vm14 = vcmp.eq.s32.totalorder %v5513_v5, 9 }
  0x8f   : > { %s756_s14 = scalar_lea.vmem %s6235_s30, %s5515_s21  ;;  %v5553_v11 = vld [vmem:[%s748_s3] sm:$0xff]  ;;  %v5571_v17 = vld [vmem:[%s748_s3 + $0x8] sm:$0x3]  ;;  %6249 = vst [vmem:[#allocation38_spill] sm:$0xff] %v5579_v20  ;;  %6250 = vst [vmem:[#allocation39_spill] sm:$0xff] %v5582_v21  ;;  %vm810_vm15 = vcmp.eq.s32.totalorder %v5513_v5, %v5582_v21  ;;  %vm811_vm3 = vcmp.eq.s32.totalorder %v5513_v5, %v809_v22  ;;  %v5618_v33 = vsel %vm823_vm13, 1.0, %v5235_v7  ;;  %v4266_v35 = vpack.c.bf16 %v846_v28, %v845_v27  ;;  %s5677_s3 = scalar_lea.vmem %s6171_s20, %s5515_s21 }
  0x90   : > { %s5547_s2 = scalar_lea.vmem %s6239_s0, %s5515_s21  ;;  %6240 = vst [vmem:[#allocation29_spill] sm:$0xff] %v5553_v11  ;;  %v5555_v12 = vld [vmem:[%s751_s25] sm:$0x1]  ;;  %v5566_v16 = vld [vmem:[%s756_s14 + $0x8] sm:$0x3]  ;;  %833 = vperm.xlu0 %4956, %v5553_v11   ;;  %990 = vst.msk [vmem:[#allocation2] sm:$0xff] %vm989_vm1, %v5553_v11  ;;  %vm817_vm4 = vcmp.eq.s32.totalorder %v5511_v4, %v5585_v23  ;;  %vm818_vm5 = vcmp.eq.s32.totalorder %v775_v6, %v5585_v23  ;;  %v4270_v36 = vpack.c.bf16 %v848_v30, %v847_v29 }
  0x91   : > { %6241 = vst [vmem:[#allocation30_spill] sm:$0xff] %v5555_v12  ;;  %v5557_v13 = vld [vmem:[%s756_s14] sm:$0xff]  ;;  %6245 = vst [vmem:[#allocation34_spill] sm:$0xff] %v5566_v16  ;;  %v5614_v31 = vsel %vm811_vm3, 1.0, %v5235_v7  ;;  %v5616_v32 = vsel %vm818_vm5, 1.0, %v5235_v7  ;;  %v5620_v34 = vsel %vm826_vm14, 1.0, %v5235_v7  ;;  %4267 = vmatprep.subr.bf16.mxu0 %v4266_v35  ;;  %v4274_v39 = vpack.c.bf16 %v850_v38, %v849_v37 }
  0x92   : > { %6242 = vst [vmem:[#allocation31_spill] sm:$0xff] %v5557_v13  ;;  %6246 = vst [vmem:[#allocation35_spill] sm:$0xff] %v5571_v17  ;;  %4269 = vmatpush3.bf16.msra.mxu0 %v4266_v35  ;;  %v4278_v42 = vpack.c.bf16 %v852_v41, %v851_v40  ;;  %v4282_v45 = vpack.c.bf16 %v854_v44, %v853_v43  ;;  %v4286_v48 = vpack.c.bf16 %v856_v47, %v855_v46  ;;  %v858_v50 = vld [vmem:[%s6158_s6 + $0x78] sm:$0xff]  ;;  %s6251_s30 = sld [smem:[#allocation41_spill]]  ;;  %v3897_v58 = vld [vmem:[%s6159_s7] ss:$0 sm:$0xff] }
  0x93   : > { %992 = vst.msk [vmem:[#allocation2 + $0x8] sm:$0x3] %vm991_vm2, %v5571_v17  ;;  %4271 = vmatprep.subr.bf16.mxu0 %v4270_v36  ;;  %v4290_v51 = vpack.c.bf16 %v858_v50, %v857_v49  ;;  %vm945_vm7 = vcmask 1041408   ;;  %v3898_v38 = vld [vmem:[%s6160_s8] ss:$0 sm:$0xff]  ;;  %s5687_s4 = smov 0  }
  0x94   : > { %838 = vperm.xlu0 %4956, %v5571_v17   ;;  %v3899_v40 = vld [vmem:[%s6161_s9] ss:$0 sm:$0xff] }
  0x96   : > { %4273 = vmatpush3.bf16.msra.mxu0 %v4270_v36 }
  0x97   : > { %4275 = vmatprep.subr.bf16.mxu0 %v4274_v39 }
  0x98   : > { %s743_s14 = scalar_lea.vmem %s6251_s30, %s5515_s21 }
  0x99   : > { %v829_v52 = vld [vmem:[%s743_s14] sm:$0xff]  ;;  %v830_v55 = vld [vmem:[%s743_s14 + $0x8] sm:$0x3] }
  0x9a   : > { %4277 = vmatpush3.bf16.msra.mxu0 %v4274_v39 }
  0x9b   : > { %4279 = vmatprep.subr.bf16.mxu0 %v4278_v42 }
  0x9e   : > { %4281 = vmatpush3.bf16.msra.mxu0 %v4278_v42 }
  0x9f   : > { %4283 = vmatprep.subr.bf16.mxu0 %v4282_v45 }
  0xa2   : > { %4285 = vmatpush3.bf16.msra.mxu0 %v4282_v45 }
  0xa3   : > { %4287 = vmatprep.subr.bf16.mxu0 %v4286_v48 }
  0xa6   : > { %4289 = vmatpush3.bf16.msra.mxu0 %v4286_v48 }
  0xa7   : > { %4291 = vmatprep.subr.bf16.mxu0 %v4290_v51 }
  0xaa   : > { %4293 = vmatpush3.bf16.msra.mxu0 %v4290_v51 }
 0x10f   : > { %v5656_v53 = vpop.permute.xlu0 %833 }
 0x110   : > { %v841_v54 = vmul.f32 %v5656_v53, %v829_v52 }
 0x112   : > { %4147 = vmatprep.mubr.f32.mxu0 %v841_v54 }
 0x113   : > { %v5659_v56 = vpop.permute.xlu0 %838 }
 0x114   : > { %v842_v57 = vmul.f32 %v5659_v56, %v830_v55 }
 0x116   : > { %4148 = vmatmul.mubr.f32.vlgmr.msra.gmra.mrb[0].mxu0 %v842_v57 }
 0x1e9   : > { %v4149_v59 = vpop.f32.mrb[0].mxu0 }
 0x1ea   : > { %v938_v60 = vadd.f32 %v4149_v59, %v3897_v58  ;;  %v932_v61 = vpop.f32.mrb[1].mxu0 }
 0x1eb   : > { %v933_v63 = vadd.f32 %v3897_v58, %v932_v61 }
 0x1ec   : > { %v946_v62 = vsel %vm945_vm7, %v938_v60, 0.0 }
 0x1ed   : > { %947 = vadd.xlane.f32.xlu1 %v946_v62 }
 0x1f1   : > { %943 = vadd.xlane.f32.xlu1 %v933_v63 }
 0x27a   : > { %v948_v0 = vpop.xlane.xlu1 %947 }
 0x27b   : > { %v951_v1 = vmul.f32 0.0078125, %v948_v0 }
 0x27d   : > { %v953_v2 = vsub.f32 %v938_v60, %v951_v1 }
 0x27e   : > { %v944_v6 = vpop.xlane.xlu1 %943 }
 0x27f   : > { %v950_v7 = vmul.f32 0.0078125, %v944_v6  ;;  %v955_v22 = vmul.f32 %v953_v2, %v953_v2 }
 0x281   : > { %v952_v24 = vsub.f32 %v933_v63, %v950_v7  ;;  %v958_v25 = vsel %vm945_vm7, %v955_v22, 0.0 }
 0x282   : > { %959 = vadd.xlane.f32.xlu1 %v958_v25 }
 0x283   : > { %v954_v26 = vmul.f32 %v952_v24, %v952_v24 }
 0x285   : > { %956 = vadd.xlane.f32.xlu0 %v954_v26 }
 0x30f   : > { %v960_v27 = vpop.xlane.xlu1 %959 }
 0x310   : > { %v962_v28 = vmul.f32 0.0078125, %v960_v27 }
 0x312   : > { %v964_v29 = vadd.f32 1e-05, %v962_v28  ;;  %v957_v30 = vpop.xlane.xlu0 %956 }
 0x313   : > { %v961_v35 = vmul.f32 0.0078125, %v957_v30 }
 0x314   : > { %4957 = vrsqrt.f32 %v964_v29 }
 0x315   : > { %v963_v36 = vadd.f32 1e-05, %v961_v35 }
 0x317   : > { %4959 = vrsqrt.f32 %v963_v36 }
 0x31e   : > { %v4958_v37 = vpop.eup %4957 }
 0x31f   : > { %v968_v39 = vmul.f32 %v4958_v37, %v953_v2 }
 0x321   : > { %v4960_v41 = vpop.eup %4959  ;;  %v976_v42 = vmul.f32 %v3898_v38, %v968_v39 }
 0x322   : > { %v967_v43 = vmul.f32 %v4960_v41, %v952_v24 }
 0x323   : > { %v984_v44 = vadd.f32 %v3899_v40, %v976_v42 }
 0x324   : > { %v975_v45 = vmul.f32 %v3898_v38, %v967_v43 }
 0x325   : > { %v986_v46 = vmul.f32 %v984_v44, %v5659_v56 }
 0x326   : > { %v983_v47 = vadd.f32 %v3899_v40, %v975_v45 }
 0x327   : > { %988 = vst [vmem:[%s5677_s3 + $0x8] sm:$0x3] %v986_v46 }
 0x328   : > { %v985_v48 = vmul.f32 %v983_v47, %v5656_v53 }
 0x32a   : > { %987 = vst [vmem:[%s5677_s3] sm:$0xff] %v985_v48 }
 0x32b LB: >> { %v6252_v16 = vld [vmem:[#allocation34_spill] sm:$0xff]  ;;  %v6253_v13 = vld [vmem:[#allocation31_spill] sm:$0xff]  ;;  %s3900_s21 = sadd.s32 4294967295, %s5505_s26  ;;  %s5223_s4 = sphi %s5687_s4, %s1000_s4  }
 0x32c   : >> { %v6254_v12 = vld [vmem:[#allocation30_spill] sm:$0xff]  ;;  %p3901_p4 = scmp.ge.s32.totalorder %s5223_s4, %s3900_s21 }
 0x32d   : >> { %v1008_v49 = vld [vmem:[#allocation2] sm:$0xff] (!%p3901_p4)  ;;  %v5236_v50 = vmov (!%p3901_p4), 0   ;;  %v1009_v51 = vld [vmem:[#allocation2 + $0x8] sm:$0x3] (!%p3901_p4)  ;;  %vm4295_vm8 = vmpackc.low (!%p3901_p4), %vm945_vm7, %vm796_vm6  ;;  %v5237_v52 = vmov (!%p3901_p4), 1.0   ;;  %vm1023_vm9 = vcmask (!%p3901_p4), 80896  }
 0x32e   : >> { %1005 = sbr.rel (%p3901_p4) target bundleno = 3716 (0xe84), region = 119  ;;  %4961 = vset.pattern.permute.xlu0 (!%p3901_p4), %v5236_v50  ;;  %4962 = vset.pattern.permute.xlu1 (!%p3901_p4), %v5236_v50  ;;  %v6256_v19 = vld [vmem:[#allocation37_spill] sm:$0xff] (!%p3901_p4)  ;;  %v6257_v8 = vld [vmem:[#allocation26_spill] sm:$0xff] (!%p3901_p4)  ;;  %vm1025_vm10 = vcmask (!%p3901_p4), 74752   ;;  %v6258_v14 = vld [vmem:[#allocation32_spill] sm:$0xff] (!%p3901_p4)  ;;  %v5706_v22 = vsub.s32 (!%p3901_p4), 0, %v5511_v4  ;;  %v4300_v28 = vpack.c.bf16 (!%p3901_p4), %v5614_v31, %v5237_v52  ;;  %v4312_v40 = vpack.c.bf16 (!%p3901_p4), %v5616_v32, %v5237_v52 }
 0x32f   : >> { %1013 = vperm.xlu0 (!%p3901_p4), %4961, %v1008_v49   ;;  %v4294_v54 = vpack.c.bf16 (!%p3901_p4), %v6256_v19, %v5237_v52  ;;  %v6259_v9 = vld [vmem:[#allocation27_spill] sm:$0xff] (!%p3901_p4)  ;;  %v6260_v15 = vld [vmem:[#allocation33_spill] sm:$0xff] (!%p3901_p4)  ;;  %vm4301_vm12 = vmpackc.low (!%p3901_p4), %vm945_vm7, %vm810_vm15  ;;  %s5240_s24 = smov (!%p3901_p4), 0.0   ;;  %s6269_s30 = sld [smem:[#allocation47_spill]] (!%p3901_p4) }
 0x330   : >> { %v6262_v20 = vld [vmem:[#allocation38_spill] sm:$0xff] (!%p3901_p4)  ;;  %vm4307_vm13 = vmpackc.low (!%p3901_p4), %vm945_vm7, %vm802_vm11  ;;  %v6263_v10 = vld [vmem:[#allocation28_spill] sm:$0xff] (!%p3901_p4) }
 0x331   : >> { %4296 = vmatprep.subr.msk.bf16.mxu1 (!%p3901_p4), %vm4295_vm8, %v4294_v54  ;;  %v4306_v29 = vpack.c.bf16 (!%p3901_p4), %v6262_v20, %v5237_v52  ;;  %v6264_v18 = vld [vmem:[#allocation36_spill] sm:$0xff] (!%p3901_p4)  ;;  %vm4313_vm14 = vmpackc.low (!%p3901_p4), %vm945_vm7, %vm817_vm4  ;;  %v6267_v17 = vld [vmem:[#allocation35_spill] sm:$0xff] (!%p3901_p4) }
 0x332   : >> { %4299 = vmatpush3.bf16.msk.msra.mxu1 (!%p3901_p4), %vm4295_vm8, %v4294_v54  ;;  %vm5238_vm8 = vmmov (!%p3901_p4), 1   ;;  %v6268_v11 = vld [vmem:[#allocation29_spill] sm:$0xff] (!%p3901_p4) }
 0x333   : >> { %1018 = vperm.xlu0 (!%p3901_p4), %4961, %v1009_v51   ;;  %4302 = vmatprep.subr.msk.bf16.mxu1 (!%p3901_p4), %vm4301_vm12, %v4300_v28 }
 0x3ae   : >> { %v1014_v55 = vpop.permute.xlu0 %1013 }
 0x3af   : >> { %v1021_v57 = vmul.f32 %v6257_v8, %v1014_v55 }
 0x3b1   : >> { %v1024_v60 = vsel %vm1023_vm9, %v1021_v57, 0.0  ;;  %v5743_v57 = vld [vmem:[%s5677_s3] sm:$0xff] }
 0x3b2   : >> { %v1019_v58 = vpop.permute.xlu0 %1018 }
 0x3b3   : >> { %v1022_v59 = vmul.f32 %v6258_v14, %v1019_v58  ;;  %v5746_v58 = vld [vmem:[%s5677_s3 + $0x8] sm:$0x3] }
 0x3b5   : >> { %v1026_v61 = vsel %vm1025_vm10, %v1022_v59, 0.0  ;;  %v4318_v59 = vpack.c.bf16 %v5746_v58, %v5743_v57  ;;  %vm5751_vm10 = vmpackc.low %vm945_vm7, %vm5238_vm8 }
 0x3b6   : >> { %v1027_v62 = vadd.f32 %v1026_v61, %v1024_v60  ;;  %v6272_v60 = vsub.s32 1, %v5511_v4 }
 0x3b7   : >> { %4320 = vmatprep.subr.msk.bf16.mxu0 %vm5751_vm10, %v4318_v59 }
 0x3b8   : >> { %v1028_v63 = vrot.slane %v1027_v62, 4  ;;  %4323 = vmatpush3.bf16.msk.msra.mxu0 %vm5751_vm10, %v4318_v59 }
 0x3b9   : >> { %4332 = vmatprep.subr.msk.bf16.mxu0 %vm5751_vm10, %v4318_v59 }
 0x3ba   : >> { %v1029_v0 = vadd.f32 %v1028_v63, %v1027_v62 }
 0x3bc   : >> { %v1030_v1 = vrot.slane %v1029_v0, 2 }
 0x3be   : >> { %v1031_v2 = vadd.f32 %v1030_v1, %v1029_v0 }
 0x3c0   : >> { %v1032_v6 = vrot.slane %v1031_v2, 1 }
 0x3c2   : >> { %v1033_v7 = vadd.f32 %v1032_v6, %v1031_v2  ;;  %v1221_v6 = vrot.slane %v6254_v12, %v5706_v22 }
 0x3c4   : >> { %v1034_v24 = vmul.f32 %v1033_v7, %v6254_v12 }
 0x3c6   : >> { %v1038_v25 = vrot.slane %v1034_v24, %v5706_v22 }
 0x3c8   : >> { %v1039_v26 = vmul.f32 %v6259_v9, %v1038_v25  ;;  %v1040_v27 = vmul.f32 %v6260_v15, %v1038_v25  ;;  %v1225_v38 = vmul.f32 %v6263_v10, %v1038_v25  ;;  %v1226_v39 = vmul.f32 %v6264_v18, %v1038_v25  ;;  %v2973_v18 = vld [vmem:[#allocation12 + $0x478] sm:$0xff] }
 0x3ca   : >> { %4154 = vmatprep.mubr.msk.f32.mxu1 %vm1023_vm9, %v1039_v26 }
 0x3cb   : >> { %4155 = vmatmul.mubr.msk.f32.vlgmr.msra.gmra.mrb[0].mxu1 %vm1023_vm9, %v1040_v27 }
 0x3cc   : >> { %4305 = vmatpush3.bf16.msk.msra.mxu1 %vm4301_vm12, %v4300_v28 }
 0x3cd   : >> { %4308 = vmatprep.subr.msk.bf16.mxu1 %vm4307_vm13, %v4306_v29 }
 0x49e   : >> { %v4156_v30 = vpop.f32.mrb[0].mxu1 }
 0x49f   : >> { %v1116_v35 = vpop.f32.mrb[1].mxu1  ;;  %v1126_v37 = vsub.f32 1.0, %v4156_v30  ;;  %vm1214_vm3 = vcmp.gt.f32.partialorder %v4156_v30, 1.0  ;;  %v1743_v30 = vld [vmem:[#allocation7 + $0x88] sm:$0xff] }
 0x4a0   : >> { %v1125_v36 = vsub.f32 1.0, %v1116_v35  ;;  %vm1213_vm5 = vcmp.gt.f32.partialorder %v1116_v35, 1.0  ;;  %v1726_v35 = vld [vmem:[#allocation7] sm:$0xff] }
 0x4a2   : >> { %4161 = vmatprep.mubr.msk.f32.mxu1 %vm1023_vm9, %v1125_v36 }
 0x4a3   : >> { %4162 = vmatmul.mubr.msk.f32.vlgmr.msra.gmra.mrb[2].mxu1 %vm1023_vm9, %v1126_v37  ;;  %v1727_v37 = vld [vmem:[#allocation7 + $0x8] sm:$0xff] }
 0x4a4   : >> { %4311 = vmatpush3.bf16.msk.msra.mxu1 %vm4307_vm13, %v4306_v29  ;;  %4168 = vmatprep.mubr.msk.f32.mxu1 %vm1023_vm9, %v1225_v38  ;;  %v1742_v29 = vld [vmem:[#allocation7 + $0x80] sm:$0xff] }
 0x4a5   : >> { %4314 = vmatprep.subr.msk.bf16.mxu1 %vm4313_vm14, %v4312_v40  ;;  %v4342_v36 = vpack.c.bf16 %v1743_v30, %v1742_v29  ;;  %v1753_v29 = vld [vmem:[#allocation7 + $0xd8] sm:$0xff] }
 0x4a7   : >> { %4169 = vmatmul.mubr.msk.f32.vlgmr.msra.gmra.mrb[4].mxu1 %vm1023_vm9, %v1226_v39 }
 0x4a8   : >> { %4317 = vmatpush3.bf16.msk.msra.mxu1 %vm4313_vm14, %v4312_v40  ;;  %v4344_v40 = vpack.c.bf16 %v1727_v37, %v1726_v35  ;;  %v1737_v37 = vld [vmem:[#allocation7 + $0x58] sm:$0xff] }
 0x576   : >> { %v4163_v41 = vpop.f32.mrb[2].mxu1 }
 0x577   : >> { %v1208_v42 = vadd.f32 %v4163_v41, %v5618_v33  ;;  %v1202_v43 = vpop.f32.mrb[3].mxu1 }
 0x578   : >> { %v1203_v44 = vadd.f32 %v5618_v33, %v1202_v43  ;;  %v1729_v43 = vld [vmem:[#allocation7 + $0x18] sm:$0xff] }
 0x579   : >> { %v1212_v45 = vmax.f32 %v1208_v42, 0.0  ;;  %v1728_v42 = vld [vmem:[#allocation7 + $0x10] sm:$0xff] }
 0x57a   : >> { %v1211_v46 = vmax.f32 %v1203_v44, 0.0  ;;  %v4170_v47 = vpop.f32.mrb[4].mxu1  ;;  %v1746_v44 = vld [vmem:[#allocation7 + $0xa0] sm:$0xff] }
 0x57b   : >> { %v1216_v48 = vsel %vm1214_vm3, %v1212_v45, %v1040_v27  ;;  %v1302_v49 = vpop.f32.mrb[5].mxu1  ;;  %v1312_v55 = vsub.f32 1.0, %v4170_v47  ;;  %vm1400_vm12 = vcmp.gt.f32.partialorder %v4170_v47, 1.0  ;;  %v1747_v45 = vld [vmem:[#allocation7 + $0xa8] sm:$0xff] }
 0x57c   : >> { %v1215_v51 = vsel %vm1213_vm5, %v1211_v46, %v1039_v26  ;;  %v1311_v54 = vsub.f32 1.0, %v1302_v49  ;;  %vm1399_vm13 = vcmp.gt.f32.partialorder %v1302_v49, 1.0  ;;  %v5781_v28 = vmul.f32 %v1221_v6, %v1216_v48  ;;  %v1730_v48 = vld [vmem:[#allocation7 + $0x20] sm:$0xff]  ;;  %v1731_v49 = vld [vmem:[#allocation7 + $0x28] sm:$0xff] }
 0x57d   : >> { %v5769_v27 = vmul.f32 %v1221_v6, %v1215_v51  ;;  %v4348_v46 = vpack.c.bf16 %v1729_v43, %v1728_v42  ;;  %v4350_v47 = vpack.c.bf16 %v1747_v45, %v1746_v44  ;;  %v1748_v51 = vld [vmem:[#allocation7 + $0xb0] sm:$0xff]  ;;  %v1738_v42 = vld [vmem:[#allocation7 + $0x60] sm:$0xff]  ;;  %v1739_v43 = vld [vmem:[#allocation7 + $0x68] sm:$0xff] }
 0x57e   : >> { %4175 = vmatprep.mubr.msk.f32.mxu1 %vm1023_vm9, %v1311_v54  ;;  %v1749_v54 = vld [vmem:[#allocation7 + $0xb8] sm:$0xff]  ;;  %v1756_v44 = vld [vmem:[#allocation7 + $0xf0] sm:$0xff] }
 0x57f   : >> { %4176 = vmatmul.mubr.msk.f32.vlgmr.msra.gmra.mrb[6].mxu1 %vm1023_vm9, %v1312_v55  ;;  %v4352_v55 = vpack.c.bf16 %v1731_v49, %v1730_v48  ;;  %v1757_v45 = vld [vmem:[#allocation7 + $0xf8] sm:$0xff]  ;;  %v1740_v48 = vld [vmem:[#allocation7 + $0x70] sm:$0xff] }
 0x580   : >> { %v1741_v49 = vld [vmem:[#allocation7 + $0x78] sm:$0xff] }
 0x652   : >> { %v4177_v61 = vpop.f32.mrb[6].mxu1 }
 0x653   : >> { %v1394_v62 = vadd.f32 %v4177_v61, %v5620_v34  ;;  %v1388_v63 = vpop.f32.mrb[7].mxu1  ;;  %v1732_v61 = vld [vmem:[#allocation7 + $0x30] sm:$0xff] }
 0x654   : >> { %v1389_v0 = vadd.f32 %v5620_v34, %v1388_v63  ;;  %v1750_v63 = vld [vmem:[#allocation7 + $0xc0] sm:$0xff] }
 0x655   : >> { %v1398_v1 = vmax.f32 %v1394_v62, 0.0  ;;  %v1733_v62 = vld [vmem:[#allocation7 + $0x38] sm:$0xff] }
 0x656   : >> { %v1397_v2 = vmax.f32 %v1389_v0, 0.0  ;;  %v1751_v0 = vld [vmem:[#allocation7 + $0xc8] sm:$0xff] }
 0x657   : >> { %v1402_v7 = vsel %vm1400_vm12, %v1398_v1, %v1226_v39  ;;  %v1745_v39 = vld [vmem:[#allocation7 + $0x98] sm:$0xff]  ;;  %v4356_v1 = vpack.c.bf16 %v1733_v62, %v1732_v61  ;;  %v1774_v61 = vld [vmem:[#allocation7 + $0x180] sm:$0xff]  ;;  %v1775_v62 = vld [vmem:[#allocation7 + $0x188] sm:$0xff] }
 0x658   : >> { %v1401_v24 = vsel %vm1399_vm13, %v1397_v2, %v1225_v38  ;;  %v5767_v26 = vmul.f32 %v1402_v7, %v1221_v6  ;;  %v1744_v38 = vld [vmem:[#allocation7 + $0x90] sm:$0xff]  ;;  %v4358_v2 = vpack.c.bf16 %v1751_v0, %v1750_v63  ;;  %v1735_v7 = vld [vmem:[#allocation7 + $0x48] sm:$0xff] }
 0x659   : >> { %v5765_v25 = vmul.f32 %v1401_v24, %v1221_v6  ;;  %v4346_v41 = vpack.c.bf16 %v1745_v39, %v1744_v38  ;;  %v1734_v6 = vld [vmem:[#allocation7 + $0x40] sm:$0xff]  ;;  %v1752_v24 = vld [vmem:[#allocation7 + $0xd0] sm:$0xff]  ;;  %v1755_v39 = vld [vmem:[#allocation7 + $0xe8] sm:$0xff] }
 0x65a   : >> { %v4360_v30 = vpack.c.bf16 %v1735_v7, %v1734_v6  ;;  %v4362_v35 = vpack.c.bf16 %v1753_v29, %v1752_v24  ;;  %v1754_v38 = vld [vmem:[#allocation7 + $0xe0] sm:$0xff]  ;;  %v1759_v7 = vld [vmem:[#allocation7 + $0x108] sm:$0xff]  ;;  %v1776_v24 = vld [vmem:[#allocation7 + $0x190] sm:$0xff] }
 0x65b   : >> { %4182 = vmatprep.mubr.msk.f32.mxu0 %vm1023_vm9, %v5765_v25  ;;  %4189 = vmatprep.mubr.msk.f32.mxu1 %vm1023_vm9, %v5765_v25  ;;  %v1758_v6 = vld [vmem:[#allocation7 + $0x100] sm:$0xff]  ;;  %v1777_v29 = vld [vmem:[#allocation7 + $0x198] sm:$0xff] }
 0x65c   : >> { %4183 = vmatmul.mubr.msk.f32.vlgmr.msra.gmra.mrb[0].mxu0 %vm1023_vm9, %v5767_v26 }
 0x65d   : >> { %4335 = vmatpush3.bf16.msk.msra.mxu0 %vm5751_vm10, %v4318_v59  ;;  %4196 = vmatprep.mubr.msk.f32.mxu0 %vm1023_vm9, %v5769_v27  ;;  %v4354_v59 = vpack.c.bf16 %v1749_v54, %v1748_v51  ;;  %v4372_v51 = vpack.c.bf16 %v1741_v49, %v1740_v48  ;;  %v1764_v48 = vld [vmem:[#allocation7 + $0x130] sm:$0xff]  ;;  %v1765_v49 = vld [vmem:[#allocation7 + $0x138] sm:$0xff] }
 0x65e   : >> { %4343 = vmatprep.subr.bf16.mxu0 %v4342_v36  ;;  %v1736_v36 = vld [vmem:[#allocation7 + $0x50] sm:$0xff] }
 0x660   : >> { %4197 = vmatmul.mubr.msk.f32.vlgmr.msra.gmra.mrb[2].mxu0 %vm1023_vm9, %v5781_v28 }
 0x661   : >> { %4345 = vmatpush3.bf16.msra.mxu0 %v4344_v40  ;;  %v4364_v40 = vpack.c.bf16 %v1737_v37, %v1736_v36  ;;  %v1760_v36 = vld [vmem:[#allocation7 + $0x110] sm:$0xff]  ;;  %v1761_v37 = vld [vmem:[#allocation7 + $0x118] sm:$0xff] }
 0x662   : >> { %4347 = vmatprep.subr.bf16.mxu0 %v4346_v41  ;;  %v4366_v41 = vpack.c.bf16 %v1755_v39, %v1754_v38  ;;  %v1778_v38 = vld [vmem:[#allocation7 + $0x1a0] sm:$0xff]  ;;  %v1779_v39 = vld [vmem:[#allocation7 + $0x1a8] sm:$0xff] }
 0x665   : >> { %4349 = vmatpush3.bf16.msra.mxu0 %v4348_v46  ;;  %v4368_v46 = vpack.c.bf16 %v1739_v43, %v1738_v42  ;;  %v1762_v42 = vld [vmem:[#allocation7 + $0x120] sm:$0xff]  ;;  %v1763_v43 = vld [vmem:[#allocation7 + $0x128] sm:$0xff] }
 0x666   : >> { %4351 = vmatprep.subr.bf16.mxu0 %v4350_v47  ;;  %v4370_v47 = vpack.c.bf16 %v1757_v45, %v1756_v44  ;;  %v1780_v44 = vld [vmem:[#allocation7 + $0x1b0] sm:$0xff]  ;;  %v1781_v45 = vld [vmem:[#allocation7 + $0x1b8] sm:$0xff] }
 0x669   : >> { %4353 = vmatpush3.bf16.msra.mxu0 %v4352_v55 }
 0x66a   : >> { %4355 = vmatprep.subr.bf16.mxu0 %v4354_v59 }
 0x66d   : >> { %4357 = vmatpush3.bf16.msra.mxu0 %v4356_v1 }
 0x66e   : >> { %4359 = vmatprep.subr.bf16.mxu0 %v4358_v2  ;;  %v4374_v2 = vpack.c.bf16 %v1775_v62, %v1774_v61  ;;  %v4388_v61 = vpack.c.bf16 %v1765_v49, %v1764_v48  ;;  %v1790_v48 = vld [vmem:[#allocation7 + $0x200] sm:$0xff]  ;;  %v1791_v49 = vld [vmem:[#allocation7 + $0x208] sm:$0xff] }
 0x671   : >> { %4361 = vmatpush3.bf16.msra.mxu0 %v4360_v30  ;;  %v4376_v30 = vpack.c.bf16 %v1759_v7, %v1758_v6  ;;  %v1785_v6 = vld [vmem:[#allocation7 + $0x1d8] sm:$0xff] }
 0x672   : >> { %4363 = vmatprep.subr.bf16.mxu0 %v4362_v35  ;;  %v4378_v35 = vpack.c.bf16 %v1777_v29, %v1776_v24  ;;  %v1768_v29 = vld [vmem:[#allocation7 + $0x150] sm:$0xff] }
 0x675   : >> { %4365 = vmatpush3.bf16.msra.mxu0 %v4364_v40  ;;  %v4380_v40 = vpack.c.bf16 %v1761_v37, %v1760_v36  ;;  %v1787_v36 = vld [vmem:[#allocation7 + $0x1e8] sm:$0xff] }
 0x676   : >> { %4367 = vmatprep.subr.bf16.mxu0 %v4366_v41  ;;  %v4382_v41 = vpack.c.bf16 %v1779_v39, %v1778_v38  ;;  %v1770_v39 = vld [vmem:[#allocation7 + $0x160] sm:$0xff] }
 0x679   : >> { %4369 = vmatpush3.bf16.msra.mxu0 %v4368_v46  ;;  %v4384_v46 = vpack.c.bf16 %v1763_v43, %v1762_v42  ;;  %v1789_v42 = vld [vmem:[#allocation7 + $0x1f8] sm:$0xff] }
 0x67a   : >> { %4371 = vmatprep.subr.bf16.mxu0 %v4370_v47  ;;  %v4386_v47 = vpack.c.bf16 %v1781_v45, %v1780_v44  ;;  %v1772_v45 = vld [vmem:[#allocation7 + $0x170] sm:$0xff] }
 0x67d   : >> { %4373 = vmatpush3.bf16.msra.mxu0 %v4372_v51  ;;  %v1782_v51 = vld [vmem:[#allocation7 + $0x1c0] sm:$0xff] }
 0x72f   : >> { %v5785_v54 = vpop.f32.mrb[0].mxu0 }
 0x730   : >> { %v5787_v55 = vpop.f32.mrb[1].mxu0 }
 0x731   : >> { %1877 = vmatprep.mubr.f32.mxu0 %v5787_v55  ;;  %v4324_v59 = vpack.c.bf16 %v5785_v54, %v5787_v55 }
 0x733   : >> { %4326 = vmatprep.subr.msk.bf16.mxu1 %vm5751_vm10, %v4324_v59  ;;  %v5794_v63 = vpop.f32.mrb[2].mxu0 }
 0x734   : >> { %4329 = vmatpush3.bf16.msk.msra.mxu1 %vm5751_vm10, %v4324_v59  ;;  %v1639_v0 = vpop.f32.mrb[3].mxu0  ;;  %v1783_v59 = vld [vmem:[#allocation7 + $0x1c8] sm:$0xff] }
 0x735   : >> { %v4336_v1 = vpack.c.bf16 %v5794_v63, %v1639_v0  ;;  %v4390_v62 = vpack.c.bf16 %v1783_v59, %v1782_v51  ;;  %v4406_v51 = vpack.c.bf16 %v1791_v49, %v1790_v48  ;;  %v1792_v59 = vld [vmem:[#allocation7 + $0x210] sm:$0xff]  ;;  %v2313_v48 = vld [vmem:[#allocation10 + $0x18] sm:$0xff] }
 0x736   : >> { %v2317_v49 = vld [vmem:[#allocation10 + $0x38] sm:$0xff] }
 0x737   : >> { %4190 = vmatmul.mubr.msk.f32.vlgmr.msra.gmra.mrb[8].mxu1 %vm1023_vm9, %v5767_v26  ;;  %4338 = vmatprep.subr.msk.bf16.mxu1 %vm5751_vm10, %v4336_v1 }
 0x738   : >> { %4341 = vmatpush3.bf16.msk.msra.mxu1 %vm5751_vm10, %v4336_v1  ;;  %4203 = vmatprep.mubr.msk.f32.mxu1 %vm1023_vm9, %v5769_v27  ;;  %v1767_v1 = vld [vmem:[#allocation7 + $0x148] sm:$0xff] }
 0x739   : >> { %4375 = vmatprep.subr.bf16.mxu1 %v4374_v2  ;;  %v1784_v2 = vld [vmem:[#allocation7 + $0x1d0] sm:$0xff]  ;;  %4407 = vmatprep.subr.bf16.mxu0 %v4406_v51 }
 0x73a   : >> { %v4394_v24 = vpack.c.bf16 %v1785_v6, %v1784_v2  ;;  %v1794_v2 = vld [vmem:[#allocation7 + $0x220] sm:$0xff]  ;;  %v1795_v6 = vld [vmem:[#allocation7 + $0x228] sm:$0xff] }
 0x73b   : >> { %4204 = vmatmul.mubr.msk.f32.vlgmr.msra.gmra.mrb[10].mxu1 %vm1023_vm9, %v5781_v28 }
 0x73c   : >> { %4377 = vmatpush3.bf16.msra.mxu1 %v4376_v30  ;;  %1952 = vmatprep.mubr.f32.mxu1 %v1639_v0  ;;  %v1766_v0 = vld [vmem:[#allocation7 + $0x140] sm:$0xff]  ;;  %v1769_v30 = vld [vmem:[#allocation7 + $0x158] sm:$0xff] }
 0x73d   : >> { %4379 = vmatprep.subr.bf16.mxu1 %v4378_v35  ;;  %v4392_v7 = vpack.c.bf16 %v1767_v1, %v1766_v0  ;;  %v1786_v35 = vld [vmem:[#allocation7 + $0x1e0] sm:$0xff]  ;;  %v4396_v37 = vpack.c.bf16 %v1769_v30, %v1768_v29  ;;  %v1796_v29 = vld [vmem:[#allocation7 + $0x230] sm:$0xff]  ;;  %v1797_v30 = vld [vmem:[#allocation7 + $0x238] sm:$0xff] }
 0x73e   : >> { %v4398_v38 = vpack.c.bf16 %v1787_v36, %v1786_v35  ;;  %v4418_v35 = vpack.c.bf16 %v1797_v30, %v1796_v29  ;;  %v1798_v36 = vld [vmem:[#allocation7 + $0x240] sm:$0xff]  ;;  %v2333_v29 = vld [vmem:[#allocation10 + $0xb8] sm:$0xff] }
 0x740   : >> { %4381 = vmatpush3.bf16.msra.mxu1 %v4380_v40  ;;  %v1771_v40 = vld [vmem:[#allocation7 + $0x168] sm:$0xff] }
 0x741   : >> { %4383 = vmatprep.subr.bf16.mxu1 %v4382_v41  ;;  %v1788_v41 = vld [vmem:[#allocation7 + $0x1f0] sm:$0xff]  ;;  %v4400_v43 = vpack.c.bf16 %v1771_v40, %v1770_v39  ;;  %v1801_v40 = vld [vmem:[#allocation7 + $0x258] sm:$0xff] }
 0x742   : >> { %v4402_v44 = vpack.c.bf16 %v1789_v42, %v1788_v41  ;;  %v1800_v39 = vld [vmem:[#allocation7 + $0x250] sm:$0xff]  ;;  %v1802_v42 = vld [vmem:[#allocation7 + $0x260] sm:$0xff] }
 0x743   : >> { %v4426_v41 = vpack.c.bf16 %v1801_v40, %v1800_v39  ;;  %v2341_v39 = vld [vmem:[#allocation10 + $0xf8] sm:$0xff] }
 0x744   : >> { %4385 = vmatpush3.bf16.msra.mxu1 %v4384_v46  ;;  %v1773_v46 = vld [vmem:[#allocation7 + $0x178] sm:$0xff] }
 0x745   : >> { %4387 = vmatprep.subr.bf16.mxu1 %v4386_v47  ;;  %v4404_v47 = vpack.c.bf16 %v1773_v46, %v1772_v45  ;;  %v1804_v45 = vld [vmem:[#allocation7 + $0x270] sm:$0xff]  ;;  %v1805_v46 = vld [vmem:[#allocation7 + $0x278] sm:$0xff] }
 0x748   : >> { %4389 = vmatpush3.bf16.msra.mxu1 %v4388_v61  ;;  %v1793_v61 = vld [vmem:[#allocation7 + $0x218] sm:$0xff] }
 0x749   : >> { %4391 = vmatprep.subr.bf16.mxu1 %v4390_v62  ;;  %v4410_v0 = vpack.c.bf16 %v1793_v61, %v1792_v59  ;;  %v2312_v59 = vld [vmem:[#allocation10 + $0x10] sm:$0xff] }
 0x74a   : >> { %v2316_v61 = vld [vmem:[#allocation10 + $0x30] sm:$0xff] }
 0x74c   : >> { %4393 = vmatpush3.bf16.msra.mxu1 %v4392_v7  ;;  %v4414_v7 = vpack.c.bf16 %v1795_v6, %v1794_v2  ;;  %v2320_v6 = vld [vmem:[#allocation10 + $0x50] sm:$0xff] }
 0x74d   : >> { %4395 = vmatprep.subr.bf16.mxu1 %v4394_v24 }
 0x750   : >> { %4397 = vmatpush3.bf16.msra.mxu1 %v4396_v37  ;;  %v1799_v37 = vld [vmem:[#allocation7 + $0x248] sm:$0xff] }
 0x751   : >> { %4399 = vmatprep.subr.bf16.mxu1 %v4398_v38  ;;  %v4422_v38 = vpack.c.bf16 %v1799_v37, %v1798_v36  ;;  %v2328_v36 = vld [vmem:[#allocation10 + $0x90] sm:$0xff] }
 0x752   : >> { %v2332_v37 = vld [vmem:[#allocation10 + $0xb0] sm:$0xff] }
 0x753   : >> { %v4524_v40 = vpack.c.bf16 %v2332_v37, %v2328_v36 }
 0x754   : >> { %4401 = vmatpush3.bf16.msra.mxu1 %v4400_v43  ;;  %v1803_v43 = vld [vmem:[#allocation7 + $0x268] sm:$0xff] }
 0x755   : >> { %4403 = vmatprep.subr.bf16.mxu1 %v4402_v44  ;;  %v4430_v44 = vpack.c.bf16 %v1803_v43, %v1802_v42  ;;  %v2336_v42 = vld [vmem:[#allocation10 + $0xd0] sm:$0xff] }
 0x756   : >> { %v2340_v43 = vld [vmem:[#allocation10 + $0xf0] sm:$0xff] }
 0x758   : >> { %4405 = vmatpush3.bf16.msra.mxu1 %v4404_v47  ;;  %v4434_v47 = vpack.c.bf16 %v1805_v46, %v1804_v45  ;;  %v2349_v45 = vld [vmem:[#allocation10 + $0x138] sm:$0xff] }
 0x75b   : >> { %1953 = vmatmul.mubr.f32.vlgmr.msra.gmra.mrb[12].mxu1 %v5743_v57 }
 0x75c   : >> { %1957 = vmatprep.mubr.f32.mxu1 %v5794_v63 }
 0x75f   : >> { %1958 = vmatmul.mubr.f32.gmra.mrb[14].mxu1 %v5746_v58 }
 0x760   : >> { %4245 = vmatprep.mubr.msk.f32.mxu1 %vm1023_vm9, %v5765_v25 }
 0x80a   : >> { %v4191_v62 = vpop.f32.mrb[8].mxu1 }
 0x80b   : >> { %v1558_v1 = vpop.f32.mrb[9].mxu1 }
 0x80c   : >> { %1878 = vmatmul.mubr.f32.vlgmr.msra.gmra.mrb[4].mxu0 %v1558_v1  ;;  %v4516_v1 = vpack.c.bf16 %v2316_v61, %v2312_v59 }
 0x80d   : >> { %4409 = vmatpush3.bf16.msra.mxu0 %v4406_v51  ;;  %1882 = vmatprep.mubr.f32.mxu0 %v5785_v54  ;;  %v4514_v51 = vpack.c.bf16 %v2317_v49, %v2313_v48  ;;  %v2348_v48 = vld [vmem:[#allocation10 + $0x130] sm:$0xff]  ;;  %v2353_v49 = vld [vmem:[#allocation10 + $0x158] sm:$0xff] }
 0x80e   : >> { %v4205_v63 = vpop.f32.mrb[10].mxu1  ;;  %4411 = vmatprep.subr.bf16.mxu0 %v4410_v0 }
 0x80f   : >> { %v1717_v24 = vpop.f32.mrb[11].mxu1 }
 0x810   : >> { %1883 = vmatmul.mubr.f32.gmra.mrb[6].mxu0 %v4191_v62  ;;  %v2321_v62 = vld [vmem:[#allocation10 + $0x58] sm:$0xff] }
 0x811   : >> { %4413 = vmatpush3.bf16.msra.mxu0 %v4410_v0  ;;  %4238 = vmatprep.mubr.f32.mxu0 %v1717_v24  ;;  %v2325_v0 = vld [vmem:[#allocation10 + $0x78] sm:$0xff] }
 0x812   : >> { %4415 = vmatprep.subr.bf16.mxu0 %v4414_v7  ;;  %v4518_v2 = vpack.c.bf16 %v2325_v0, %v2321_v62  ;;  %v2329_v24 = vld [vmem:[#allocation10 + $0x98] sm:$0xff]  ;;  %v2352_v62 = vld [vmem:[#allocation10 + $0x150] sm:$0xff] }
 0x813   : >> { %v2356_v0 = vld [vmem:[#allocation10 + $0x170] sm:$0xff] }
 0x815   : >> { %4417 = vmatpush3.bf16.msra.mxu0 %v4414_v7  ;;  %v2324_v7 = vld [vmem:[#allocation10 + $0x70] sm:$0xff] }
 0x816   : >> { %4419 = vmatprep.subr.bf16.mxu0 %v4418_v35  ;;  %v4520_v30 = vpack.c.bf16 %v2324_v7, %v2320_v6  ;;  %v4536_v6 = vpack.c.bf16 %v2356_v0, %v2352_v62 }
 0x819   : >> { %4421 = vmatpush3.bf16.msra.mxu0 %v4418_v35  ;;  %v4522_v35 = vpack.c.bf16 %v2333_v29, %v2329_v24  ;;  %v2360_v24 = vld [vmem:[#allocation10 + $0x190] sm:$0xff] }
 0x81a   : >> { %4423 = vmatprep.subr.bf16.mxu0 %v4422_v38  ;;  %v2364_v29 = vld [vmem:[#allocation10 + $0x1b0] sm:$0xff] }
 0x81b   : >> { %v4540_v36 = vpack.c.bf16 %v2364_v29, %v2360_v24 }
 0x81d   : >> { %4425 = vmatpush3.bf16.msra.mxu0 %v4422_v38  ;;  %v2337_v38 = vld [vmem:[#allocation10 + $0xd8] sm:$0xff] }
 0x81e   : >> { %4427 = vmatprep.subr.bf16.mxu0 %v4426_v41 }
 0x821   : >> { %4429 = vmatpush3.bf16.msra.mxu0 %v4426_v41  ;;  %v4526_v41 = vpack.c.bf16 %v2341_v39, %v2337_v38  ;;  %v2368_v38 = vld [vmem:[#allocation10 + $0x1d0] sm:$0xff] }
 0x822   : >> { %4431 = vmatprep.subr.bf16.mxu0 %v4430_v44  ;;  %v2372_v39 = vld [vmem:[#allocation10 + $0x1f0] sm:$0xff] }
 0x825   : >> { %4433 = vmatpush3.bf16.msra.mxu0 %v4430_v44  ;;  %v2345_v44 = vld [vmem:[#allocation10 + $0x118] sm:$0xff] }
 0x826   : >> { %4435 = vmatprep.subr.bf16.mxu0 %v4434_v47  ;;  %v4530_v46 = vpack.c.bf16 %v2349_v45, %v2345_v44  ;;  %v2376_v44 = vld [vmem:[#allocation10 + $0x210] sm:$0xff] }
 0x827   : >> { %v2380_v45 = vld [vmem:[#allocation10 + $0x230] sm:$0xff] }
 0x829   : >> { %4437 = vmatpush3.bf16.msra.mxu0 %v4434_v47  ;;  %v2344_v47 = vld [vmem:[#allocation10 + $0x110] sm:$0xff] }
 0x82a   : >> { %4515 = vmatprep.subr.bf16.mxu0 %v4514_v51  ;;  %v2357_v51 = vld [vmem:[#allocation10 + $0x178] sm:$0xff]  ;;  %v4532_v59 = vpack.c.bf16 %v2348_v48, %v2344_v47  ;;  %v4548_v47 = vpack.c.bf16 %v2380_v45, %v2376_v44 }
 0x82b   : >> { %v4534_v61 = vpack.c.bf16 %v2357_v51, %v2353_v49  ;;  %v2384_v49 = vld [vmem:[#allocation10 + $0x250] sm:$0xff] }
 0x82c   : >> { %4239 = vmatmul.mubr.f32.vlgmr.msra.gmra.mrb[8].mxu0 %v4205_v63  ;;  %v4528_v63 = vpack.c.bf16 %v2340_v43, %v2336_v42  ;;  %v4544_v42 = vpack.c.bf16 %v2372_v39, %v2368_v38  ;;  %v2388_v51 = vld [vmem:[#allocation10 + $0x270] sm:$0xff] }
 0x82d   : >> { %4517 = vmatpush1.bf16.msra.mxu0 %v4516_v1  ;;  %2601 = vmatprep.mubr.f32.mxu0 %v5743_v57  ;;  %v2361_v1 = vld [vmem:[#allocation10 + $0x198] sm:$0xff]  ;;  %v4552_v62 = vpack.c.bf16 %v2388_v51, %v2384_v49 }
 0x82e   : >> { %4519 = vmatprep.subr.bf16.mxu0 %v4518_v2  ;;  %v2365_v2 = vld [vmem:[#allocation10 + $0x1b8] sm:$0xff] }
 0x82f   : >> { %v4538_v7 = vpack.c.bf16 %v2365_v2, %v2361_v1  ;;  %v2392_v1 = vld [vmem:[#allocation10 + $0x290] sm:$0xff] }
 0x830   : >> { %v2396_v2 = vld [vmem:[#allocation10 + $0x2b0] sm:$0xff] }
 0x831   : >> { %4521 = vmatpush1.bf16.msra.mxu0 %v4520_v30  ;;  %v2369_v30 = vld [vmem:[#allocation10 + $0x1d8] sm:$0xff]  ;;  %v4556_v24 = vpack.c.bf16 %v2396_v2, %v2392_v1 }
 0x832   : >> { %4523 = vmatprep.subr.bf16.mxu0 %v4522_v35  ;;  %v2373_v35 = vld [vmem:[#allocation10 + $0x1f8] sm:$0xff] }
 0x833   : >> { %v4542_v37 = vpack.c.bf16 %v2373_v35, %v2369_v30  ;;  %v2400_v30 = vld [vmem:[#allocation10 + $0x2d0] sm:$0xff] }
 0x834   : >> { %v2404_v35 = vld [vmem:[#allocation10 + $0x2f0] sm:$0xff] }
 0x835   : >> { %4525 = vmatpush1.bf16.msra.mxu0 %v4524_v40  ;;  %v2377_v40 = vld [vmem:[#allocation10 + $0x218] sm:$0xff]  ;;  %v4560_v38 = vpack.c.bf16 %v2404_v35, %v2400_v30 }
 0x836   : >> { %4527 = vmatprep.subr.bf16.mxu0 %v4526_v41  ;;  %v2381_v41 = vld [vmem:[#allocation10 + $0x238] sm:$0xff] }
 0x837   : >> { %v4546_v43 = vpack.c.bf16 %v2381_v41, %v2377_v40  ;;  %v2408_v40 = vld [vmem:[#allocation10 + $0x310] sm:$0xff] }
 0x838   : >> { %v2412_v41 = vld [vmem:[#allocation10 + $0x330] sm:$0xff] }
 0x839   : >> { %4529 = vmatpush1.bf16.msra.mxu0 %v4528_v63  ;;  %v2385_v63 = vld [vmem:[#allocation10 + $0x258] sm:$0xff]  ;;  %v4564_v44 = vpack.c.bf16 %v2412_v41, %v2408_v40  ;;  %v3930_v40 = vld [vmem:[%s6163_s11] ss:$0 sm:$0xff] }
 0x83a   : >> { %4531 = vmatprep.subr.bf16.mxu0 %v4530_v46  ;;  %v2389_v46 = vld [vmem:[#allocation10 + $0x278] sm:$0xff] }
 0x83b   : >> { %v4550_v48 = vpack.c.bf16 %v2389_v46, %v2385_v63  ;;  %v2416_v63 = vld [vmem:[#allocation10 + $0x350] sm:$0xff] }
 0x83c   : >> { %v2420_v46 = vld [vmem:[#allocation10 + $0x370] sm:$0xff] }
 0x83d   : >> { %4533 = vmatpush1.bf16.msra.mxu0 %v4532_v59  ;;  %v2393_v59 = vld [vmem:[#allocation10 + $0x298] sm:$0xff]  ;;  %v4568_v49 = vpack.c.bf16 %v2420_v46, %v2416_v63 }
 0x83e   : >> { %4535 = vmatprep.subr.bf16.mxu0 %v4534_v61  ;;  %v2397_v61 = vld [vmem:[#allocation10 + $0x2b8] sm:$0xff] }
 0x83f   : >> { %v4554_v0 = vpack.c.bf16 %v2397_v61, %v2393_v59  ;;  %v2424_v59 = vld [vmem:[#allocation10 + $0x390] sm:$0xff] }
 0x840   : >> { %v2428_v61 = vld [vmem:[#allocation10 + $0x3b0] sm:$0xff] }
 0x841   : >> { %4537 = vmatpush1.bf16.msra.mxu0 %v4536_v6  ;;  %v2401_v6 = vld [vmem:[#allocation10 + $0x2d8] sm:$0xff]  ;;  %v4572_v1 = vpack.c.bf16 %v2428_v61, %v2424_v59 }
 0x842   : >> { %4539 = vmatprep.subr.bf16.mxu0 %v4538_v7  ;;  %v2405_v7 = vld [vmem:[#allocation10 + $0x2f8] sm:$0xff] }
 0x843   : >> { %v4558_v29 = vpack.c.bf16 %v2405_v7, %v2401_v6  ;;  %v2432_v6 = vld [vmem:[#allocation10 + $0x3d0] sm:$0xff] }
 0x844   : >> { %v2436_v7 = vld [vmem:[#allocation10 + $0x3f0] sm:$0xff] }
 0x845   : >> { %4541 = vmatpush1.bf16.msra.mxu0 %v4540_v36  ;;  %v2409_v36 = vld [vmem:[#allocation10 + $0x318] sm:$0xff]  ;;  %v4576_v35 = vpack.c.bf16 %v2436_v7, %v2432_v6 }
 0x846   : >> { %4543 = vmatprep.subr.bf16.mxu0 %v4542_v37  ;;  %v2413_v37 = vld [vmem:[#allocation10 + $0x338] sm:$0xff] }
 0x847   : >> { %v4562_v39 = vpack.c.bf16 %v2413_v37, %v2409_v36 }
 0x849   : >> { %4545 = vmatpush1.bf16.msra.mxu0 %v4544_v42  ;;  %v2417_v42 = vld [vmem:[#allocation10 + $0x358] sm:$0xff] }
 0x84a   : >> { %4547 = vmatprep.subr.bf16.mxu0 %v4546_v43  ;;  %v2421_v43 = vld [vmem:[#allocation10 + $0x378] sm:$0xff] }
 0x84b   : >> { %v4566_v45 = vpack.c.bf16 %v2421_v43, %v2417_v42 }
 0x84d   : >> { %4549 = vmatpush1.bf16.msra.mxu0 %v4548_v47  ;;  %v2425_v47 = vld [vmem:[#allocation10 + $0x398] sm:$0xff] }
 0x84e   : >> { %4551 = vmatprep.subr.bf16.mxu0 %v4550_v48  ;;  %v2429_v48 = vld [vmem:[#allocation10 + $0x3b8] sm:$0xff] }
 0x84f   : >> { %v4570_v51 = vpack.c.bf16 %v2429_v48, %v2425_v47 }
 0x851   : >> { %4553 = vmatpush1.bf16.msra.mxu0 %v4552_v62  ;;  %v2433_v62 = vld [vmem:[#allocation10 + $0x3d8] sm:$0xff] }
 0x852   : >> { %4555 = vmatprep.subr.bf16.mxu0 %v4554_v0  ;;  %v2437_v0 = vld [vmem:[#allocation10 + $0x3f8] sm:$0xff] }
 0x853   : >> { %v4574_v2 = vpack.c.bf16 %v2437_v0, %v2433_v62 }
 0x855   : >> { %4557 = vmatpush1.bf16.msra.mxu0 %v4556_v24  ;;  %v4079_v24 = vpop.f32.mrb[12].mxu1 }
 0x856   : >> { %4559 = vmatprep.subr.bf16.mxu0 %v4558_v29  ;;  %v4080_v29 = vpop.f32.mrb[13].mxu1 }
 0x857   : >> { %v4081_v30 = vadd.f32 %v4080_v29, %v4079_v24  ;;  %v4082_v36 = vpop.f32.mrb[14].mxu1 }
 0x858   : >> { %v4083_v37 = vpop.f32.mrb[15].mxu1 }
 0x859   : >> { %4561 = vmatpush1.bf16.msra.mxu0 %v4560_v38  ;;  %v4084_v38 = vadd.f32 %v4083_v37, %v4082_v36 }
 0x85a   : >> { %4563 = vmatprep.subr.bf16.mxu0 %v4562_v39 }
 0x85d   : >> { %4565 = vmatpush1.bf16.msra.mxu0 %v4564_v44 }
 0x85e   : >> { %4567 = vmatprep.subr.bf16.mxu0 %v4566_v45 }
 0x861   : >> { %4569 = vmatpush1.bf16.msra.mxu0 %v4568_v49 }
 0x862   : >> { %4571 = vmatprep.subr.bf16.mxu0 %v4570_v51 }
 0x865   : >> { %4573 = vmatpush1.bf16.msra.mxu0 %v4572_v1 }
 0x866   : >> { %4575 = vmatprep.subr.bf16.mxu0 %v4574_v2 }
 0x869   : >> { %4577 = vmatpush1.bf16.msra.mxu0 %v4576_v35 }
 0x86c   : >> { %2602 = vmatmul.mubr.f32.vlgmr.msra.gmra.mrb[10].mxu0 %v5787_v55 }
 0x86d   : >> { %2607 = vmatprep.mubr.f32.mxu0 %v5746_v58 }
 0x870   : >> { %2608 = vmatmul.mubr.f32.gmra.mrb[12].mxu0 %v5785_v54 }
 0x8df   : >> { %v4041_v39 = vpop.f32.mrb[4].mxu0 }
 0x8e0   : >> { %v4042_v41 = vpop.f32.mrb[5].mxu0 }
 0x8e1   : >> { %v4043_v42 = vadd.f32 %v4042_v41, %v4041_v39 }
 0x8e3   : >> { %v1880_v43 = vadd.f32 %v4043_v42, %v3930_v40  ;;  %v4044_v44 = vpop.f32.mrb[6].mxu0 }
 0x8e4   : >> { %v4045_v45 = vpop.f32.mrb[7].mxu0 }
 0x8e5   : >> { %v4046_v63 = vadd.f32 %v4045_v45, %v4044_v44  ;;  %v1955_v46 = vadd.f32 %v4081_v30, %v1880_v43 }
 0x8e7   : >> { %v1885_v47 = vadd.f32 %v4046_v63, %v3930_v40 }
 0x8e9   : >> { %v1960_v48 = vadd.f32 %v4084_v38, %v1885_v47 }
 0x8ff   : >> { %v4240_v49 = vpop.f32.mrb[8].mxu0 }
 0x900   : >> { %v2035_v51 = vadd.f32 %v4240_v49, %v1960_v48  ;;  %v2029_v59 = vpop.f32.mrb[9].mxu0 }
 0x901   : >> { %v2030_v58 = vadd.f32 %v2029_v59, %v1955_v46 }
 0x902   : >> { %v2041_v61 = vmul.f32 0.70710677, %v2035_v51 }
 0x903   : >> { %v2040_v62 = vmul.f32 0.70710677, %v2030_v58 }
 0x904   : >> { %v2047_v0 = vand.u32 2147483647, %v2041_v61  ;;  %vm2043_vm14 = vcmp.ge.f32.partialorder %v2041_v61, 0.0  ;;  %v3931_v61 = vld [vmem:[%s6164_s12] ss:$0 sm:$0xff] }
 0x905   : >> { %v2046_v1 = vand.u32 2147483647, %v2040_v62  ;;  %vm2042_vm3 = vcmp.ge.f32.partialorder %v2040_v62, 0.0 }
 0x906   : >> { %v2049_v2 = vmul.f32 0.3275911, %v2047_v0  ;;  %v2075_v29 = vsub.f32 0.0, %v2047_v0 }
 0x907   : >> { %v2048_v6 = vmul.f32 0.3275911, %v2046_v1  ;;  %v2074_v35 = vsub.f32 0.0, %v2046_v1 }
 0x908   : >> { %v2051_v7 = vadd.f32 1.0, %v2049_v2  ;;  %v2077_v30 = vmul.f32 %v2075_v29, %v2047_v0 }
 0x909   : >> { %v2050_v24 = vadd.f32 1.0, %v2048_v6  ;;  %v2076_v38 = vmul.f32 %v2074_v35, %v2046_v1 }
 0x90a   : >> { %4963 = vrcp.f32 %v2051_v7  ;;  %v2080_v42 = vmul.f32 1.442695, %v2077_v30 }
 0x90b   : >> { %4965 = vrcp.f32 %v2050_v24  ;;  %v2078_v44 = vmul.f32 1.442695, %v2076_v38 }
 0x90c   : >> { %4967 = vpow2.f32 %v2080_v42 }
 0x90d   : >> { %4969 = vpow2.f32 %v2078_v44 }
 0x914   : >> { %v4964_v36 = vpop.eup %4963 }
 0x915   : >> { %v4966_v37 = vpop.eup %4965  ;;  %v2057_v39 = vmul.f32 1.0614054, %v4964_v36 }
 0x916   : >> { %v2056_v40 = vmul.f32 1.0614054, %v4966_v37  ;;  %v4968_v29 = vpop.eup %4967 }
 0x917   : >> { %v2059_v41 = vadd.f32 -1.4531521, %v2057_v39  ;;  %v4970_v30 = vpop.eup %4969 }
 0x918   : >> { %v2058_v43 = vadd.f32 -1.4531521, %v2056_v40 }
 0x919   : >> { %v2061_v45 = vmul.f32 %v4964_v36, %v2059_v41  ;;  %v6191_v41 = vmov -1.0  }
 0x91a   : >> { %v2060_v63 = vmul.f32 %v4966_v37, %v2058_v43  ;;  %v2045_v42 = vsel %vm2043_vm14, 1.0, %v6191_v41  ;;  %v2044_v44 = vsel %vm2042_vm3, 1.0, %v6191_v41 }
 0x91b   : >> { %v2063_v46 = vadd.f32 1.4214138, %v2061_v45 }
 0x91c   : >> { %v2062_v47 = vadd.f32 1.4214138, %v2060_v63 }
 0x91d   : >> { %v2065_v48 = vmul.f32 %v4964_v36, %v2063_v46  ;;  %v2039_v46 = vmul.f32 0.5, %v2035_v51 }
 0x91e   : >> { %v2064_v49 = vmul.f32 %v4966_v37, %v2062_v47 }
 0x91f   : >> { %v2067_v59 = vadd.f32 -0.28449672, %v2065_v48  ;;  %v2038_v48 = vmul.f32 0.5, %v2030_v58 }
 0x920   : >> { %v2066_v2 = vadd.f32 -0.28449672, %v2064_v49 }
 0x921   : >> { %v2069_v6 = vmul.f32 %v4964_v36, %v2067_v59 }
 0x922   : >> { %v2068_v0 = vmul.f32 %v4966_v37, %v2066_v2 }
 0x923   : >> { %v2071_v7 = vadd.f32 0.2548296, %v2069_v6 }
 0x924   : >> { %v2070_v1 = vadd.f32 0.2548296, %v2068_v0 }
 0x925   : >> { %v2073_v24 = vmul.f32 %v4964_v36, %v2071_v7  ;;  %v3932_v7 = vld [vmem:[#allocation6] ss:$0 sm:$0xff] }
 0x926   : >> { %v2072_v35 = vmul.f32 %v4966_v37, %v2070_v1 }
 0x927   : >> { %v2083_v38 = vmul.f32 %v4968_v29, %v2073_v24 }
 0x928   : >> { %v2082_v39 = vmul.f32 %v4970_v30, %v2072_v35 }
 0x929   : >> { %v2085_v40 = vsub.f32 1.0, %v2083_v38 }
 0x92a   : >> { %v2084_v43 = vsub.f32 1.0, %v2082_v39 }
 0x92b   : >> { %v2087_v45 = vmul.f32 %v2085_v40, %v2045_v42 }
 0x92c   : >> { %v2086_v63 = vmul.f32 %v2084_v43, %v2044_v44 }
 0x92d   : >> { %v2089_v47 = vadd.f32 1.0, %v2087_v45 }
 0x92e   : >> { %v2088_v36 = vadd.f32 1.0, %v2086_v63 }
 0x92f   : >> { %v2091_v37 = vmul.f32 %v2089_v47, %v2039_v46 }
 0x930   : >> { %v2090_v62 = vmul.f32 %v2088_v36, %v2038_v48 }
 0x931   : >> { %v2100_v59 = vmul.f32 %v3931_v61, %v2091_v37 }
 0x932   : >> { %v2099_v49 = vmul.f32 %v3931_v61, %v2090_v62 }
 0x933   : >> { %v2103_v2 = vsel %vm945_vm7, %v2100_v59, 0.0 }
 0x934   : >> { %2101 = vadd.xlane.f32.xlu1 %v2099_v49 }
 0x938   : >> { %2104 = vadd.xlane.f32.xlu1 %v2103_v2 }
 0x93f   : >> { %v5828_v6 = vpop.f32.mrb[10].mxu0 }
 0x940   : >> { %v5830_v0 = vpop.f32.mrb[11].mxu0 }
 0x943   : >> { %v5832_v51 = vpop.f32.mrb[12].mxu0 }
 0x944   : >> { %v5834_v58 = vpop.f32.mrb[13].mxu0 }
 0x9c1   : >> { %v2102_v1 = vpop.xlane.xlu1 %2101 }
 0x9c2   : >> { %v2113_v24 = vadd.f32 %v3932_v7, %v2102_v1 }
 0x9c4   : >> { %v2115_v30 = vsel %vm989_vm1, %v2113_v24, -inf }
 0x9c5   : >> { %v2105_v29 = vpop.xlane.xlu1 %2104 }
 0x9c6   : >> { %v2114_v35 = vadd.f32 %v3932_v7, %v2105_v29 }
 0x9c8   : >> { %v2116_v38 = vsel %vm991_vm2, %v2114_v35, -inf }
 0x9c9   : >> { %v2117_v39 = vmax.f32 %v2115_v30, %v2116_v38  ;;  %v2315_v30 = vld [vmem:[#allocation10 + $0x28] sm:$0xff] }
 0x9cb   : >> { %2118 = vmax.xlane.f32.xlu0 %v2117_v39  ;;  %v2310_v39 = vld [vmem:[#allocation10] sm:$0xff] }
 0xa58   : >> { %v2119_v40 = vpop.xlane.xlu0 %2118 }
 0xa59   : >> { %v2120_v42 = vrot.slane %v2119_v40, 4 }
 0xa5b   : >> { %v2121_v43 = vmax.f32 %v2119_v40, %v2120_v42  ;;  %v2314_v40 = vld [vmem:[#allocation10 + $0x20] sm:$0xff]  ;;  %v2319_v42 = vld [vmem:[#allocation10 + $0x48] sm:$0xff] }
 0xa5d   : >> { %v2122_v44 = vrot.slane %v2121_v43, 2 }
 0xa5f   : >> { %v2123_v45 = vmax.f32 %v2121_v43, %v2122_v44  ;;  %v2323_v43 = vld [vmem:[#allocation10 + $0x68] sm:$0xff]  ;;  %v4452_v44 = vpack.c.bf16 %v2314_v40, %v2310_v39  ;;  %v2342_v39 = vld [vmem:[#allocation10 + $0x100] sm:$0xff] }
 0xa60   : >> { %v2351_v40 = vld [vmem:[#allocation10 + $0x148] sm:$0xff] }
 0xa61   : >> { %v2124_v63 = vrot.slane %v2123_v45, 1 }
 0xa63   : >> { %v2125_v46 = vmax.f32 %v2123_v45, %v2124_v63  ;;  %v4454_v45 = vpack.c.bf16 %v2323_v43, %v2319_v42  ;;  %v2318_v63 = vld [vmem:[#allocation10 + $0x40] sm:$0xff]  ;;  %v2355_v42 = vld [vmem:[#allocation10 + $0x168] sm:$0xff] }
 0xa65   : >> { %4860 = vpush %v2125_v46  ;;  %v2322_v46 = vld [vmem:[#allocation10 + $0x60] sm:$0xff] }
 0xa96   : >> { %s4861_s0 = spop %4860 }
 0xa97   : >> { %s2127_s25 = smax.f32 %s5240_s24, %s4861_s0 }
 0xa98   : >> { %v2128_v47 = vstv %s2127_s25  ;;  %s2137_s1 = ssub.f32 0.0, %s2127_s25 }
 0xa99   : >> { %v2129_v48 = vsub.f32 %v2113_v24, %v2128_v47  ;;  %v2130_v36 = vsub.f32 %v2114_v35, %v2128_v47  ;;  %v2311_v35 = vld [vmem:[#allocation10 + $0x8] sm:$0xff] }
 0xa9a   : >> { %v2138_v61 = vstv %s2137_s1  ;;  %v4450_v38 = vpack.c.bf16 %v2315_v30, %v2311_v35  ;;  %v2327_v47 = vld [vmem:[#allocation10 + $0x88] sm:$0xff] }
 0xa9b   : >> { %v2131_v37 = vmul.f32 1.442695, %v2129_v48  ;;  %v2133_v62 = vmul.f32 1.442695, %v2130_v36  ;;  %v2139_v49 = vmul.f32 1.442695, %v2138_v61  ;;  %v4456_v36 = vpack.c.bf16 %v2322_v46, %v2318_v63 }
 0xa9c   : >> { %v2331_v48 = vld [vmem:[#allocation10 + $0xa8] sm:$0xff]  ;;  %v2326_v61 = vld [vmem:[#allocation10 + $0x80] sm:$0xff] }
 0xa9d   : >> { %4971 = vpow2.f32 %v2131_v37  ;;  %v2330_v37 = vld [vmem:[#allocation10 + $0xa0] sm:$0xff]  ;;  %v2343_v35 = vld [vmem:[#allocation10 + $0x108] sm:$0xff] }
 0xa9e   : >> { %4973 = vpow2.f32 %v2133_v62  ;;  %v2335_v62 = vld [vmem:[#allocation10 + $0xc8] sm:$0xff]  ;;  %v2354_v63 = vld [vmem:[#allocation10 + $0x160] sm:$0xff] }
 0xa9f   : >> { %4975 = vpow2.f32 %v2139_v49  ;;  %v2339_v49 = vld [vmem:[#allocation10 + $0xe8] sm:$0xff] }
 0xaa0   : >> { %v2347_v30 = vld [vmem:[#allocation10 + $0x128] sm:$0xff] }
 0xaa1   : >> { %v2359_v46 = vld [vmem:[#allocation10 + $0x188] sm:$0xff] }
 0xaa7   : >> { %v4972_v59 = vpop.eup %4971 }
 0xaa8   : >> { %v4974_v2 = vpop.eup %4973  ;;  %v5839_v7 = vmul.f32 %v4972_v59, %v6253_v13  ;;  %v4460_v59 = vpack.c.bf16 %v2330_v37, %v2326_v61  ;;  %v2362_v61 = vld [vmem:[#allocation10 + $0x1a0] sm:$0xff]  ;;  %v2367_v37 = vld [vmem:[#allocation10 + $0x1c8] sm:$0xff] }
 0xaa9   : >> { %v4976_v1 = vpop.eup %4975  ;;  %v5842_v29 = vmul.f32 %v4974_v2, %v6252_v16  ;;  %v4462_v2 = vpack.c.bf16 %v2339_v49, %v2335_v62  ;;  %v2371_v62 = vld [vmem:[#allocation10 + $0x1e8] sm:$0xff] }
 0xaaa   : >> { %4862 = vpush %v4976_v1  ;;  %v2334_v1 = vld [vmem:[#allocation10 + $0xc0] sm:$0xff] }
 0xaab   : >> { %v4438_v24 = vpack.c.bf16 %v5842_v29, %v5839_v7 }
 0xaad   : >> { %4440 = vmatprep.subr.msk.bf16.mxu1 %vm5751_vm10, %v4438_v24 }
 0xaae   : >> { %4443 = vmatpush3.bf16.msk.msra.mxu1 %vm5751_vm10, %v4438_v24 }
 0xaaf   : >> { %4446 = vmatprep.subr.msk.bf16.mxu1 %vm5751_vm10, %v4438_v24 }
 0xab1   : >> { %4246 = vmatmul.mubr.msk.f32.vlgmr.msra.gmra.mrb[16].mxu1 %vm1023_vm9, %v5767_v26 }
 0xab2   : >> { %4449 = vmatpush3.bf16.msk.msra.mxu1 %vm5751_vm10, %v4438_v24  ;;  %4252 = vmatprep.mubr.msk.f32.mxu1 %vm1023_vm9, %v5769_v27  ;;  %v4458_v27 = vpack.c.bf16 %v2331_v48, %v2327_v47  ;;  %v2338_v24 = vld [vmem:[#allocation10 + $0xe0] sm:$0xff]  ;;  %v2363_v47 = vld [vmem:[#allocation10 + $0x1a8] sm:$0xff] }
 0xab3   : >> { %4451 = vmatprep.subr.bf16.mxu1 %v4450_v38  ;;  %v4466_v38 = vpack.c.bf16 %v2347_v30, %v2343_v35  ;;  %v2379_v35 = vld [vmem:[#allocation10 + $0x228] sm:$0xff] }
 0xab9   : >> { %4253 = vmatmul.mubr.msk.f32.vlgmr.msra.gmra.mrb[16].mxu1 %vm1023_vm9, %v5781_v28  ;;  %v4464_v28 = vpack.c.bf16 %v2338_v24, %v2334_v1  ;;  %v2370_v1 = vld [vmem:[#allocation10 + $0x1e0] sm:$0xff]  ;;  %v2375_v24 = vld [vmem:[#allocation10 + $0x208] sm:$0xff] }
 0xaba   : >> { %4453 = vmatpush1.bf16.msra.mxu1 %v4452_v44  ;;  %2524 = vmatprep.mubr.f32.mxu1 %v5743_v57  ;;  %v2346_v57 = vld [vmem:[#allocation10 + $0x120] sm:$0xff]  ;;  %v4470_v44 = vpack.c.bf16 %v2355_v42, %v2351_v40  ;;  %v2387_v40 = vld [vmem:[#allocation10 + $0x268] sm:$0xff] }
 0xabb   : >> { %4455 = vmatprep.subr.bf16.mxu1 %v4454_v45  ;;  %v4468_v43 = vpack.c.bf16 %v2346_v57, %v2342_v39  ;;  %v2350_v45 = vld [vmem:[#allocation10 + $0x140] sm:$0xff]  ;;  %v2383_v57 = vld [vmem:[#allocation10 + $0x248] sm:$0xff] }
 0xabc   : >> { %v4472_v48 = vpack.c.bf16 %v2354_v63, %v2350_v45  ;;  %v2378_v39 = vld [vmem:[#allocation10 + $0x220] sm:$0xff]  ;;  %v2391_v63 = vld [vmem:[#allocation10 + $0x288] sm:$0xff] }
 0xabd   : >> { %v2386_v45 = vld [vmem:[#allocation10 + $0x260] sm:$0xff] }
 0xabe   : >> { %4457 = vmatpush1.bf16.msra.mxu1 %v4456_v36  ;;  %v4474_v36 = vpack.c.bf16 %v2363_v47, %v2359_v46  ;;  %v2395_v46 = vld [vmem:[#allocation10 + $0x2a8] sm:$0xff] }
 0xabf   : >> { %4459 = vmatprep.subr.bf16.mxu1 %v4458_v27  ;;  %v2358_v27 = vld [vmem:[#allocation10 + $0x180] sm:$0xff] }
 0xac0   : >> { %v4476_v49 = vpack.c.bf16 %v2362_v61, %v2358_v27  ;;  %v2394_v27 = vld [vmem:[#allocation10 + $0x2a0] sm:$0xff]  ;;  %v2399_v61 = vld [vmem:[#allocation10 + $0x2c8] sm:$0xff] }
 0xac2   : >> { %4461 = vmatpush1.bf16.msra.mxu1 %v4460_v59  ;;  %v4478_v59 = vpack.c.bf16 %v2371_v62, %v2367_v37  ;;  %v2403_v37 = vld [vmem:[#allocation10 + $0x2e8] sm:$0xff] }
 0xac3   : >> { %4463 = vmatprep.subr.bf16.mxu1 %v4462_v2  ;;  %v2366_v2 = vld [vmem:[#allocation10 + $0x1c0] sm:$0xff] }
 0xac4   : >> { %v4480_v30 = vpack.c.bf16 %v2370_v1, %v2366_v2  ;;  %v2402_v2 = vld [vmem:[#allocation10 + $0x2e0] sm:$0xff]  ;;  %v2407_v1 = vld [vmem:[#allocation10 + $0x308] sm:$0xff] }
 0xac6   : >> { %4465 = vmatpush1.bf16.msra.mxu1 %v4464_v28  ;;  %v4482_v28 = vpack.c.bf16 %v2379_v35, %v2375_v24  ;;  %v2411_v24 = vld [vmem:[#allocation10 + $0x328] sm:$0xff] }
 0xac7   : >> { %4467 = vmatprep.subr.bf16.mxu1 %v4466_v38  ;;  %v2374_v38 = vld [vmem:[#allocation10 + $0x200] sm:$0xff] }
 0xac8   : >> { %v4484_v42 = vpack.c.bf16 %v2378_v39, %v2374_v38  ;;  %v2410_v38 = vld [vmem:[#allocation10 + $0x320] sm:$0xff]  ;;  %v2415_v39 = vld [vmem:[#allocation10 + $0x348] sm:$0xff] }
 0xaca   : >> { %4469 = vmatpush1.bf16.msra.mxu1 %v4468_v43  ;;  %v4486_v43 = vpack.c.bf16 %v2387_v40, %v2383_v57  ;;  %v2419_v57 = vld [vmem:[#allocation10 + $0x368] sm:$0xff] }
 0xacb   : >> { %4471 = vmatprep.subr.bf16.mxu1 %v4470_v44  ;;  %v2382_v44 = vld [vmem:[#allocation10 + $0x240] sm:$0xff] }
 0xacc   : >> { %v4488_v47 = vpack.c.bf16 %v2386_v45, %v2382_v44  ;;  %v2418_v44 = vld [vmem:[#allocation10 + $0x360] sm:$0xff]  ;;  %v2423_v45 = vld [vmem:[#allocation10 + $0x388] sm:$0xff] }
 0xace   : >> { %4473 = vmatpush1.bf16.msra.mxu1 %v4472_v48  ;;  %v4490_v48 = vpack.c.bf16 %v2395_v46, %v2391_v63  ;;  %v2427_v63 = vld [vmem:[#allocation10 + $0x3a8] sm:$0xff] }
 0xacf   : >> { %4475 = vmatprep.subr.bf16.mxu1 %v4474_v36  ;;  %v2390_v36 = vld [vmem:[#allocation10 + $0x280] sm:$0xff] }
 0xad0   : >> { %v4492_v62 = vpack.c.bf16 %v2394_v27, %v2390_v36  ;;  %v2426_v36 = vld [vmem:[#allocation10 + $0x3a0] sm:$0xff]  ;;  %v2431_v27 = vld [vmem:[#allocation10 + $0x3c8] sm:$0xff] }
 0xad2   : >> { %4477 = vmatpush1.bf16.msra.mxu1 %v4476_v49  ;;  %v4494_v49 = vpack.c.bf16 %v2403_v37, %v2399_v61  ;;  %v2435_v61 = vld [vmem:[#allocation10 + $0x3e8] sm:$0xff] }
 0xad3   : >> { %4479 = vmatprep.subr.bf16.mxu1 %v4478_v59  ;;  %v2398_v59 = vld [vmem:[#allocation10 + $0x2c0] sm:$0xff] }
 0xad4   : >> { %v4496_v35 = vpack.c.bf16 %v2402_v2, %v2398_v59  ;;  %v2434_v59 = vld [vmem:[#allocation10 + $0x3e0] sm:$0xff] }
 0xad6   : >> { %4481 = vmatpush1.bf16.msra.mxu1 %v4480_v30  ;;  %v4498_v30 = vpack.c.bf16 %v2411_v24, %v2407_v1  ;;  %v5041_v1 = vld [vmem:[%s5677_s3 + $0x8] sm:$0x3]  ;;  %v2831_v24 = vld [vmem:[#allocation12 + $0x8] sm:$0xff] }
 0xad7   : >> { %4483 = vmatprep.subr.bf16.mxu1 %v4482_v28  ;;  %v2406_v28 = vld [vmem:[#allocation10 + $0x300] sm:$0xff] }
 0xad8   : >> { %v4500_v40 = vpack.c.bf16 %v2410_v38, %v2406_v28  ;;  %v2837_v38 = vld [vmem:[#allocation12 + $0x38] sm:$0xff] }
 0xada   : >> { %4485 = vmatpush1.bf16.msra.mxu1 %v4484_v42  ;;  %v4502_v42 = vpack.c.bf16 %v2419_v57, %v2415_v39  ;;  %v2830_v39 = vld [vmem:[#allocation12] sm:$0xff] }
 0xadb   : >> { %4487 = vmatprep.subr.bf16.mxu1 %v4486_v43  ;;  %v2414_v43 = vld [vmem:[#allocation10 + $0x340] sm:$0xff]  ;;  %s4863_s29 = spop %4862 }
 0xadc   : >> { %v4504_v46 = vpack.c.bf16 %v2418_v44, %v2414_v43  ;;  %v2834_v57 = vld [vmem:[#allocation12 + $0x20] sm:$0xff]  ;;  %v2832_v43 = vld [vmem:[#allocation12 + $0x10] sm:$0xff] }
 0xadd   : >> { %v2836_v44 = vld [vmem:[#allocation12 + $0x30] sm:$0xff] }
 0xade   : >> { %4489 = vmatpush1.bf16.msra.mxu1 %v4488_v47  ;;  %v4506_v47 = vpack.c.bf16 %v2427_v63, %v2423_v45  ;;  %v2839_v45 = vld [vmem:[#allocation12 + $0x48] sm:$0xff]  ;;  %v4708_v63 = vpack.c.bf16 %v2836_v44, %v2832_v43 }
 0xadf   : >> { %4491 = vmatprep.subr.bf16.mxu1 %v4490_v48  ;;  %v2422_v48 = vld [vmem:[#allocation10 + $0x380] sm:$0xff]  ;;  %v2855_v44 = vld [vmem:[#allocation12 + $0xc8] sm:$0xff] }
 0xae0   : >> { %v4508_v37 = vpack.c.bf16 %v2426_v36, %v2422_v48  ;;  %v2845_v48 = vld [vmem:[#allocation12 + $0x78] sm:$0xff] }
 0xae2   : >> { %4493 = vmatpush1.bf16.msra.mxu1 %v4492_v62  ;;  %v4510_v62 = vpack.c.bf16 %v2435_v61, %v2431_v27  ;;  %v2838_v61 = vld [vmem:[#allocation12 + $0x40] sm:$0xff] }
 0xae3   : >> { %4495 = vmatprep.subr.bf16.mxu1 %v4494_v49  ;;  %v2430_v49 = vld [vmem:[#allocation10 + $0x3c0] sm:$0xff] }
 0xae4   : >> { %v4512_v2 = vpack.c.bf16 %v2434_v59, %v2430_v49  ;;  %v2844_v59 = vld [vmem:[#allocation12 + $0x70] sm:$0xff] }
 0xae6   : >> { %4497 = vmatpush1.bf16.msra.mxu1 %v4496_v35  ;;  %v2835_v35 = vld [vmem:[#allocation12 + $0x28] sm:$0xff] }
 0xae7   : >> { %4499 = vmatprep.subr.bf16.mxu1 %v4498_v30  ;;  %v2833_v30 = vld [vmem:[#allocation12 + $0x18] sm:$0xff]  ;;  %v4578_v28 = vpack.c.bf16 %v2835_v35, %v2831_v24 }
 0xaea   : >> { %4501 = vmatpush1.bf16.msra.mxu1 %v4500_v40  ;;  %v4706_v40 = vpack.c.bf16 %v2837_v38, %v2833_v30  ;;  %v2849_v30 = vld [vmem:[#allocation12 + $0x98] sm:$0xff]  ;;  %v2846_v38 = vld [vmem:[#allocation12 + $0x80] sm:$0xff] }
 0xaeb   : >> { %4503 = vmatprep.subr.bf16.mxu1 %v4502_v42  ;;  %v4580_v42 = vpack.c.bf16 %v2834_v57, %v2830_v39  ;;  %v2850_v57 = vld [vmem:[#allocation12 + $0xa0] sm:$0xff] }
 0xaec   : >> { %4707 = vmatprep.subr.bf16.mxu0 %v4706_v40  ;;  %v2848_v40 = vld [vmem:[#allocation12 + $0x90] sm:$0xff]  ;;  %v4588_v43 = vpack.c.bf16 %v2850_v57, %v2846_v38  ;;  %v2866_v38 = vld [vmem:[#allocation12 + $0x120] sm:$0xff] }
 0xaed   : >> { %4709 = vmatpush1.bf16.msra.mxu0 %v4708_v63  ;;  %v2857_v63 = vld [vmem:[#allocation12 + $0xd8] sm:$0xff] }
 0xaee   : >> { %4505 = vmatpush1.bf16.msra.mxu1 %v4504_v46  ;;  %v2843_v46 = vld [vmem:[#allocation12 + $0x68] sm:$0xff] }
 0xaef   : >> { %4507 = vmatprep.subr.bf16.mxu1 %v4506_v47  ;;  %v2841_v47 = vld [vmem:[#allocation12 + $0x58] sm:$0xff]  ;;  %v4582_v36 = vpack.c.bf16 %v2843_v46, %v2839_v45  ;;  %v2859_v45 = vld [vmem:[#allocation12 + $0xe8] sm:$0xff] }
 0xaf0   : >> { %v4710_v27 = vpack.c.bf16 %v2845_v48, %v2841_v47  ;;  %v4590_v47 = vpack.c.bf16 %v2859_v45, %v2855_v44  ;;  %v2861_v48 = vld [vmem:[#allocation12 + $0xf8] sm:$0xff]  ;;  %v2871_v44 = vld [vmem:[#allocation12 + $0x148] sm:$0xff] }
 0xaf1   : >> { %v2875_v45 = vld [vmem:[#allocation12 + $0x168] sm:$0xff] }
 0xaf2   : >> { %4509 = vmatpush1.bf16.msra.mxu1 %v4508_v37  ;;  %v2842_v37 = vld [vmem:[#allocation12 + $0x60] sm:$0xff]  ;;  %4711 = vmatprep.subr.bf16.mxu0 %v4710_v27 }
 0xaf3   : >> { %4511 = vmatprep.subr.bf16.mxu1 %v4510_v62  ;;  %v2840_v62 = vld [vmem:[#allocation12 + $0x50] sm:$0xff]  ;;  %v4584_v49 = vpack.c.bf16 %v2842_v37, %v2838_v61  ;;  %v2854_v27 = vld [vmem:[#allocation12 + $0xc0] sm:$0xff] }
 0xaf4   : >> { %v4712_v24 = vpack.c.bf16 %v2844_v59, %v2840_v62  ;;  %v2858_v61 = vld [vmem:[#allocation12 + $0xe0] sm:$0xff]  ;;  %v2856_v37 = vld [vmem:[#allocation12 + $0xd0] sm:$0xff] }
 0xaf5   : >> { %v4592_v62 = vpack.c.bf16 %v2858_v61, %v2854_v27 }
 0xaf6   : >> { %4513 = vmatpush1.bf16.msra.mxu1 %v4512_v2  ;;  %v2847_v2 = vld [vmem:[#allocation12 + $0x88] sm:$0xff]  ;;  %4713 = vmatpush1.bf16.msra.mxu0 %v4712_v24  ;;  %v2865_v24 = vld [vmem:[#allocation12 + $0x118] sm:$0xff] }
 0xaf7   : >> { %4579 = vmatprep.subr.bf16.mxu1 %v4578_v28  ;;  %v2853_v28 = vld [vmem:[#allocation12 + $0xb8] sm:$0xff] }
 0xaf8   : >> { %v4714_v39 = vpack.c.bf16 %v2853_v28, %v2849_v30  ;;  %v2869_v30 = vld [vmem:[#allocation12 + $0x138] sm:$0xff]  ;;  %v2862_v28 = vld [vmem:[#allocation12 + $0x100] sm:$0xff] }
 0xaf9   : >> { %2525 = vmatmul.mubr.f32.vlgmr.msra.gmra.mrb[18].mxu1 %v5787_v55  ;;  %v4596_v57 = vpack.c.bf16 %v2866_v38, %v2862_v28  ;;  %v2882_v28 = vld [vmem:[#allocation12 + $0x1a0] sm:$0xff] }
 0xafa   : >> { %2530 = vmatprep.mubr.f32.mxu1 %v5041_v1  ;;  %4581 = vmatpush1.bf16.msra.mxu1 %v4580_v42  ;;  %v2851_v1 = vld [vmem:[#allocation12 + $0xa8] sm:$0xff]  ;;  %v2852_v42 = vld [vmem:[#allocation12 + $0xb0] sm:$0xff] }
 0xafb   : >> { %4583 = vmatprep.subr.bf16.mxu1 %v4582_v36  ;;  %v4586_v35 = vpack.c.bf16 %v2851_v1, %v2847_v2  ;;  %v4716_v46 = vpack.c.bf16 %v2852_v42, %v2848_v40  ;;  %4715 = vmatprep.subr.bf16.mxu0 %v4714_v39  ;;  %v4718_v36 = vpack.c.bf16 %v2861_v48, %v2857_v63  ;;  %v2863_v2 = vld [vmem:[#allocation12 + $0x108] sm:$0xff]  ;;  %v2864_v40 = vld [vmem:[#allocation12 + $0x110] sm:$0xff]  ;;  %v2873_v63 = vld [vmem:[#allocation12 + $0x158] sm:$0xff] }
 0xafc   : >> { %v2867_v1 = vld [vmem:[#allocation12 + $0x128] sm:$0xff]  ;;  %v4722_v39 = vpack.c.bf16 %v2869_v30, %v2865_v24  ;;  %v2868_v42 = vld [vmem:[#allocation12 + $0x130] sm:$0xff]  ;;  %v2870_v48 = vld [vmem:[#allocation12 + $0x140] sm:$0xff] }
 0xafd   : >> { %2531 = vmatmul.mubr.f32.gmra.mrb[20].mxu1 %v5785_v54  ;;  %4717 = vmatpush1.bf16.msra.mxu0 %v4716_v46  ;;  %v4598_v46 = vpack.c.bf16 %v2875_v45, %v2871_v44  ;;  %v2878_v30 = vld [vmem:[#allocation12 + $0x180] sm:$0xff]  ;;  %v2891_v44 = vld [vmem:[#allocation12 + $0x1e8] sm:$0xff]  ;;  %v2889_v45 = vld [vmem:[#allocation12 + $0x1d8] sm:$0xff] }
 0xafe   : >> { %4585 = vmatpush1.bf16.msra.mxu1 %v4584_v49  ;;  %4719 = vmatprep.subr.bf16.mxu0 %v4718_v36  ;;  %v2860_v49 = vld [vmem:[#allocation12 + $0xf0] sm:$0xff]  ;;  %v2874_v36 = vld [vmem:[#allocation12 + $0x160] sm:$0xff] }
 0xaff   : >> { %4587 = vmatprep.subr.bf16.mxu1 %v4586_v35  ;;  %v4720_v59 = vpack.c.bf16 %v2860_v49, %v2856_v37  ;;  %v4594_v35 = vpack.c.bf16 %v2867_v1, %v2863_v2  ;;  %v4600_v61 = vpack.c.bf16 %v2874_v36, %v2870_v48  ;;  %v2872_v37 = vld [vmem:[#allocation12 + $0x150] sm:$0xff]  ;;  %v2883_v2 = vld [vmem:[#allocation12 + $0x1a8] sm:$0xff]  ;;  %v2881_v1 = vld [vmem:[#allocation12 + $0x198] sm:$0xff] }
 0xb00   : >> { %v2890_v48 = vld [vmem:[#allocation12 + $0x1e0] sm:$0xff] }
 0xb01   : >> { %4721 = vmatpush1.bf16.msra.mxu0 %v4720_v59  ;;  %v2879_v59 = vld [vmem:[#allocation12 + $0x188] sm:$0xff] }
 0xb02   : >> { %4589 = vmatpush1.bf16.msra.mxu1 %v4588_v43  ;;  %v4724_v43 = vpack.c.bf16 %v2868_v42, %v2864_v40  ;;  %4723 = vmatprep.subr.bf16.mxu0 %v4722_v39  ;;  %v4602_v24 = vpack.c.bf16 %v2883_v2, %v2879_v59  ;;  %v4604_v39 = vpack.c.bf16 %v2882_v28, %v2878_v30  ;;  %v2884_v40 = vld [vmem:[#allocation12 + $0x1b0] sm:$0xff]  ;;  %v2899_v59 = vld [vmem:[#allocation12 + $0x228] sm:$0xff]  ;;  %v2897_v2 = vld [vmem:[#allocation12 + $0x218] sm:$0xff] }
 0xb03   : >> { %4591 = vmatprep.subr.bf16.mxu1 %v4590_v47  ;;  %v2877_v47 = vld [vmem:[#allocation12 + $0x178] sm:$0xff]  ;;  %v2898_v30 = vld [vmem:[#allocation12 + $0x220] sm:$0xff] }
 0xb04   : >> { %v4726_v27 = vpack.c.bf16 %v2877_v47, %v2873_v63  ;;  %v2886_v47 = vld [vmem:[#allocation12 + $0x1c0] sm:$0xff] }
 0xb05   : >> { %4725 = vmatpush1.bf16.msra.mxu0 %v4724_v43  ;;  %v2887_v43 = vld [vmem:[#allocation12 + $0x1c8] sm:$0xff] }
 0xb06   : >> { %4593 = vmatpush1.bf16.msra.mxu1 %v4592_v62  ;;  %v2876_v62 = vld [vmem:[#allocation12 + $0x170] sm:$0xff]  ;;  %4727 = vmatprep.subr.bf16.mxu0 %v4726_v27  ;;  %v4606_v63 = vpack.c.bf16 %v2891_v44, %v2887_v43  ;;  %v4608_v27 = vpack.c.bf16 %v2890_v48, %v2886_v47  ;;  %v2907_v43 = vld [vmem:[#allocation12 + $0x268] sm:$0xff]  ;;  %v2905_v44 = vld [vmem:[#allocation12 + $0x258] sm:$0xff] }
 0xb07   : >> { %4595 = vmatprep.subr.bf16.mxu1 %v4594_v35  ;;  %v4728_v49 = vpack.c.bf16 %v2876_v62, %v2872_v37  ;;  %v2885_v35 = vld [vmem:[#allocation12 + $0x1b8] sm:$0xff]  ;;  %v2892_v37 = vld [vmem:[#allocation12 + $0x1f0] sm:$0xff]  ;;  %v2906_v47 = vld [vmem:[#allocation12 + $0x260] sm:$0xff] }
 0xb08   : >> { %v4730_v38 = vpack.c.bf16 %v2885_v35, %v2881_v1  ;;  %v2894_v35 = vld [vmem:[#allocation12 + $0x200] sm:$0xff] }
 0xb09   : >> { %4729 = vmatpush1.bf16.msra.mxu0 %v4728_v49  ;;  %v2895_v49 = vld [vmem:[#allocation12 + $0x208] sm:$0xff] }
 0xb0a   : >> { %4597 = vmatpush1.bf16.msra.mxu1 %v4596_v57  ;;  %v2880_v57 = vld [vmem:[#allocation12 + $0x190] sm:$0xff]  ;;  %4731 = vmatprep.subr.bf16.mxu0 %v4730_v38  ;;  %v4610_v1 = vpack.c.bf16 %v2899_v59, %v2895_v49  ;;  %v4612_v38 = vpack.c.bf16 %v2898_v30, %v2894_v35  ;;  %v2915_v49 = vld [vmem:[#allocation12 + $0x2a8] sm:$0xff]  ;;  %v2913_v59 = vld [vmem:[#allocation12 + $0x298] sm:$0xff] }
 0xb0b   : >> { %4599 = vmatprep.subr.bf16.mxu1 %v4598_v46  ;;  %v4732_v42 = vpack.c.bf16 %v2884_v40, %v2880_v57  ;;  %v2893_v46 = vld [vmem:[#allocation12 + $0x1f8] sm:$0xff]  ;;  %v2900_v57 = vld [vmem:[#allocation12 + $0x230] sm:$0xff]  ;;  %v2914_v35 = vld [vmem:[#allocation12 + $0x2a0] sm:$0xff] }
 0xb0c   : >> { %v4734_v36 = vpack.c.bf16 %v2893_v46, %v2889_v45  ;;  %v2902_v46 = vld [vmem:[#allocation12 + $0x240] sm:$0xff] }
 0xb0d   : >> { %4733 = vmatpush1.bf16.msra.mxu0 %v4732_v42  ;;  %v2903_v42 = vld [vmem:[#allocation12 + $0x248] sm:$0xff] }
 0xb0e   : >> { %4601 = vmatpush1.bf16.msra.mxu1 %v4600_v61  ;;  %v2888_v61 = vld [vmem:[#allocation12 + $0x1d0] sm:$0xff]  ;;  %4735 = vmatprep.subr.bf16.mxu0 %v4734_v36  ;;  %v4614_v45 = vpack.c.bf16 %v2907_v43, %v2903_v42  ;;  %v4616_v36 = vpack.c.bf16 %v2906_v47, %v2902_v46  ;;  %v2923_v42 = vld [vmem:[#allocation12 + $0x2e8] sm:$0xff]  ;;  %v2921_v43 = vld [vmem:[#allocation12 + $0x2d8] sm:$0xff] }
 0xb0f   : >> { %4603 = vmatprep.subr.bf16.mxu1 %v4602_v24  ;;  %v4736_v62 = vpack.c.bf16 %v2892_v37, %v2888_v61  ;;  %v2901_v24 = vld [vmem:[#allocation12 + $0x238] sm:$0xff]  ;;  %v2908_v61 = vld [vmem:[#allocation12 + $0x270] sm:$0xff]  ;;  %v2922_v46 = vld [vmem:[#allocation12 + $0x2e0] sm:$0xff] }
 0xb10   : >> { %v4738_v28 = vpack.c.bf16 %v2901_v24, %v2897_v2  ;;  %v2910_v24 = vld [vmem:[#allocation12 + $0x280] sm:$0xff] }
 0xb11   : >> { %4737 = vmatpush1.bf16.msra.mxu0 %v4736_v62  ;;  %v2911_v62 = vld [vmem:[#allocation12 + $0x288] sm:$0xff] }
 0xb12   : >> { %4605 = vmatpush1.bf16.msra.mxu1 %v4604_v39  ;;  %v2896_v39 = vld [vmem:[#allocation12 + $0x210] sm:$0xff]  ;;  %4739 = vmatprep.subr.bf16.mxu0 %v4738_v28  ;;  %v4618_v2 = vpack.c.bf16 %v2915_v49, %v2911_v62  ;;  %v4620_v28 = vpack.c.bf16 %v2914_v35, %v2910_v24  ;;  %v2931_v62 = vld [vmem:[#allocation12 + $0x328] sm:$0xff]  ;;  %v2929_v49 = vld [vmem:[#allocation12 + $0x318] sm:$0xff] }
 0xb13   : >> { %4607 = vmatprep.subr.bf16.mxu1 %v4606_v63  ;;  %v4740_v40 = vpack.c.bf16 %v2900_v57, %v2896_v39  ;;  %v2909_v63 = vld [vmem:[#allocation12 + $0x278] sm:$0xff]  ;;  %v2916_v39 = vld [vmem:[#allocation12 + $0x2b0] sm:$0xff]  ;;  %v2930_v24 = vld [vmem:[#allocation12 + $0x320] sm:$0xff] }
 0xb14   : >> { %v4742_v48 = vpack.c.bf16 %v2909_v63, %v2905_v44  ;;  %v2918_v63 = vld [vmem:[#allocation12 + $0x2c0] sm:$0xff] }
 0xb15   : >> { %4741 = vmatpush1.bf16.msra.mxu0 %v4740_v40  ;;  %v2919_v40 = vld [vmem:[#allocation12 + $0x2c8] sm:$0xff] }
 0xb16   : >> { %4609 = vmatpush1.bf16.msra.mxu1 %v4608_v27  ;;  %v2904_v27 = vld [vmem:[#allocation12 + $0x250] sm:$0xff]  ;;  %4743 = vmatprep.subr.bf16.mxu0 %v4742_v48  ;;  %v4622_v44 = vpack.c.bf16 %v2923_v42, %v2919_v40  ;;  %v4624_v48 = vpack.c.bf16 %v2922_v46, %v2918_v63  ;;  %v2939_v40 = vld [vmem:[#allocation12 + $0x368] sm:$0xff]  ;;  %v2937_v42 = vld [vmem:[#allocation12 + $0x358] sm:$0xff] }
 0xb17   : >> { %4611 = vmatprep.subr.bf16.mxu1 %v4610_v1  ;;  %v4744_v37 = vpack.c.bf16 %v2908_v61, %v2904_v27  ;;  %v2917_v1 = vld [vmem:[#allocation12 + $0x2b8] sm:$0xff]  ;;  %v2924_v27 = vld [vmem:[#allocation12 + $0x2f0] sm:$0xff]  ;;  %v2938_v63 = vld [vmem:[#allocation12 + $0x360] sm:$0xff] }
 0xb18   : >> { %v4746_v30 = vpack.c.bf16 %v2917_v1, %v2913_v59  ;;  %v2926_v1 = vld [vmem:[#allocation12 + $0x300] sm:$0xff] }
 0xb19   : >> { %4745 = vmatpush1.bf16.msra.mxu0 %v4744_v37  ;;  %v2927_v37 = vld [vmem:[#allocation12 + $0x308] sm:$0xff] }
 0xb1a   : >> { %4613 = vmatpush1.bf16.msra.mxu1 %v4612_v38  ;;  %v2912_v38 = vld [vmem:[#allocation12 + $0x290] sm:$0xff]  ;;  %4747 = vmatprep.subr.bf16.mxu0 %v4746_v30  ;;  %v4626_v59 = vpack.c.bf16 %v2931_v62, %v2927_v37  ;;  %v4628_v30 = vpack.c.bf16 %v2930_v24, %v2926_v1  ;;  %v2947_v37 = vld [vmem:[#allocation12 + $0x3a8] sm:$0xff]  ;;  %v2945_v62 = vld [vmem:[#allocation12 + $0x398] sm:$0xff] }
 0xb1b   : >> { %4615 = vmatprep.subr.bf16.mxu1 %v4614_v45  ;;  %v4748_v57 = vpack.c.bf16 %v2916_v39, %v2912_v38  ;;  %v2925_v45 = vld [vmem:[#allocation12 + $0x2f8] sm:$0xff]  ;;  %v2932_v38 = vld [vmem:[#allocation12 + $0x330] sm:$0xff]  ;;  %v2946_v1 = vld [vmem:[#allocation12 + $0x3a0] sm:$0xff] }
 0xb1c   : >> { %v4750_v47 = vpack.c.bf16 %v2925_v45, %v2921_v43  ;;  %v2934_v45 = vld [vmem:[#allocation12 + $0x340] sm:$0xff] }
 0xb1d   : >> { %4749 = vmatpush1.bf16.msra.mxu0 %v4748_v57  ;;  %v2935_v57 = vld [vmem:[#allocation12 + $0x348] sm:$0xff] }
 0xb1e   : >> { %4617 = vmatpush1.bf16.msra.mxu1 %v4616_v36  ;;  %v2920_v36 = vld [vmem:[#allocation12 + $0x2d0] sm:$0xff]  ;;  %4751 = vmatprep.subr.bf16.mxu0 %v4750_v47  ;;  %v4630_v43 = vpack.c.bf16 %v2939_v40, %v2935_v57  ;;  %v4632_v47 = vpack.c.bf16 %v2938_v63, %v2934_v45  ;;  %v2955_v57 = vld [vmem:[#allocation12 + $0x3e8] sm:$0xff]  ;;  %v2953_v40 = vld [vmem:[#allocation12 + $0x3d8] sm:$0xff] }
 0xb1f   : >> { %4619 = vmatprep.subr.bf16.mxu1 %v4618_v2  ;;  %v4752_v61 = vpack.c.bf16 %v2924_v27, %v2920_v36  ;;  %v2933_v2 = vld [vmem:[#allocation12 + $0x338] sm:$0xff]  ;;  %v2940_v36 = vld [vmem:[#allocation12 + $0x370] sm:$0xff]  ;;  %v2954_v45 = vld [vmem:[#allocation12 + $0x3e0] sm:$0xff] }
 0xb20   : >> { %v4754_v35 = vpack.c.bf16 %v2933_v2, %v2929_v49  ;;  %v2942_v2 = vld [vmem:[#allocation12 + $0x380] sm:$0xff] }
 0xb21   : >> { %4753 = vmatpush1.bf16.msra.mxu0 %v4752_v61  ;;  %v2943_v61 = vld [vmem:[#allocation12 + $0x388] sm:$0xff] }
 0xb22   : >> { %4621 = vmatpush1.bf16.msra.mxu1 %v4620_v28  ;;  %v2928_v28 = vld [vmem:[#allocation12 + $0x310] sm:$0xff]  ;;  %4755 = vmatprep.subr.bf16.mxu0 %v4754_v35  ;;  %v4634_v49 = vpack.c.bf16 %v2947_v37, %v2943_v61  ;;  %v4636_v35 = vpack.c.bf16 %v2946_v1, %v2942_v2  ;;  %v2963_v61 = vld [vmem:[#allocation12 + $0x428] sm:$0xff]  ;;  %v2961_v37 = vld [vmem:[#allocation12 + $0x418] sm:$0xff]  ;;  %v2295_v2 = vstv %s4863_s29 }
 0xb23   : >> { %4623 = vmatprep.subr.bf16.mxu1 %v4622_v44  ;;  %v4756_v39 = vpack.c.bf16 %v2932_v38, %v2928_v28  ;;  %v2941_v44 = vld [vmem:[#allocation12 + $0x378] sm:$0xff]  ;;  %v2948_v28 = vld [vmem:[#allocation12 + $0x3b0] sm:$0xff]  ;;  %v2297_v1 = vadd.f32 %v2295_v2, %v5842_v29 }
 0xb24   : >> { %v4758_v46 = vpack.c.bf16 %v2941_v44, %v2937_v42  ;;  %v2950_v44 = vld [vmem:[#allocation12 + $0x3c0] sm:$0xff] }
 0xb25   : >> { %4757 = vmatpush1.bf16.msra.mxu0 %v4756_v39  ;;  %v2951_v39 = vld [vmem:[#allocation12 + $0x3c8] sm:$0xff] }
 0xb26   : >> { %4625 = vmatpush1.bf16.msra.mxu1 %v4624_v48  ;;  %v2936_v48 = vld [vmem:[#allocation12 + $0x350] sm:$0xff]  ;;  %4759 = vmatprep.subr.bf16.mxu0 %v4758_v46  ;;  %v4638_v42 = vpack.c.bf16 %v2955_v57, %v2951_v39  ;;  %v4640_v46 = vpack.c.bf16 %v2954_v45, %v2950_v44 }
 0xb27   : >> { %4627 = vmatprep.subr.bf16.mxu1 %v4626_v59  ;;  %v4760_v27 = vpack.c.bf16 %v2940_v36, %v2936_v48  ;;  %v2949_v59 = vld [vmem:[#allocation12 + $0x3b8] sm:$0xff]  ;;  %v2956_v48 = vld [vmem:[#allocation12 + $0x3f0] sm:$0xff] }
 0xb28   : >> { %v4762_v24 = vpack.c.bf16 %v2949_v59, %v2945_v62 }
 0xb29   : >> { %4761 = vmatpush1.bf16.msra.mxu0 %v4760_v27  ;;  %v2959_v27 = vld [vmem:[#allocation12 + $0x408] sm:$0xff] }
 0xb2a   : >> { %4629 = vmatpush1.bf16.msra.mxu1 %v4628_v30  ;;  %v2944_v30 = vld [vmem:[#allocation12 + $0x390] sm:$0xff]  ;;  %4763 = vmatprep.subr.bf16.mxu0 %v4762_v24  ;;  %v4642_v62 = vpack.c.bf16 %v2963_v61, %v2959_v27  ;;  %v2296_v24 = vadd.f32 %v2295_v2, %v5839_v7 }
 0xb2b   : >> { %4631 = vmatprep.subr.bf16.mxu1 %v4630_v43  ;;  %v4764_v38 = vpack.c.bf16 %v2948_v28, %v2944_v30  ;;  %v2957_v43 = vld [vmem:[#allocation12 + $0x3f8] sm:$0xff] }
 0xb2c   : >> { %v4766_v63 = vpack.c.bf16 %v2957_v43, %v2953_v40  ;;  %v1010_v40 = vld [vmem:[#allocation3] sm:$0x1] }
 0xb2d   : >> { %4765 = vmatpush1.bf16.msra.mxu0 %v4764_v38  ;;  %vm3618_vm5 = vcmp.gt.f32.partialorder %v1010_v40, 0.5 }
 0xb2e   : >> { %4633 = vmatpush1.bf16.msra.mxu1 %v4632_v47  ;;  %v2952_v47 = vld [vmem:[#allocation12 + $0x3d0] sm:$0xff]  ;;  %4767 = vmatprep.subr.bf16.mxu0 %v4766_v63  ;;  %v3619_v44 = vsel %vm3618_vm5, 1, %v5236_v50 }
 0xb2f   : >> { %4635 = vmatprep.subr.bf16.mxu1 %v4634_v49  ;;  %v4768_v36 = vpack.c.bf16 %v2956_v48, %v2952_v47  ;;  %v2965_v49 = vld [vmem:[#allocation12 + $0x438] sm:$0xff]  ;;  %v5872_v48 = vrot.slane %v3619_v44, %v5706_v22 }
 0xb30   : >> { %v4770_v59 = vpack.c.bf16 %v2965_v49, %v2961_v37  ;;  %v5042_v37 = vld [vmem:[#allocation2 + $0x8] sm:$0x3]  ;;  %v5043_v49 = vld [vmem:[#allocation2] sm:$0xff] }
 0xb31   : >> { %4769 = vmatpush1.bf16.msra.mxu0 %v4768_v36  ;;  %vm3630_vm8 = vcmp.eq.s32.totalorder %v5872_v48, 1 }
 0xb32   : >> { %4637 = vmatpush1.bf16.msra.mxu1 %v4636_v35  ;;  %4771 = vmatprep.subr.bf16.mxu0 %v4770_v59 }
 0xb33   : >> { %4639 = vmatprep.subr.bf16.mxu1 %v4638_v42 }
 0xb36   : >> { %4641 = vmatpush1.bf16.msra.mxu1 %v4640_v46 }
 0xb37   : >> { %4643 = vmatprep.subr.bf16.mxu1 %v4642_v62 }
 0xb8c   : >> { %v4254_v35 = vpop.f32.mrb[16].mxu1 }
 0xb8d   : >> { %v4840_v30 = vadd.f32 %v4254_v35, %v2297_v1  ;;  %v2286_v28 = vpop.f32.mrb[17].mxu1  ;;  %v5883_v1 = vld [vmem:[%s6269_s30] sm:$0xf]  ;;  %v5241_v35 = vmov 0.0  }
 0xb8e   : >> { %v4841_v38 = vadd.f32 %v2296_v24, %v2286_v28 }
 0xb8f   : >> { %v2303_v39 = vadd.f32 4e-08, %v4840_v30 }
 0xb90   : >> { %v2302_v57 = vadd.f32 4e-08, %v4841_v38 }
 0xb91   : >> { %4977 = vrcp.f32 %v2303_v39 }
 0xb92   : >> { %4979 = vrcp.f32 %v2302_v57 }
 0xb9b   : >> { %v4978_v42 = vpop.eup %4977 }
 0xb9c   : >> { %v4980_v43 = vpop.eup %4979  ;;  %v2307_v45 = vmul.f32 %v4978_v42, %v5842_v29  ;;  %v6189_v29 = vsub.s32 3, %v5511_v4 }
 0xb9d   : >> { %v2305_v63 = vmul.f32 %v4980_v43, %v5839_v7 }
 0xb9e   : >> { %v2309_v46 = vmul.f32 %v2307_v45, %v6252_v16  ;;  %v5891_v39 = vrot.slane %v5883_v1, %v6189_v29 }
 0xb9f   : >> { %v2308_v47 = vmul.f32 %v2305_v63, %v6253_v13 }
 0xba0   : >> { %v3613_v36 = vsub.f32 1.0, %v2309_v46  ;;  %v5896_v43 = vadd.f32 %v5830_v0, %v5891_v39  ;;  %v6190_v0 = vsub.s32 1, %v5511_v4 }
 0xba1   : >> { %v5874_v27 = vpack.c.bf16 %v2309_v46, %v2308_v47  ;;  %v3612_v61 = vsub.f32 1.0, %v2308_v47 }
 0xba2   : >> { %v3615_v62 = vmul.f32 %v5042_v37, %v3613_v36  ;;  %v5899_v63 = vmul.f32 0.70710677, %v5896_v43 }
 0xba3   : >> { %v3614_v59 = vmul.f32 %v5043_v49, %v3612_v61 }
 0xba4   : >> { %v3617_v50 = vmul.f32 %v3615_v62, %v6267_v17  ;;  %v2649_v36 = vand.u32 2147483647, %v5899_v63  ;;  %vm2633_vm3 = vcmp.ge.f32.partialorder %v5899_v63, 0.0  ;;  %v2967_v63 = vld [vmem:[#allocation12 + $0x448] sm:$0xff] }
 0xba5   : >> { %v3616_v7 = vmul.f32 %v3614_v59, %v6268_v11 }
 0xba6   : >> { %v3632_v2 = vsel %vm3630_vm8, %v3617_v50, %v5042_v37  ;;  %v2657_v62 = vmul.f32 0.3275911, %v2649_v36  ;;  %v2443_v50 = vrot.slane %v5883_v1, %v5706_v22  ;;  %v2761_v41 = vsub.f32 0.0, %v2649_v36 }
 0xba7   : >> { %v3631_v24 = vsel %vm3630_vm8, %v3616_v7, %v5043_v49  ;;  %vm3634_vm12 = vcmp.gt.f32.partialorder %v3632_v2, 0.1  ;;  %3652 = vst.msk [vmem:[#allocation2 + $0x8] sm:$0x3] %vm991_vm2, %v3632_v2  ;;  %v2447_v7 = vrot.slane %v5883_v1, %v6190_v0 }
 0xba8   : >> { %vm3633_vm13 = vcmp.gt.f32.partialorder %v3631_v24, 0.1  ;;  %v3636_v30 = vsel %vm3634_vm12, 1.0, %v5241_v35  ;;  %3651 = vst.msk [vmem:[#allocation2] sm:$0xff] %vm989_vm1, %v3631_v24  ;;  %v2665_v59 = vadd.f32 1.0, %v2657_v62 }
 0xba9   : >> { %v3635_v28 = vsel %vm3633_vm13, 1.0, %v5241_v35  ;;  %v3638_v38 = vsel %vm991_vm2, %v3636_v30, 0.0 }
 0xbaa   : >> { %v3637_v57 = vsel %vm989_vm1, %v3635_v28, 0.0  ;;  %4981 = vrcp.f32 %v2665_v59 }
 0xbab   : >> { %v3639_v40 = vadd.f32 %v3638_v38, %v3637_v57 }
 0xbad   : >> { %v3640_v42 = vrot.slane %v3639_v40, 4 }
 0xbaf   : >> { %v3641_v44 = vadd.f32 %v3640_v42, %v3639_v40 }
 0xbb1   : >> { %v3642_v45 = vrot.slane %v3641_v44, 2 }
 0xbb3   : >> { %v3643_v46 = vadd.f32 %v3642_v45, %v3641_v44 }
 0xbb4   : >> { %v5910_v2 = vpop.eup %4981 }
 0xbb5   : >> { %v3644_v47 = vrot.slane %v3643_v46, 1  ;;  %v2689_v38 = vmul.f32 1.0614054, %v5910_v2 }
 0xbb7   : >> { %v3645_v61 = vadd.f32 %v3644_v47, %v3643_v46 }
 0xbb9   : >> { %v3950_v37 = vadd.f32 -2.0, %v3645_v61 }
 0xbbb   : >> { %vm3647_vm14 = vcmp.le.f32.partialorder %v3950_v37, 1.0  ;;  %v2697_v37 = vadd.f32 -1.4531521, %v2689_v38  ;;  %v6199_v38 = vsub.s32 2, %v5511_v4 }
 0xbbc   : >> { %v3648_v49 = vsel %vm3647_vm14, 0.0, %v5237_v52 }
 0xbbd   : >> { %3653 = vst.msk [vmem:[#allocation3] sm:$0x1] %vm993_vm0, %v3648_v49 }
 0xbcc   : >> { %v2526_v24 = vpop.f32.mrb[18].mxu1 }
 0xbcd   : >> { %v5912_v35 = vadd.f32 %v2526_v24, %v2443_v50  ;;  %v2528_v30 = vpop.f32.mrb[19].mxu1 }
 0xbce   : >> { %v5914_v52 = vadd.f32 %v2528_v30, %v2447_v7 }
 0xbcf   : >> { %v5917_v28 = vmul.f32 0.70710677, %v5912_v35 }
 0xbd0   : >> { %v5921_v57 = vmul.f32 0.70710677, %v5914_v52  ;;  %v2532_v40 = vpop.f32.mrb[20].mxu1 }
 0xbd1   : >> { %v2646_v42 = vand.u32 2147483647, %v5917_v28  ;;  %v5924_v44 = vadd.f32 %v2532_v40, %v2443_v50  ;;  %v2534_v45 = vpop.f32.mrb[21].mxu1  ;;  %v2705_v50 = vmul.f32 %v5910_v2, %v2697_v37  ;;  %vm2630_vm5 = vcmp.ge.f32.partialorder %v5917_v28, 0.0 }
 0xbd2   : >> { %v2647_v46 = vand.u32 2147483647, %v5921_v57  ;;  %v5927_v47 = vadd.f32 %v2534_v45, %v2447_v7  ;;  %vm2631_vm8 = vcmp.ge.f32.partialorder %v5921_v57, 0.0 }
 0xbd3   : >> { %v2654_v61 = vmul.f32 0.3275911, %v2646_v42  ;;  %v5930_v49 = vmul.f32 0.70710677, %v5924_v44  ;;  %v2713_v0 = vadd.f32 1.4214138, %v2705_v50 }
 0xbd4   : >> { %v2655_v62 = vmul.f32 0.3275911, %v2647_v46  ;;  %v5933_v24 = vmul.f32 0.70710677, %v5927_v47  ;;  %v2759_v8 = vsub.f32 0.0, %v2647_v46 }
 0xbd5   : >> { %v2662_v59 = vadd.f32 1.0, %v2654_v61  ;;  %v2650_v3 = vand.u32 2147483647, %v5930_v49  ;;  %v2758_v61 = vsub.f32 0.0, %v2646_v42  ;;  %v2721_v37 = vmul.f32 %v5910_v2, %v2713_v0 }
 0xbd6   : >> { %v2663_v30 = vadd.f32 1.0, %v2655_v62  ;;  %v2651_v7 = vand.u32 2147483647, %v5933_v24  ;;  %v2451_v62 = vrot.slane %v5883_v1, %v6199_v38  ;;  %v2767_v11 = vmul.f32 %v2759_v8, %v2647_v46 }
 0xbd7   : >> { %4983 = vrcp.f32 %v2662_v59  ;;  %v2658_v40 = vmul.f32 0.3275911, %v2650_v3  ;;  %v2769_v59 = vmul.f32 %v2761_v41, %v2649_v36  ;;  %v2766_v9 = vmul.f32 %v2758_v61, %v2646_v42 }
 0xbd8   : >> { %4985 = vrcp.f32 %v2663_v30  ;;  %v2659_v29 = vmul.f32 0.3275911, %v2651_v7  ;;  %v2762_v12 = vsub.f32 0.0, %v2650_v3  ;;  %v5944_v50 = vadd.f32 %v5828_v6, %v2451_v62 }
 0xbd9   : >> { %v2666_v45 = vadd.f32 1.0, %v2658_v40  ;;  %v2780_v13 = vmul.f32 1.442695, %v2769_v59  ;;  %v2774_v15 = vmul.f32 1.442695, %v2766_v9  ;;  %v2763_v16 = vsub.f32 0.0, %v2651_v7 }
 0xbda   : >> { %v2667_v5 = vadd.f32 1.0, %v2659_v29  ;;  %v2729_v29 = vadd.f32 -0.28449672, %v2721_v37  ;;  %v2776_v41 = vmul.f32 1.442695, %v2767_v11  ;;  %v2770_v36 = vmul.f32 %v2762_v12, %v2650_v3 }
 0xbdb   : >> { %4987 = vrcp.f32 %v2666_v45  ;;  %v5949_v42 = vmul.f32 0.70710677, %v5944_v50  ;;  %v5954_v61 = vadd.f32 %v5832_v51, %v2451_v62  ;;  %v5958_v9 = vadd.f32 %v5834_v58, %v5891_v39 }
 0xbdc   : >> { %4989 = vrcp.f32 %v2667_v5  ;;  %v2737_v6 = vmul.f32 %v5910_v2, %v2729_v29  ;;  %v2771_v3 = vmul.f32 %v2763_v16, %v2651_v7  ;;  %v2782_v59 = vmul.f32 1.442695, %v2770_v36 }
 0xbdd   : >> { %4991 = vpow2.f32 %v2780_v13  ;;  %v5964_v13 = vand.u32 2147483647, %v5949_v42  ;;  %v5968_v39 = vmul.f32 0.70710677, %v5954_v61  ;;  %vm2634_vm12 = vcmp.ge.f32.partialorder %v5930_v49, 0.0 }
 0xbde   : >> { %4993 = vpow2.f32 %v2774_v15  ;;  %v2745_v58 = vadd.f32 0.2548296, %v2737_v6  ;;  %v2784_v16 = vmul.f32 1.442695, %v2771_v3  ;;  %vm2635_vm13 = vcmp.ge.f32.partialorder %v5933_v24, 0.0 }
 0xbdf   : >> { %4995 = vpow2.f32 %v2776_v41  ;;  %vm2632_vm14 = vcmp.ge.f32.partialorder %v5949_v42, 0.0  ;;  %v3084_v42 = vld [vmem:[#allocation12 + $0x7f0] sm:$0xff] }
 0xbe0   : >> { %4997 = vpow2.f32 %v2782_v59  ;;  %v2753_v6 = vmul.f32 %v5910_v2, %v2745_v58 }
 0xbe1   : >> { %v4984_v30 = vpop.eup %4983  ;;  %4999 = vpow2.f32 %v2784_v16 }
 0xbe2   : >> { %v4986_v40 = vpop.eup %4985  ;;  %v2686_v10 = vmul.f32 1.0614054, %v4984_v30 }
 0xbe3   : >> { %v2687_v45 = vmul.f32 1.0614054, %v4986_v40 }
 0xbe4   : >> { %v2694_v14 = vadd.f32 -1.4531521, %v2686_v10 }
 0xbe5   : >> { %v2695_v1 = vadd.f32 -1.4531521, %v2687_v45  ;;  %v5946_v5 = vpop.eup %4987 }
 0xbe6   : >> { %v2702_v0 = vmul.f32 %v4984_v30, %v2694_v14  ;;  %v2690_v46 = vmul.f32 1.0614054, %v5946_v5  ;;  %v5960_v14 = vpop.eup %4989 }
 0xbe7   : >> { %v2703_v8 = vmul.f32 %v4986_v40, %v2695_v1  ;;  %v2691_v45 = vmul.f32 1.0614054, %v5960_v14 }
 0xbe8   : >> { %v2710_v10 = vadd.f32 1.4214138, %v2702_v0  ;;  %v2698_v12 = vadd.f32 -1.4531521, %v2690_v46  ;;  %v5971_v0 = vmul.f32 0.70710677, %v5958_v9 }
 0xbe9   : >> { %v2711_v11 = vadd.f32 1.4214138, %v2703_v8  ;;  %v2699_v15 = vadd.f32 -1.4531521, %v2691_v45  ;;  %v4992_v45 = vpop.eup %4991 }
 0xbea   : >> { %v2718_v37 = vmul.f32 %v4984_v30, %v2710_v10  ;;  %v2706_v62 = vmul.f32 %v5946_v5, %v2698_v12  ;;  %v2656_v12 = vmul.f32 0.3275911, %v5964_v13  ;;  %v5981_v59 = vand.u32 2147483647, %v5971_v0 }
 0xbeb   : >> { %v2719_v51 = vmul.f32 %v4986_v40, %v2711_v11  ;;  %v2707_v36 = vmul.f32 %v5960_v14, %v2699_v15  ;;  %v4994_v15 = vpop.eup %4993  ;;  %v2793_v58 = vmul.f32 %v4992_v45, %v2753_v6  ;;  %v6270_v6 = vmov -1.0  }
 0xbec   : >> { %v2726_v29 = vadd.f32 -0.28449672, %v2718_v37  ;;  %v2714_v1 = vadd.f32 1.4214138, %v2706_v62  ;;  %v2641_v57 = vsel %vm2633_vm3, 1.0, %v6270_v6  ;;  %vm2637_vm3 = vcmp.ge.f32.partialorder %v5971_v0, 0.0 }
 0xbed   : >> { %v2727_v7 = vadd.f32 -0.28449672, %v2719_v51  ;;  %v2715_v11 = vadd.f32 1.4214138, %v2707_v36  ;;  %v5978_v51 = vand.u32 2147483647, %v5968_v39 }
 0xbee   : >> { %v2734_v41 = vmul.f32 %v4984_v30, %v2726_v29  ;;  %v2722_v46 = vmul.f32 %v5946_v5, %v2714_v1  ;;  %v4996_v1 = vpop.eup %4995  ;;  %v2664_v36 = vadd.f32 1.0, %v2656_v12  ;;  %v2801_v28 = vsub.f32 1.0, %v2793_v58  ;;  %v2960_v58 = vld [vmem:[#allocation12 + $0x410] sm:$0xff] }
 0xbef   : >> { %v2735_v8 = vmul.f32 %v4986_v40, %v2727_v7  ;;  %v2723_v29 = vmul.f32 %v5960_v14, %v2715_v11 }
 0xbf0   : >> { %v2742_v10 = vadd.f32 0.2548296, %v2734_v41  ;;  %v2730_v37 = vadd.f32 -0.28449672, %v2722_v46  ;;  %5001 = vrcp.f32 %v2664_v36  ;;  %v2969_v36 = vld [vmem:[#allocation12 + $0x458] sm:$0xff] }
 0xbf1   : >> { %v2743_v3 = vadd.f32 0.2548296, %v2735_v8  ;;  %v2731_v41 = vadd.f32 -0.28449672, %v2723_v29  ;;  %v2639_v29 = vsel %vm2631_vm8, 1.0, %v6270_v6  ;;  %v4774_v21 = vpack.c.bf16 %v2973_v18, %v2969_v36  ;;  %v2980_v36 = vld [vmem:[#allocation12 + $0x4b0] sm:$0xff] }
 0xbf2   : >> { %v2750_v62 = vmul.f32 %v4984_v30, %v2742_v10  ;;  %v2738_v2 = vmul.f32 %v5946_v5, %v2730_v37  ;;  %v2660_v30 = vmul.f32 0.3275911, %v5978_v51  ;;  %v2661_v10 = vmul.f32 0.3275911, %v5981_v59 }
 0xbf3   : >> { %v2751_v7 = vmul.f32 %v4986_v40, %v2743_v3  ;;  %v2739_v11 = vmul.f32 %v5960_v14, %v2731_v41  ;;  %v2638_v3 = vsel %vm2630_vm5, 1.0, %v6270_v6  ;;  %v2619_v18 = vmul.f32 0.5, %v5927_v47  ;;  %v2989_v47 = vld [vmem:[#allocation12 + $0x4f8] sm:$0xff] }
 0xbf4   : >> { %v2790_v16 = vmul.f32 %v4994_v15, %v2750_v62  ;;  %v2746_v46 = vadd.f32 0.2548296, %v2738_v2  ;;  %v4998_v62 = vpop.eup %4997  ;;  %v2958_v2 = vld [vmem:[#allocation12 + $0x400] sm:$0xff]  ;;  %v2668_v41 = vadd.f32 1.0, %v2660_v30  ;;  %v2642_v30 = vsel %vm2634_vm12, 1.0, %v6270_v6 }
 0xbf5   : >> { %v2791_v8 = vmul.f32 %v4996_v1, %v2751_v7  ;;  %v2747_v15 = vadd.f32 0.2548296, %v2739_v11  ;;  %v2962_v1 = vld [vmem:[#allocation12 + $0x420] sm:$0xff]  ;;  %v5000_v17 = vpop.eup %4999  ;;  %v2971_v11 = vld [vmem:[#allocation12 + $0x468] sm:$0xff]  ;;  %vm2636_vm5 = vcmp.ge.f32.partialorder %v5968_v39, 0.0 }
 0xbf6   : >> { %v2798_v40 = vsub.f32 1.0, %v2790_v16  ;;  %v2754_v45 = vmul.f32 %v5946_v5, %v2746_v46  ;;  %v2964_v46 = vld [vmem:[#allocation12 + $0x430] sm:$0xff]  ;;  %v4646_v20 = vpack.c.bf16 %v2971_v11, %v2967_v63  ;;  %v2978_v63 = vld [vmem:[#allocation12 + $0x4a0] sm:$0xff]  ;;  %v2644_v0 = vsel %vm2636_vm5, 1.0, %v6270_v6 }
 0xbf7   : >> { %v2799_v37 = vsub.f32 1.0, %v2791_v8  ;;  %v2669_v8 = vadd.f32 1.0, %v2661_v10  ;;  %v2755_v38 = vmul.f32 %v5960_v14, %v2747_v15  ;;  %v2976_v11 = vld [vmem:[#allocation12 + $0x490] sm:$0xff] }
 0xbf8   : >> { %v2806_v12 = vmul.f32 %v2798_v40, %v2638_v3  ;;  %v2794_v16 = vmul.f32 %v4998_v62, %v2754_v45  ;;  %v2615_v40 = vmul.f32 0.5, %v5914_v52  ;;  %v4644_v45 = vpack.c.bf16 %v2962_v1, %v2958_v2  ;;  %v2966_v52 = vld [vmem:[#allocation12 + $0x440] sm:$0xff]  ;;  %v2979_v2 = vld [vmem:[#allocation12 + $0x4a8] sm:$0xff]  ;;  %v2977_v1 = vld [vmem:[#allocation12 + $0x498] sm:$0xff] }
 0xbf9   : >> { %v2807_v7 = vmul.f32 %v2799_v37, %v2639_v29  ;;  %v2809_v37 = vmul.f32 %v2801_v28, %v2641_v57  ;;  %v2614_v29 = vmul.f32 0.5, %v5912_v35  ;;  %v2795_v10 = vmul.f32 %v5000_v17, %v2755_v38  ;;  %v2968_v28 = vld [vmem:[#allocation12 + $0x450] sm:$0xff]  ;;  %v2975_v38 = vld [vmem:[#allocation12 + $0x488] sm:$0xff] }
 0xbfa   : >> { %v2814_v5 = vadd.f32 1.0, %v2806_v12  ;;  %v2802_v19 = vsub.f32 1.0, %v2794_v16  ;;  %v4772_v62 = vpack.c.bf16 %v2964_v46, %v2960_v58  ;;  %v2970_v16 = vld [vmem:[#allocation12 + $0x460] sm:$0xff]  ;;  %v2972_v57 = vld [vmem:[#allocation12 + $0x470] sm:$0xff]  ;;  %5003 = vrcp.f32 %v2669_v8  ;;  %v2981_v58 = vld [vmem:[#allocation12 + $0x4b8] sm:$0xff] }
 0xbfb   : >> { %v2815_v3 = vadd.f32 1.0, %v2807_v7  ;;  %v2803_v7 = vsub.f32 1.0, %v2795_v10  ;;  %v2643_v35 = vsel %vm2635_vm13, 1.0, %v6270_v6  ;;  %v4776_v24 = vpack.c.bf16 %v2972_v57, %v2968_v28  ;;  %v2974_v46 = vld [vmem:[#allocation12 + $0x480] sm:$0xff]  ;;  %v2991_v28 = vld [vmem:[#allocation12 + $0x508] sm:$0xff] }
 0xbfc   : >> { %v2810_v12 = vmul.f32 %v2802_v19, %v2642_v30  ;;  %v2822_v15 = vmul.f32 %v2814_v5, %v2614_v29  ;;  %v4648_v19 = vpack.c.bf16 %v2970_v16, %v2966_v52  ;;  %5005 = vrcp.f32 %v2668_v41  ;;  %v2983_v29 = vld [vmem:[#allocation12 + $0x4c8] sm:$0xff]  ;;  %v2986_v52 = vld [vmem:[#allocation12 + $0x4e0] sm:$0xff]  ;;  %v2988_v16 = vld [vmem:[#allocation12 + $0x4f0] sm:$0xff] }
 0xbfd   : >> { %v2823_v14 = vmul.f32 %v2815_v3, %v2615_v40  ;;  %v2811_v17 = vmul.f32 %v2803_v7, %v2643_v35  ;;  %v2817_v8 = vadd.f32 1.0, %v2809_v37  ;;  %v6007_v40 = vpop.eup %5001  ;;  %v2618_v3 = vmul.f32 0.5, %v5924_v44  ;;  %v2987_v41 = vld [vmem:[#allocation12 + $0x4e8] sm:$0xff]  ;;  %v2982_v44 = vld [vmem:[#allocation12 + $0x4c0] sm:$0xff]  ;;  %v2984_v7 = vld [vmem:[#allocation12 + $0x4d0] sm:$0xff] }
 0xbfe   : >> { %v2818_v49 = vadd.f32 1.0, %v2810_v12  ;;  %v2617_v30 = vmul.f32 0.5, %v5896_v43  ;;  %v4780_v12 = vpack.c.bf16 %v2980_v36, %v2976_v11  ;;  %v2995_v57 = vld [vmem:[#allocation12 + $0x528] sm:$0xff]  ;;  %v2993_v35 = vld [vmem:[#allocation12 + $0x518] sm:$0xff] }
 0xbff   : >> { %3172 = vmatprep.mubr.f32.mxu1 %v2823_v14  ;;  %3326 = vmatprep.mubr.f32.mxu0 %v2823_v14  ;;  %v2819_v5 = vadd.f32 1.0, %v2811_v17  ;;  %v2985_v14 = vld [vmem:[#allocation12 + $0x4d8] sm:$0xff] }
 0xc00   : >> { %3173 = vmatmul.mubr.f32.vlgmr.msra.gmra.mrb[22].mxu1 %v2822_v15  ;;  %3327 = vmatmul.mubr.f32.vlgmr.msra.gmra.mrb[14].mxu0 %v2822_v15  ;;  %v2825_v37 = vmul.f32 %v2817_v8, %v2617_v30  ;;  %v4654_v15 = vpack.c.bf16 %v2987_v41, %v2983_v29  ;;  %v4782_v43 = vpack.c.bf16 %v2989_v47, %v2985_v14  ;;  %v2997_v17 = vld [vmem:[#allocation12 + $0x538] sm:$0xff]  ;;  %v2992_v8 = vld [vmem:[#allocation12 + $0x510] sm:$0xff]  ;;  %v2998_v14 = vld [vmem:[#allocation12 + $0x540] sm:$0xff] }
 0xc01   : >> { %4645 = vmatpush1.bf16.msra.mxu1 %v4644_v45  ;;  %4773 = vmatpush1.bf16.msra.mxu0 %v4772_v62  ;;  %v2827_v10 = vmul.f32 %v2819_v5, %v2619_v18  ;;  %v2826_v45 = vmul.f32 %v2818_v49, %v2618_v3  ;;  %v4652_v62 = vpack.c.bf16 %v2978_v63, %v2974_v46  ;;  %v2999_v46 = vld [vmem:[#allocation12 + $0x548] sm:$0xff]  ;;  %v3001_v11 = vld [vmem:[#allocation12 + $0x558] sm:$0xff]  ;;  %v3002_v47 = vld [vmem:[#allocation12 + $0x560] sm:$0xff] }
 0xc02   : >> { %4647 = vmatprep.subr.bf16.mxu1 %v4646_v20  ;;  %4775 = vmatprep.subr.bf16.mxu0 %v4774_v21  ;;  %v4650_v20 = vpack.c.bf16 %v2979_v2, %v2975_v38  ;;  %v4778_v21 = vpack.c.bf16 %v2981_v58, %v2977_v1  ;;  %v4784_v38 = vpack.c.bf16 %v2988_v16, %v2984_v7  ;;  %v2990_v2 = vld [vmem:[#allocation12 + $0x500] sm:$0xff]  ;;  %v2996_v58 = vld [vmem:[#allocation12 + $0x530] sm:$0xff]  ;;  %v3003_v3 = vld [vmem:[#allocation12 + $0x568] sm:$0xff] }
 0xc03   : >> { %3178 = vmatprep.mubr.f32.mxu1 %v2827_v10  ;;  %3332 = vmatprep.mubr.f32.mxu0 %v2827_v10  ;;  %v2994_v1 = vld [vmem:[#allocation12 + $0x520] sm:$0xff]  ;;  %v4658_v18 = vpack.c.bf16 %v2995_v57, %v2991_v28  ;;  %v4786_v5 = vpack.c.bf16 %v2997_v17, %v2993_v35  ;;  %v3005_v36 = vld [vmem:[#allocation12 + $0x578] sm:$0xff]  ;;  %v4788_v41 = vpack.c.bf16 %v2996_v58, %v2992_v8 }
 0xc04   : >> { %3179 = vmatmul.mubr.f32.gmra.mrb[24].mxu1 %v2826_v45  ;;  %3333 = vmatmul.mubr.f32.gmra.mrb[16].mxu0 %v2826_v45  ;;  %v6011_v49 = vpop.eup %5003  ;;  %v4660_v10 = vpack.c.bf16 %v2994_v1, %v2990_v2  ;;  %v4662_v45 = vpack.c.bf16 %v3003_v3, %v2999_v46  ;;  %v4664_v16 = vpack.c.bf16 %v3002_v47, %v2998_v14  ;;  %v3006_v57 = vld [vmem:[#allocation12 + $0x580] sm:$0xff]  ;;  %v3015_v2 = vld [vmem:[#allocation12 + $0x5c8] sm:$0xff]  ;;  %v3021_v8 = vld [vmem:[#allocation12 + $0x5f8] sm:$0xff] }
 0xc05   : >> { %4649 = vmatpush1.bf16.msra.mxu1 %v4648_v19  ;;  %4777 = vmatpush1.bf16.msra.mxu0 %v4776_v24  ;;  %v2688_v19 = vmul.f32 1.0614054, %v6007_v40  ;;  %v4656_v24 = vpack.c.bf16 %v2986_v52, %v2982_v44  ;;  %v2693_v29 = vmul.f32 1.0614054, %v6011_v49  ;;  %v3011_v44 = vld [vmem:[#allocation12 + $0x5a8] sm:$0xff]  ;;  %v3009_v52 = vld [vmem:[#allocation12 + $0x598] sm:$0xff] }
 0xc06   : >> { %3249 = vmatprep.mubr.f32.mxu1 %v2825_v37  ;;  %3403 = vmatprep.mubr.f32.mxu0 %v2825_v37  ;;  %v6014_v63 = vpop.eup %5005  ;;  %v3004_v37 = vld [vmem:[#allocation12 + $0x570] sm:$0xff]  ;;  %v3010_v35 = vld [vmem:[#allocation12 + $0x5a0] sm:$0xff] }
 0xc07   : >> { %4651 = vmatprep.subr.bf16.mxu1 %v4650_v20  ;;  %4779 = vmatprep.subr.bf16.mxu0 %v4778_v21  ;;  %v2696_v30 = vadd.f32 -1.4531521, %v2688_v19  ;;  %v4790_v20 = vpack.c.bf16 %v3005_v36, %v3001_v11  ;;  %v3000_v21 = vld [vmem:[#allocation12 + $0x550] sm:$0xff]  ;;  %v4668_v3 = vpack.c.bf16 %v3010_v35, %v3006_v57  ;;  %v3014_v36 = vld [vmem:[#allocation12 + $0x5c0] sm:$0xff] }
 0xc08   : >> { %v4792_v28 = vpack.c.bf16 %v3004_v37, %v3000_v21  ;;  %v3016_v14 = vld [vmem:[#allocation12 + $0x5d0] sm:$0xff]  ;;  %v3027_v21 = vld [vmem:[#allocation12 + $0x628] sm:$0xff]  ;;  %v3025_v37 = vld [vmem:[#allocation12 + $0x618] sm:$0xff] }
 0xc09   : >> { %4653 = vmatpush1.bf16.msra.mxu1 %v4652_v62  ;;  %4781 = vmatpush1.bf16.msra.mxu0 %v4780_v12  ;;  %v3007_v62 = vld [vmem:[#allocation12 + $0x588] sm:$0xff]  ;;  %v2692_v12 = vmul.f32 1.0614054, %v6014_v63  ;;  %v2704_v7 = vmul.f32 %v6007_v40, %v2696_v30  ;;  %v2760_v30 = vsub.f32 0.0, %v5964_v13  ;;  %v3020_v47 = vld [vmem:[#allocation12 + $0x5f0] sm:$0xff] }
 0xc0a   : >> { %4655 = vmatprep.subr.bf16.mxu1 %v4654_v15  ;;  %4783 = vmatprep.subr.bf16.mxu0 %v4782_v43  ;;  %v3013_v15 = vld [vmem:[#allocation12 + $0x5b8] sm:$0xff]  ;;  %v2701_v43 = vadd.f32 -1.4531521, %v2693_v29  ;;  %v4666_v17 = vpack.c.bf16 %v3011_v44, %v3007_v62  ;;  %v3018_v29 = vld [vmem:[#allocation12 + $0x5e0] sm:$0xff]  ;;  %v2765_v44 = vsub.f32 0.0, %v5981_v59 }
 0xc0b   : >> { %v4794_v19 = vpack.c.bf16 %v3013_v15, %v3009_v52  ;;  %v2700_v1 = vadd.f32 -1.4531521, %v2692_v12  ;;  %v2712_v46 = vadd.f32 1.4214138, %v2704_v7  ;;  %v3029_v62 = vld [vmem:[#allocation12 + $0x638] sm:$0xff]  ;;  %v4672_v15 = vpack.c.bf16 %v3018_v29, %v3014_v36  ;;  %v3022_v7 = vld [vmem:[#allocation12 + $0x600] sm:$0xff] }
 0xc0c   : >> { %v2709_v58 = vmul.f32 %v6011_v49, %v2701_v43  ;;  %v4800_v43 = vpack.c.bf16 %v3020_v47, %v3016_v14  ;;  %v4802_v35 = vpack.c.bf16 %v3029_v62, %v3025_v37  ;;  %v3034_v36 = vld [vmem:[#allocation12 + $0x660] sm:$0xff]  ;;  %v3036_v14 = vld [vmem:[#allocation12 + $0x670] sm:$0xff]  ;;  %v3039_v47 = vld [vmem:[#allocation12 + $0x688] sm:$0xff] }
 0xc0d   : >> { %4657 = vmatpush1.bf16.msra.mxu1 %v4656_v24  ;;  %4785 = vmatpush1.bf16.msra.mxu0 %v4784_v38  ;;  %v3008_v24 = vld [vmem:[#allocation12 + $0x590] sm:$0xff]  ;;  %v2720_v52 = vmul.f32 %v6007_v40, %v2712_v46  ;;  %v3045_v37 = vld [vmem:[#allocation12 + $0x6b8] sm:$0xff] }
 0xc0e   : >> { %4659 = vmatprep.subr.bf16.mxu1 %v4658_v18  ;;  %4787 = vmatprep.subr.bf16.mxu0 %v4786_v5  ;;  %v3012_v38 = vld [vmem:[#allocation12 + $0x5b0] sm:$0xff]  ;;  %v3019_v18 = vld [vmem:[#allocation12 + $0x5e8] sm:$0xff]  ;;  %v3017_v5 = vld [vmem:[#allocation12 + $0x5d8] sm:$0xff]  ;;  %v2717_v12 = vadd.f32 1.4214138, %v2709_v58  ;;  %v2773_v58 = vmul.f32 %v2765_v44, %v5981_v59 }
 0xc0f   : >> { %v4796_v11 = vpack.c.bf16 %v3012_v38, %v3008_v24  ;;  %v3031_v24 = vld [vmem:[#allocation12 + $0x648] sm:$0xff]  ;;  %v2728_v46 = vadd.f32 -0.28449672, %v2720_v52 }
 0xc10   : >> { %v3043_v59 = vld [vmem:[#allocation12 + $0x6a8] sm:$0xff] }
 0xc11   : >> { %4661 = vmatpush1.bf16.msra.mxu1 %v4660_v10  ;;  %4789 = vmatpush1.bf16.msra.mxu0 %v4788_v41  ;;  %v4670_v10 = vpack.c.bf16 %v3019_v18, %v3015_v2  ;;  %v4798_v41 = vpack.c.bf16 %v3021_v8, %v3017_v5  ;;  %v2764_v2 = vsub.f32 0.0, %v5978_v51  ;;  %v3033_v18 = vld [vmem:[#allocation12 + $0x658] sm:$0xff]  ;;  %v2725_v8 = vmul.f32 %v6011_v49, %v2717_v12 }
 0xc12   : >> { %4663 = vmatprep.subr.bf16.mxu1 %v4662_v45  ;;  %4791 = vmatprep.subr.bf16.mxu0 %v4790_v20  ;;  %v3023_v45 = vld [vmem:[#allocation12 + $0x608] sm:$0xff]  ;;  %v2708_v20 = vmul.f32 %v6014_v63, %v2700_v1  ;;  %v3037_v5 = vld [vmem:[#allocation12 + $0x678] sm:$0xff]  ;;  %v2788_v12 = vmul.f32 1.442695, %v2773_v58  ;;  %v2736_v44 = vmul.f32 %v6007_v40, %v2728_v46  ;;  %v3046_v58 = vld [vmem:[#allocation12 + $0x6c0] sm:$0xff] }
 0xc13   : >> { %v4674_v57 = vpack.c.bf16 %v3027_v21, %v3023_v45  ;;  %v3035_v1 = vld [vmem:[#allocation12 + $0x668] sm:$0xff]  ;;  %v3041_v21 = vld [vmem:[#allocation12 + $0x698] sm:$0xff]  ;;  %v2733_v62 = vadd.f32 -0.28449672, %v2725_v8  ;;  %v3050_v46 = vld [vmem:[#allocation12 + $0x6e0] sm:$0xff] }
 0xc14   : >> { %v2716_v38 = vadd.f32 1.4214138, %v2708_v20  ;;  %v2772_v20 = vmul.f32 %v2764_v2, %v5978_v51  ;;  %v3044_v51 = vld [vmem:[#allocation12 + $0x6b0] sm:$0xff]  ;;  %v3053_v2 = vld [vmem:[#allocation12 + $0x6f8] sm:$0xff] }
 0xc15   : >> { %4665 = vmatpush1.bf16.msra.mxu1 %v4664_v16  ;;  %4793 = vmatpush1.bf16.msra.mxu0 %v4792_v28  ;;  %v3026_v16 = vld [vmem:[#allocation12 + $0x620] sm:$0xff]  ;;  %v2768_v28 = vmul.f32 %v2760_v30, %v5964_v13  ;;  %v4678_v30 = vpack.c.bf16 %v3035_v1, %v3031_v24  ;;  %v3051_v24 = vld [vmem:[#allocation12 + $0x6e8] sm:$0xff]  ;;  %v2741_v1 = vmul.f32 %v6011_v49, %v2733_v62 }
 0xc16   : >> { %4667 = vmatprep.subr.bf16.mxu1 %v4666_v17  ;;  %4795 = vmatprep.subr.bf16.mxu0 %v4794_v19  ;;  %v3024_v17 = vld [vmem:[#allocation12 + $0x610] sm:$0xff]  ;;  %v4676_v13 = vpack.c.bf16 %v3026_v16, %v3022_v7  ;;  %v2724_v45 = vmul.f32 %v6014_v63, %v2716_v38  ;;  %v3042_v7 = vld [vmem:[#allocation12 + $0x6a0] sm:$0xff]  ;;  %v4682_v16 = vpack.c.bf16 %v3043_v59, %v3039_v47  ;;  %v3049_v38 = vld [vmem:[#allocation12 + $0x6d8] sm:$0xff] }
 0xc17   : >> { %v3028_v19 = vld [vmem:[#allocation12 + $0x630] sm:$0xff]  ;;  %v2778_v29 = vmul.f32 1.442695, %v2768_v28  ;;  %v4810_v28 = vpack.c.bf16 %v3045_v37, %v3041_v21  ;;  %v2749_v47 = vadd.f32 0.2548296, %v2741_v1  ;;  %v3054_v21 = vld [vmem:[#allocation12 + $0x700] sm:$0xff] }
 0xc18   : >> { %v3058_v37 = vld [vmem:[#allocation12 + $0x720] sm:$0xff] }
 0xc19   : >> { %4669 = vmatpush1.bf16.msra.mxu1 %v4668_v3  ;;  %4797 = vmatpush1.bf16.msra.mxu0 %v4796_v11  ;;  %v4804_v3 = vpack.c.bf16 %v3028_v19, %v3024_v17  ;;  %v3030_v11 = vld [vmem:[#allocation12 + $0x640] sm:$0xff]  ;;  %5007 = vpow2.f32 %v2778_v29  ;;  %v2732_v17 = vadd.f32 -0.28449672, %v2724_v45  ;;  %v2786_v19 = vmul.f32 1.442695, %v2772_v20  ;;  %v3055_v29 = vld [vmem:[#allocation12 + $0x708] sm:$0xff] }
 0xc1a   : >> { %4671 = vmatprep.subr.bf16.mxu1 %v4670_v10  ;;  %4799 = vmatprep.subr.bf16.mxu0 %v4798_v41  ;;  %v4806_v10 = vpack.c.bf16 %v3037_v5, %v3033_v18  ;;  %v3032_v41 = vld [vmem:[#allocation12 + $0x650] sm:$0xff]  ;;  %v4680_v52 = vpack.c.bf16 %v3034_v36, %v3030_v11  ;;  %5009 = vpow2.f32 %v2788_v12  ;;  %v2744_v18 = vadd.f32 0.2548296, %v2736_v44 }
 0xc1b   : >> { %v3048_v11 = vld [vmem:[#allocation12 + $0x6d0] sm:$0xff]  ;;  %5011 = vpow2.f32 %v2786_v19  ;;  %v4688_v20 = vpack.c.bf16 %v3050_v46, %v3046_v58  ;;  %v3062_v19 = vld [vmem:[#allocation12 + $0x740] sm:$0xff]  ;;  %v3075_v46 = vld [vmem:[#allocation12 + $0x7a8] sm:$0xff] }
 0xc1c   : >> { %v3052_v36 = vld [vmem:[#allocation12 + $0x6f0] sm:$0xff]  ;;  %v2752_v45 = vmul.f32 %v6007_v40, %v2744_v18 }
 0xc1d   : >> { %4673 = vmatpush1.bf16.msra.mxu1 %v4672_v15  ;;  %4801 = vmatpush1.bf16.msra.mxu0 %v4800_v43  ;;  %v4808_v15 = vpack.c.bf16 %v3036_v14, %v3032_v41  ;;  %v3038_v43 = vld [vmem:[#allocation12 + $0x680] sm:$0xff]  ;;  %v3057_v41 = vld [vmem:[#allocation12 + $0x718] sm:$0xff]  ;;  %v4816_v59 = vpack.c.bf16 %v3052_v36, %v3048_v11  ;;  %v3056_v44 = vld [vmem:[#allocation12 + $0x710] sm:$0xff] }
 0xc1e   : >> { %4675 = vmatprep.subr.bf16.mxu1 %v4674_v57  ;;  %4803 = vmatprep.subr.bf16.mxu0 %v4802_v35  ;;  %v3040_v57 = vld [vmem:[#allocation12 + $0x690] sm:$0xff]  ;;  %v3047_v35 = vld [vmem:[#allocation12 + $0x6c8] sm:$0xff]  ;;  %v4684_v5 = vpack.c.bf16 %v3042_v7, %v3038_v43  ;;  %v3061_v14 = vld [vmem:[#allocation12 + $0x738] sm:$0xff] }
 0xc1f   : >> { %v4812_v8 = vpack.c.bf16 %v3044_v51, %v3040_v57  ;;  %v4818_v12 = vpack.c.bf16 %v3061_v14, %v3057_v41  ;;  %v3067_v7 = vld [vmem:[#allocation12 + $0x768] sm:$0xff]  ;;  %v2757_v57 = vmul.f32 %v6011_v49, %v2749_v47  ;;  %v3064_v18 = vld [vmem:[#allocation12 + $0x750] sm:$0xff]  ;;  %v3073_v49 = vld [vmem:[#allocation12 + $0x798] sm:$0xff] }
 0xc20   : >> { %v3072_v47 = vld [vmem:[#allocation12 + $0x790] sm:$0xff] }
 0xc21   : >> { %4677 = vmatpush1.bf16.msra.mxu1 %v4676_v13  ;;  %4805 = vmatpush1.bf16.msra.mxu0 %v4804_v3  ;;  %v4686_v13 = vpack.c.bf16 %v3051_v24, %v3047_v35  ;;  %v4814_v3 = vpack.c.bf16 %v3053_v2, %v3049_v38  ;;  %v4692_v35 = vpack.c.bf16 %v3058_v37, %v3054_v21  ;;  %v3066_v24 = vld [vmem:[#allocation12 + $0x760] sm:$0xff]  ;;  %v3083_v21 = vld [vmem:[#allocation12 + $0x7e8] sm:$0xff]  ;;  %v3081_v37 = vld [vmem:[#allocation12 + $0x7d8] sm:$0xff] }
 0xc22   : >> { %4679 = vmatprep.subr.bf16.mxu1 %v4678_v30  ;;  %4807 = vmatprep.subr.bf16.mxu0 %v4806_v10  ;;  %v2740_v30 = vmul.f32 %v6014_v63, %v2732_v17  ;;  %v3059_v10 = vld [vmem:[#allocation12 + $0x728] sm:$0xff]  ;;  %v4696_v36 = vpack.c.bf16 %v3066_v24, %v3062_v19 }
 0xc23   : >> { %v4690_v62 = vpack.c.bf16 %v3059_v10, %v3055_v29  ;;  %v5008_v40 = vpop.eup %5007  ;;  %v3074_v10 = vld [vmem:[#allocation12 + $0x7a0] sm:$0xff] }
 0xc24   : >> { %v2748_v43 = vadd.f32 0.2548296, %v2740_v30  ;;  %v2792_v51 = vmul.f32 %v5008_v40, %v2752_v45  ;;  %v5010_v38 = vpop.eup %5009  ;;  %v3070_v30 = vld [vmem:[#allocation12 + $0x780] sm:$0xff]  ;;  %v3076_v45 = vld [vmem:[#allocation12 + $0x7b0] sm:$0xff] }
 0xc25   : >> { %4681 = vmatpush1.bf16.msra.mxu1 %v4680_v52  ;;  %4809 = vmatpush1.bf16.msra.mxu0 %v4808_v15  ;;  %v3060_v52 = vld [vmem:[#allocation12 + $0x730] sm:$0xff]  ;;  %v3063_v15 = vld [vmem:[#allocation12 + $0x748] sm:$0xff]  ;;  %v5012_v11 = vpop.eup %5011  ;;  %v3082_v40 = vld [vmem:[#allocation12 + $0x7e0] sm:$0xff] }
 0xc26   : >> { %4683 = vmatprep.subr.bf16.mxu1 %v4682_v16  ;;  %4811 = vmatprep.subr.bf16.mxu0 %v4810_v28  ;;  %v3065_v16 = vld [vmem:[#allocation12 + $0x758] sm:$0xff]  ;;  %v4820_v17 = vpack.c.bf16 %v3060_v52, %v3056_v44  ;;  %v4694_v2 = vpack.c.bf16 %v3067_v7, %v3063_v15  ;;  %v2756_v58 = vmul.f32 %v6014_v63, %v2748_v43  ;;  %v2800_v41 = vsub.f32 1.0, %v2792_v51  ;;  %v3078_v7 = vld [vmem:[#allocation12 + $0x7c0] sm:$0xff]  ;;  %v3080_v51 = vld [vmem:[#allocation12 + $0x7d0] sm:$0xff] }
 0xc27   : >> { %v3069_v28 = vld [vmem:[#allocation12 + $0x778] sm:$0xff]  ;;  %v2640_v44 = vsel %vm2632_vm14, 1.0, %v6270_v6  ;;  %v2645_v52 = vsel %vm2637_vm3, 1.0, %v6270_v6  ;;  %v4700_v15 = vpack.c.bf16 %v3074_v10, %v3070_v30  ;;  %v4828_v43 = vpack.c.bf16 %v3076_v45, %v3072_v47 }
 0xc28   : >> { %v4822_v1 = vpack.c.bf16 %v3069_v28, %v3065_v16  ;;  %v2808_v16 = vmul.f32 %v2800_v41, %v2640_v44  ;;  %v4704_v19 = vpack.c.bf16 %v3082_v40, %v3078_v7  ;;  %v4832_v24 = vpack.c.bf16 %v3084_v42, %v3080_v51 }
 0xc29   : >> { %4685 = vmatpush1.bf16.msra.mxu1 %v4684_v5  ;;  %4813 = vmatpush1.bf16.msra.mxu0 %v4812_v8  ;;  %v3068_v5 = vld [vmem:[#allocation12 + $0x770] sm:$0xff]  ;;  %v3071_v8 = vld [vmem:[#allocation12 + $0x788] sm:$0xff] }
 0xc2a   : >> { %4687 = vmatprep.subr.bf16.mxu1 %v4686_v13  ;;  %4815 = vmatprep.subr.bf16.mxu0 %v4814_v3  ;;  %v3077_v13 = vld [vmem:[#allocation12 + $0x7b8] sm:$0xff]  ;;  %v2797_v3 = vmul.f32 %v5010_v38, %v2757_v57  ;;  %v4824_v29 = vpack.c.bf16 %v3068_v5, %v3064_v18  ;;  %v4698_v14 = vpack.c.bf16 %v3075_v46, %v3071_v8  ;;  %v2816_v38 = vadd.f32 1.0, %v2808_v16 }
 0xc2b   : >> { %v4826_v63 = vpack.c.bf16 %v3077_v13, %v3073_v49  ;;  %v2616_v18 = vmul.f32 0.5, %v5944_v50  ;;  %v2621_v5 = vmul.f32 0.5, %v5958_v9  ;;  %v6271_v46 = vsub.s32 2, %v5511_v4 }
 0xc2d   : >> { %4689 = vmatpush1.bf16.msra.mxu1 %v4688_v20  ;;  %4817 = vmatpush1.bf16.msra.mxu0 %v4816_v59  ;;  %v3079_v20 = vld [vmem:[#allocation12 + $0x7c8] sm:$0xff]  ;;  %v2796_v59 = vmul.f32 %v5012_v11, %v2756_v58  ;;  %v2824_v8 = vmul.f32 %v2816_v38, %v2616_v18  ;;  %v2620_v58 = vmul.f32 0.5, %v5954_v61 }
 0xc2e   : >> { %4691 = vmatprep.subr.bf16.mxu1 %v4690_v62  ;;  %4819 = vmatprep.subr.bf16.mxu0 %v4818_v12  ;;  %v3085_v62 = vld [vmem:[#allocation12 + $0x7f8] sm:$0xff]  ;;  %v2805_v12 = vsub.f32 1.0, %v2797_v3  ;;  %v4702_v28 = vpack.c.bf16 %v3083_v21, %v3079_v20  ;;  %v3086_v61 = vld [vmem:[%s6168_s17] sm:$0xf] }
 0xc2f   : >> { %v4830_v57 = vpack.c.bf16 %v3085_v62, %v3081_v37  ;;  %v3091_v9 = vrot.slane %v3086_v61, %v5706_v22  ;;  %v3099_v49 = vrot.slane %v3086_v61, %v6271_v46 }
 0xc31   : >> { %4693 = vmatpush1.bf16.msra.mxu1 %v4692_v35  ;;  %4821 = vmatpush1.bf16.msra.mxu0 %v4820_v17  ;;  %v2804_v35 = vsub.f32 1.0, %v2796_v59  ;;  %v2813_v17 = vmul.f32 %v2805_v12, %v2645_v52 }
 0xc32   : >> { %4695 = vmatprep.subr.bf16.mxu1 %v4694_v2  ;;  %4823 = vmatprep.subr.bf16.mxu0 %v4822_v1 }
 0xc33   : >> { %v2812_v2 = vmul.f32 %v2804_v35, %v2644_v0  ;;  %v2821_v1 = vadd.f32 1.0, %v2813_v17  ;;  %v6273_v0 = vsub.s32 3, %v5511_v4 }
 0xc35   : >> { %4697 = vmatpush1.bf16.msra.mxu1 %v4696_v36  ;;  %4825 = vmatpush1.bf16.msra.mxu0 %v4824_v29  ;;  %v2820_v39 = vadd.f32 1.0, %v2812_v2  ;;  %v2829_v6 = vmul.f32 %v2821_v1, %v2621_v5 }
 0xc36   : >> { %4699 = vmatprep.subr.bf16.mxu1 %v4698_v14  ;;  %4827 = vmatprep.subr.bf16.mxu0 %v4826_v63 }
 0xc37   : >> { %v2828_v50 = vmul.f32 %v2820_v39, %v2620_v58 }
 0xc39   : >> { %4701 = vmatpush1.bf16.msra.mxu1 %v4700_v15  ;;  %4829 = vmatpush1.bf16.msra.mxu0 %v4828_v43 }
 0xc3a   : >> { %4703 = vmatprep.subr.bf16.mxu1 %v4702_v28  ;;  %4831 = vmatprep.subr.bf16.mxu0 %v4830_v57 }
 0xc3d   : >> { %4705 = vmatpush1.bf16.msra.mxu1 %v4704_v19  ;;  %4833 = vmatpush1.bf16.msra.mxu0 %v4832_v24  ;;  %v3103_v19 = vrot.slane %v3086_v61, %v6273_v0 }
 0xc3e   : >> { %4836 = vmatprep.subr.msk.bf16.mxu1 %vm5751_vm10, %v5874_v27 }
 0xc40   : >> { %3250 = vmatmul.mubr.f32.vlgmr.msra.gmra.mrb[22].mxu1 %v2824_v8  ;;  %3404 = vmatmul.mubr.f32.vlgmr.msra.gmra.mrb[14].mxu0 %v2824_v8  ;;  %v6073_v8 = vld [vmem:[%s5677_s3] sm:$0xff] }
 0xc41   : >> { %3255 = vmatprep.mubr.f32.mxu1 %v2829_v6  ;;  %3409 = vmatprep.mubr.f32.mxu0 %v2829_v6 }
 0xc42   : >> { %4839 = vmatpush3.bf16.msk.msra.mxu1 %vm5751_vm10, %v5874_v27  ;;  %v3095_v27 = vrot.slane %v3086_v61, %v6272_v60  ;;  %v5045_v60 = vld [vmem:[%s5677_s3 + $0x8] sm:$0x3] }
 0xc44   : >> { %3256 = vmatmul.mubr.f32.gmra.mrb[24].mxu1 %v2828_v50  ;;  %3410 = vmatmul.mubr.f32.gmra.mrb[16].mxu0 %v2828_v50 }
 0xc45   : >> { %4259 = vmatprep.mubr.msk.f32.mxu1 %vm1023_vm9, %v5765_v25 }
 0xc48   : >> { %4260 = vmatmul.mubr.msk.f32.vlgmr.msra.gmra.mrb[26].mxu1 %vm1023_vm9, %v5767_v26 }
 0xd13   : >> { %v3251_v13 = vpop.f32.mrb[22].mxu1  ;;  %v3405_v3 = vpop.f32.mrb[14].mxu0 }
 0xd14   : >> { %v4842_v11 = vadd.f32 %v3251_v13, %v3091_v9  ;;  %v4846_v36 = vadd.f32 %v3405_v3, %v3099_v49  ;;  %v3253_v25 = vpop.f32.mrb[23].mxu1  ;;  %v3407_v29 = vpop.f32.mrb[15].mxu0 }
 0xd15   : >> { %v4843_v30 = vadd.f32 %v3253_v25, %v3095_v27  ;;  %v4847_v38 = vadd.f32 %v3407_v29, %v3103_v19 }
 0xd16   : >> { %v3939_v26 = vmul.f32 -1.442695, %v4842_v11  ;;  %v3943_v10 = vmul.f32 -1.442695, %v4846_v36 }
 0xd17   : >> { %v3941_v41 = vmul.f32 -1.442695, %v4843_v30  ;;  %v3257_v14 = vpop.f32.mrb[24].mxu1  ;;  %v3411_v63 = vpop.f32.mrb[16].mxu0 }
 0xd18   : >> { %5013 = vpow2.f32 %v3939_v26  ;;  %v4844_v22 = vadd.f32 %v3257_v14, %v3091_v9  ;;  %v4848_v47 = vadd.f32 %v3411_v63, %v3099_v49  ;;  %v3259_v45 = vpop.f32.mrb[25].mxu1  ;;  %v3413_v20 = vpop.f32.mrb[17].mxu0 }
 0xd19   : >> { %5015 = vpow2.f32 %v3943_v10  ;;  %v4845_v59 = vadd.f32 %v3259_v45, %v3095_v27  ;;  %v4849_v58 = vadd.f32 %v3413_v20, %v3103_v19 }
 0xd1a   : >> { %5017 = vpow2.f32 %v3941_v41  ;;  %v3940_v21 = vmul.f32 -1.442695, %v4844_v22  ;;  %v3944_v37 = vmul.f32 -1.442695, %v4848_v47 }
 0xd1b   : >> { %v3942_v62 = vmul.f32 -1.442695, %v4845_v59  ;;  %v4261_v12 = vpop.f32.mrb[26].mxu1 }
 0xd1c   : >> { %5019 = vpow2.f32 %v3940_v21  ;;  %3589 = vperm.xlu0 %4961, %v4261_v12   ;;  %v3573_v44 = vpop.f32.mrb[27].mxu1  ;;  %v3595_v25 = vsub.f32 1.0, %v4261_v12 }
 0xd1d   : >> { %5021 = vpow2.f32 %v3944_v37  ;;  %v3594_v36 = vsub.f32 1.0, %v3573_v44 }
 0xd1e   : >> { %5023 = vpow2.f32 %v3942_v62 }
 0xd22   : >> { %v5014_v52 = vpop.eup %5013 }
 0xd23   : >> { %v5016_v15 = vpop.eup %5015  ;;  %v3422_v43 = vadd.f32 1.0, %v5014_v52 }
 0xd24   : >> { %v5018_v7 = vpop.eup %5017  ;;  %v3446_v16 = vadd.f32 1.0, %v5016_v15  ;;  %v3945_v15 = vld [vmem:[%s6169_s18] ss:$0 sm:$0xff] }
 0xd25   : >> { %5025 = vrcp.f32 %v3422_v43  ;;  %v3434_v28 = vadd.f32 1.0, %v5018_v7 }
 0xd26   : >> { %v5020_v57 = vpop.eup %5019  ;;  %5027 = vrcp.f32 %v3446_v16 }
 0xd27   : >> { %v5022_v40 = vpop.eup %5021  ;;  %5029 = vrcp.f32 %v3434_v28  ;;  %v3423_v51 = vadd.f32 1.0, %v5020_v57 }
 0xd28   : >> { %v5024_v42 = vpop.eup %5023  ;;  %v3447_v35 = vadd.f32 1.0, %v5022_v40 }
 0xd29   : >> { %5031 = vrcp.f32 %v3423_v51  ;;  %v3435_v17 = vadd.f32 1.0, %v5024_v42 }
 0xd2a   : >> { %5033 = vrcp.f32 %v3447_v35 }
 0xd2b   : >> { %5035 = vrcp.f32 %v3435_v17 }
 0xd2f   : >> { %v5026_v24 = vpop.eup %5025 }
 0xd30   : >> { %v5028_v2 = vpop.eup %5027  ;;  %v3452_v1 = vmul.f32 %v5026_v24, %v5787_v55 }
 0xd31   : >> { %v5030_v18 = vpop.eup %5029  ;;  %v3458_v5 = vmul.f32 %v5028_v2, %v4847_v38 }
 0xd32   : >> { %v3454_v39 = vmul.f32 %v6073_v8, %v5030_v18 }
 0xd33   : >> { %v5032_v6 = vpop.eup %5031 }
 0xd34   : >> { %v5034_v50 = vpop.eup %5033  ;;  %v3453_v9 = vmul.f32 %v5032_v6, %v5785_v54  ;;  %v3456_v46 = vadd.f32 %v3454_v39, %v3452_v1 }
 0xd35   : >> { %v5036_v61 = vpop.eup %5035  ;;  %v3459_v49 = vmul.f32 %v5034_v50, %v4849_v58 }
 0xd36   : >> { %v3455_v27 = vmul.f32 %v5045_v60, %v5036_v61  ;;  %v3460_v13 = vadd.f32 %v3458_v5, %v3456_v46 }
 0xd38   : >> { %v3457_v3 = vadd.f32 %v3455_v27, %v3453_v9 }
 0xd3a   : >> { %v3461_v11 = vadd.f32 %v3459_v49, %v3457_v3 }
 0xd3c   : >> { %v3466_v55 = vsel %vm945_vm7, %v3461_v11, 0.0 }
 0xd3d   : >> { %3467 = vadd.xlane.f32.xlu1 %v3466_v55 }
 0xd41   : >> { %3464 = vadd.xlane.f32.xlu1 %v3460_v13 }
 0xd52   : >> { %3584 = vperm.xlu1 %4962, %v3573_v44  }
 0xd56   : >> { %3598 = vperm.xlu1 %4962, %v3594_v36  }
 0xd5a   : >> { %3603 = vperm.xlu1 %4962, %v3595_v25  }
 0xd9b   : >> { %v3590_v19 = vpop.permute.xlu0 %3589 }
 0xdca   : >> { %v3468_v29 = vpop.xlane.xlu1 %3467 }
 0xdcb   : >> { %v3470_v30 = vmul.f32 0.0078125, %v3468_v29 }
 0xdcd   : >> { %v3472_v10 = vsub.f32 %v3461_v11, %v3470_v30 }
 0xdce   : >> { %v3465_v54 = vpop.xlane.xlu1 %3464 }
 0xdcf   : >> { %v3469_v26 = vmul.f32 0.0078125, %v3465_v54  ;;  %v3474_v63 = vmul.f32 %v3472_v10, %v3472_v10 }
 0xdd1   : >> { %v3471_v41 = vsub.f32 %v3460_v13, %v3469_v26  ;;  %v3477_v22 = vsel %vm945_vm7, %v3474_v63, 0.0 }
 0xdd2   : >> { %v3585_v47 = vpop.permute.xlu1 %3584 }
 0xdd3   : >> { %v3473_v14 = vmul.f32 %v3471_v41, %v3471_v41 }
 0xdd5   : >> { %3475 = vadd.xlane.f32.xlu1 %v3473_v14 }
 0xdd6   : >> { %v3599_v45 = vpop.permute.xlu1 %3598 }
 0xdd7   : >> { %v3606_v40 = vmul.f32 %v6073_v8, %v3599_v45 }
 0xdd9   : >> { %3478 = vadd.xlane.f32.xlu1 %v3477_v22 }
 0xdda   : >> { %v3604_v20 = vpop.permute.xlu1 %3603 }
 0xddb   : >> { %v3607_v24 = vmul.f32 %v5045_v60, %v3604_v20 }
 0xdea   : >> { %3625 = vperm.xlu1 %4962, %v5872_v48   ;;  %v3946_v48 = vld [vmem:[%s6170_s19] ss:$0 sm:$0xff] }
 0xe62   : >> { %v3476_v59 = vpop.xlane.xlu1 %3475 }
 0xe63   : >> { %v3480_v21 = vmul.f32 0.0078125, %v3476_v59 }
 0xe65   : >> { %v3482_v37 = vadd.f32 1e-05, %v3480_v21 }
 0xe66   : >> { %v3479_v62 = vpop.xlane.xlu1 %3478 }
 0xe67   : >> { %5037 = vrsqrt.f32 %v3482_v37  ;;  %v3481_v12 = vmul.f32 0.0078125, %v3479_v62 }
 0xe69   : >> { %v3483_v44 = vadd.f32 1e-05, %v3481_v12 }
 0xe6a   : >> { %v3626_v0 = vpop.permute.xlu1 %3625 }
 0xe6b   : >> { %5039 = vrsqrt.f32 %v3483_v44  ;;  %vm3627_vm9 = vcmp.eq.s32.totalorder %v3626_v0, 1 }
 0xe71   : >> { %v5038_v52 = vpop.eup %5037 }
 0xe72   : >> { %v3486_v43 = vmul.f32 %v5038_v52, %v3471_v41 }
 0xe74   : >> { %v3494_v7 = vmul.f32 %v3945_v15, %v3486_v43 }
 0xe75   : >> { %v5040_v16 = vpop.eup %5039 }
 0xe76   : >> { %v3487_v28 = vmul.f32 %v5040_v16, %v3472_v10  ;;  %v3502_v57 = vadd.f32 %v3946_v48, %v3494_v7 }
 0xe78   : >> { %v3495_v51 = vmul.f32 %v3945_v15, %v3487_v28  ;;  %v3592_v42 = vmul.f32 %v3585_v47, %v3502_v57 }
 0xe7a   : >> { %v3503_v35 = vadd.f32 %v3946_v48, %v3495_v51  ;;  %v3608_v17 = vadd.f32 %v3606_v40, %v3592_v42 }
 0xe7c   : >> { %v3593_v38 = vmul.f32 %v3590_v19, %v3503_v35  ;;  %v3610_v2 = vmul.f32 %v3608_v17, %v5656_v53 }
 0xe7e   : >> { %v3609_v1 = vadd.f32 %v3607_v24, %v3593_v38  ;;  %v3628_v18 = vsel %vm3627_vm9, %v3610_v2, %v6073_v8 }
 0xe7f   : >> { %3649 = vst [vmem:[%s5677_s3] sm:$0xff] %v3628_v18 }
 0xe80   : >> { %v3611_v5 = vmul.f32 %v3609_v1, %v5659_v56 }
 0xe82   : >> { %v3629_v39 = vsel %vm3627_vm9, %v3611_v5, %v5045_v60 }
 0xe83   : >> { %3650 = vst [vmem:[%s5677_s3 + $0x8] sm:$0x3] %v3629_v39 }
 0xe84 PF: >> { %s1000_s4 = sadd.s32 1, %s5223_s4  }
 0xe85   : >> { %p997_p6 = scmp.ge.s32.totalorder %s1000_s4, 8  }
 0xe86   : > { %v6274_v6 = vmov (%p997_p6), 0   ;;  %v3657_v58 = vld [vmem:[%s5547_s2 + $0x8] sm:$0x3] (%p997_p6)  ;;  %v3656_v8 = vld [vmem:[%s5547_s2] sm:$0xff] (%p997_p6)  ;;  %s6275_s26 = sld [smem:[#allocation23_spill]] (%p997_p6)  ;;  %s3951_s4 = sshll.u32 (%p997_p6), %s5380_s15, 4 }
 0xe87   : > { %999 = sbr.rel (!%p997_p6) target bundleno = 811 (0x32b), region = 179  ;;  %5046 = vset.pattern.permute.xlu0 (%p997_p6), %v6274_v6  ;;  %v3654_v61 = vld [vmem:[%s5677_s3] sm:$0xff] (%p997_p6)  ;;  %s3700_s1 = sshll.u32 (%p997_p6), %s5685_s5, 4  ;;  %s6109_s1 = int_to_ptr.vmem [resolvable:$true] %s3700_s1 }
 0xe88   : > { %3665 = vperm.xlu0 (%p997_p6), %5046, %v3657_v58   ;;  %s6276_s23 = sld [smem:[#allocation48_spill]] (%p997_p6)  ;;  %s5143_s30 = scalar_lea.vmem (%p997_p6), %s6109_s1, 16 }
 0xe89   : > { %p5144_p7 = scmp.ne.s32.totalorder (%p997_p6), %s6109_s1, %s5143_s30  ;;  %s5242_s15 = smov (%p997_p6), [#allocation13]  }
 0xe8a   : > { %v3655_v50 = vld [vmem:[%s5677_s3 + $0x8] sm:$0x3] (%p997_p6)  ;;  %s3685_s3 = scalar_lea.sflag (%p997_p6), [#allocation9], %s737_s28  ;;  %s5147_s14 = sshll.u32 (%p997_p6), %s5242_s15, 4  ;;  %s5148_s14 = int_to_ptr.vmem [resolvable:$false] %s5147_s14 }
 0xe8b   : > { %s5149_s22 = scalar_lea.vmem (%p997_p6), %s5148_s14, 32  ;;  %p5150_p13 = scmp.lt.s32.totalorder (%p997_p6), %s6109_s1, %s5148_s14 }
 0xe8c   : > { %3660 = vperm.xlu0 (%p997_p6), %5046, %v3656_v8   ;;  %p6277_p8 = scmp.ne.s32.totalorder (%p997_p6), %s6275_s26, 0  ;;  %p5151_p2 = scmp.lt.s32.totalorder (%p997_p6), %s5149_s22, %s5143_s30 }
 0xe8e   : > { %s6107_s21 = scalar_lea.hbm %s6276_s23, %s3951_s4  ;;  %p5145_p9 = pnand %p5144_p7, %p6277_p8 }
 0xe8f   : > { %p5152_p10 = por %p5151_p2, %p5150_p13 }
 0xe90   : > { %p5146_p12 = pneg %p5145_p9 }
 0xe92   : > { %p5153_p5 = pnand %p5152_p10, %p5146_p12 }
 0xf07   : > { %v3666_v9 = vpop.permute.xlu0 %3665 }
 0xf08   : > { %v3669_v46 = vmul.f32 %v3666_v9, %v3655_v50 }
 0xf0a   : > { %v3670_v4 = vsel %vm945_vm7, %v3669_v46, 0.0 }
 0xf0b   : > { %v3661_v49 = vpop.permute.xlu0 %3660 }
 0xf0c   : > { %v3668_v60 = vmul.f32 %v3661_v49, %v3654_v61 }
 0xf0e   : > { %v3671_v23 = vadd.f32 %v3670_v4, %v3668_v60 }
 0xf10   : > { %v3672_v31 = vrot.slane %v3671_v23, 4 }
 0xf12   : > { %v3673_v32 = vadd.f32 %v3672_v31, %v3671_v23 }
 0xf14   : > { %v3674_v33 = vrot.slane %v3673_v32, 2 }
 0xf16   : > { %v3675_v34 = vadd.f32 %v3674_v33, %v3673_v32 }
 0xf18   : > { %v3676_v53 = vrot.slane %v3675_v34, 1 }
 0xf1a   : > { %v3677_v56 = vadd.f32 %v3676_v53, %v3675_v34 }
 0xf1c   : > { %3678 = vst [vmem:[%s5685_s5] sm:$0x1] %v3677_v56 }
 0xf1d   : > { %5156 = shalt.err (!%p5153_p5)
}
 0xf1e   : > { %s5157_s28 = scalar_lea.hbm %s6107_s21, 16  ;;  %s5161_s0 = scalar_lea.hbm %s6276_s23, 32 }
 0xf1f   : > { %p5158_p11 = scmp.ne.s32.totalorder %s6107_s21, %s5157_s28  ;;  %p5162_p3 = scmp.lt.u32.totalorder %s6107_s21, %s6276_s23 }
 0xf20   : > { %p5163_p4 = scmp.lt.u32.totalorder %s5161_s0, %s5157_s28  ;;  %p5165_p7 = scmp.lt.u32.totalorder %s5157_s28, %s6107_s21 }
 0xf21   : > { %p5159_p0 = pnand %p5158_p11, %p6277_p8 }
 0xf22   : > { %p5164_p6 = por %p5163_p4, %p5162_p3 }
 0xf23   : > { %p5160_p1 = pneg %p5159_p0 }
 0xf24   : > { %p5166_p9 = por %p5165_p7, %p5164_p6 }
 0xf26   : > { %p5167_p12 = pnand %p5166_p9, %p5160_p1 }
 0xf28   : > { %5170 = shalt.err (!%p5167_p12)
}
 0xf29   : > { %4876 = dma.vmem_to_hbm [thread:$0]  (%p6277_p8), %s6109_s1, 16, %s6107_s21, %s3685_s3  }
 0xf2a PF: > { %s6278_s4 = sld [smem:[#allocation20_spill]]  ;;  %s6279_s2 = sld [smem:[#allocation18_spill]] }
 0xf2b   : > { %s6280_s29 = sld [smem:[#allocation24_spill]] }
 0xf30   : > { %p4898_p13 = scmp.ge.s32.totalorder %s6278_s4, 2  ;;  %s3720_s30 = sand.u32 1, %s6279_s2  }
 0xf31   : > { %p6281_p2 = scmp.ne.s32.totalorder %s6280_s29, 0  ;;  %s3721_s15 = scalar_lea.sflag [#allocation9], %s3720_s30 }
 0xf33   : > { %p4889_p10 = pnand %p4898_p13, %p6281_p2 }
 0xf35   : > { %5202 = dma.done.wait (!%p4889_p10), %s3721_s15, 16  }
 0xf36   : > { %5204 = vsyncadd (!%p4889_p10), %s3721_s15, 4294967280  ;;  %s6282_s30 = sld [smem:[#allocation21_spill]]  ;;  %s6283_s14 = sld [smem:[#allocation19_spill]] }
 0xf37   : > { %s6284_s4 = sld [smem:[#allocation22_spill]]  ;;  %s6285_s0 = smov %s5211_s13 }
 0xf3c   : > { %p42_p5 = scmp.ge.s32.totalorder %s6282_s30, 4   ;;  %s6286_s13 = smov %s6283_s14 }
 0xf3e   :  { %44 = sbr.rel (!%p42_p5) target bundleno = 28 (0x1c), region = 190 }
 0xf45   :  { %3725 = vsyncpa [#allocation8], 1 }
 0xf46   :  { %3727 = vsyncpa [#allocation8 + $0x1], 1 }
 0xf47   :  { %3728 = vsyncpa [#allocation11], 1 }
 0xf48   :  { %3729 = vsyncpa [#allocation9], 1 }
 0xf49   :  { %3731 = vsyncpa [#allocation9 + $0x1], 1 }

</bundles_post_ra>
